<compile_context>
chip_gen: v7x
topology: tpu7x:2x2x1
jax: 0.10.0
libtpu: 0.0.40
codegen_flags: <defaults>
</compile_context>

<pallas_src>
import functools

import jax
import jax.numpy as jnp
from jax.experimental import pallas as pl
from jax.experimental.pallas import tpu as pltpu

HALO = 8      # 4 conv layers x (K//2 == 2) rows of context per side
LANE = 128


def _round_up(x, m):
    return (x + m - 1) // m * m


def _conv_same_fused_taps(x, w_flat, b, k):
    """'same' 1-D conv on a (blk, Cin) bf16 block as ONE MXU matmul.

    x:      (blk, Cin)     bf16
    w_flat: (k*Cin, Cout)  bf16   rows [t*Cin:(t+1)*Cin] = tap t (offset t - k//2)
    b:      (1, Cout)      f32
    returns (blk, Cout)    f32
    """
    pad = k // 2
    blk, cin = x.shape
    zeros = jnp.zeros((pad, cin), x.dtype)
    xp = jnp.concatenate([zeros, x, zeros], axis=0)                    # (blk + 2*pad, Cin)
    slab = jnp.concatenate([xp[t:t + blk, :] for t in range(k)], axis=1)  # (blk, k*Cin)
    return jnp.dot(slab, w_flat, preferred_element_type=jnp.float32) + b


def net_kernel(x_ref,
               w12_ref, b12_ref, w3_ref, b3_ref, w4_ref, b4_ref,
               w5_ref, b5_ref, wl_ref, bl_ref,
               out_ref, *, block_s, seq_len):
    si = pl.program_id(1)
    blk = block_s + 2 * HALO

    # haloed window of this batch element's (pre-padded) sequence.
    start = pl.multiple_of(si * block_s, 8)
    x = x_ref[0, pl.ds(start, blk), :]                                 # (blk, E) bf16

    # rows of the block that lie inside the real [0, seq_len) sequence.
    rows = jax.lax.broadcasted_iota(jnp.int32, (blk, 1), 0)
    gpos = rows + (si * block_s - HALO)
    mask = ((gpos >= 0) & (gpos < seq_len)).astype(jnp.float32)        # (blk, 1)

    def conv_relu(h, w_ref, b_ref, k, apply_mask=True):
        y = jnp.maximum(_conv_same_fused_taps(h, w_ref[...], b_ref[...], k), 0.0)
        if apply_mask:
            # emulate each conv layer's own zero padding at the true sequence
            # boundaries: halo rows outside [0, seq_len) must be exactly 0.
            y = y * mask
        return y.astype(jnp.bfloat16)

    h = conv_relu(x, w12_ref, b12_ref, 5)                # fused conv1 || conv2 -> (blk, 256)
    h = conv_relu(h, w3_ref, b3_ref, 5)
    h = conv_relu(h, w4_ref, b4_ref, 5)
    h = conv_relu(h, w5_ref, b5_ref, 5, apply_mask=False)  # pointwise ops follow; no halo use

    # keep only the rows this grid step owns, then linear + log_softmax in f32.
    hv = h[HALO:HALO + block_s, :]                                     # (block_s, 256)
    logits = jnp.dot(hv, wl_ref[...],
                     preferred_element_type=jnp.float32) + bl_ref[...]  # (block_s, 128)
    m = jnp.max(logits, axis=1, keepdims=True)
    lse = m + jnp.log(jnp.sum(jnp.exp(logits - m), axis=1, keepdims=True))
    out_ref[0] = logits - lse


def _prepare_kernel_params(p, t_pad):
    """Fuse conv1/conv2, flatten conv taps, pad the linear layer to the lane width, cast bf16."""
    e = p["w1"].shape[1]
    t = p["wl"].shape[1]

    # conv2 (K=3, pad=1) embedded into a K=5 window occupies taps 1..3.
    w2p = jnp.zeros((5, e, p["w2"].shape[2]), p["w2"].dtype).at[1:4].set(p["w2"])
    w12 = jnp.concatenate([p["w1"], w2p], axis=2)                      # (5, E, 256)
    b12 = jnp.concatenate([p["b1"], p["b2"]], axis=1)                  # (1, 256)

    def flat(w):                                                       # (K,Cin,Cout)->(K*Cin,Cout) bf16
        k, cin, cout = w.shape
        return w.reshape(k * cin, cout).astype(jnp.bfloat16)

    wl = jnp.zeros((p["wl"].shape[0], t_pad), jnp.float32).at[:, :t].set(p["wl"])
    bl = jnp.full((1, t_pad), -1e30, jnp.float32).at[:, :t].set(p["bl"])

    return {
        "w12": flat(w12), "b12": b12.astype(jnp.float32),
        "w3": flat(p["w3"]), "b3": p["b3"].astype(jnp.float32),
        "w4": flat(p["w4"]), "b4": p["b4"].astype(jnp.float32),
        "w5": flat(p["w5"]), "b5": p["b5"].astype(jnp.float32),
        "wl": wl.astype(jnp.bfloat16), "bl": bl,
    }


def net_forward_pallas(x_emb, params, *, block_s=None):
    """x_emb: (B, S, E) f32 concatenated embeddings. Returns (B*S, T) log-probs (f32)."""
    B, S, E = x_emb.shape
    T = params["wl"].shape[1]
    T_pad = _round_up(max(T, LANE), LANE)

    if block_s is None:
        block_s = min(256, _round_up(S, 8))
    block_s = max(8, (block_s // 8) * 8)
    S_pad = _round_up(S, block_s)
    n_s = S_pad // block_s
    S_tot = S_pad + 2 * HALO

    kp = _prepare_kernel_params(params, T_pad)

    # pre-pad the sequence with the halo (and up to a multiple of block_s), in bf16.
    x_pad = jnp.pad(x_emb.astype(jnp.bfloat16),
                    ((0, 0), (HALO, HALO + S_pad - S), (0, 0)))

    def const_spec(arr):
        nd = arr.ndim
        return pl.BlockSpec(arr.shape, lambda b, s, _nd=nd: (0,) * _nd)

    kernel = functools.partial(net_kernel, block_s=block_s, seq_len=S)

    out = pl.pallas_call(
        kernel,
        out_shape=jax.ShapeDtypeStruct((B, S_pad, T_pad), jnp.float32),
        grid=(B, n_s),
        in_specs=[
            # full (haloed) sequence of one batch element stays resident across the
            # seq-tile axis; the kernel slices its own haloed window out of it.
            pl.BlockSpec((1, S_tot, E), lambda b, s: (b, 0, 0)),
            const_spec(kp["w12"]), const_spec(kp["b12"]),
            const_spec(kp["w3"]), const_spec(kp["b3"]),
            const_spec(kp["w4"]), const_spec(kp["b4"]),
            const_spec(kp["w5"]), const_spec(kp["b5"]),
            const_spec(kp["wl"]), const_spec(kp["bl"]),
        ],
        out_specs=pl.BlockSpec((1, block_s, T_pad), lambda b, s: (b, s, 0)),
        compiler_params=pltpu.CompilerParams(
            dimension_semantics=("parallel", "parallel"),
            vmem_limit_bytes=48 * 1024 * 1024),
    )(x_pad,
      kp["w12"], kp["b12"], kp["w3"], kp["b3"], kp["w4"], kp["b4"],
      kp["w5"], kp["b5"], kp["wl"], kp["bl"])

    return out[:, :S, :T].reshape(B * S, T)


def reference_forward(x_emb, p):
    """Plain-JAX f32 reference mirroring the PyTorch forward (NCS conv layout)."""
    xe = jnp.transpose(x_emb, (0, 2, 1))                               # (B, E, S)

    def conv(x, w_kio, b):
        w_oik = jnp.transpose(w_kio, (2, 1, 0))                        # (Cout, Cin, K)
        pad = w_oik.shape[-1] // 2
        y = jax.lax.conv_general_dilated(
            x, w_oik, window_strides=(1,), padding=[(pad, pad)],
            dimension_numbers=("NCH", "OIH", "NCH"))
        return y + b.reshape(1, -1, 1)

    h = jnp.maximum(jnp.concatenate(
        [conv(xe, p["w1"], p["b1"]), conv(xe, p["w2"], p["b2"])], axis=1), 0.0)
    h = jnp.maximum(conv(h, p["w3"], p["b3"]), 0.0)
    h = jnp.maximum(conv(h, p["w4"], p["b4"]), 0.0)
    h = jnp.maximum(conv(h, p["w5"], p["b5"]), 0.0)
    s = jnp.transpose(h, (0, 2, 1)).reshape(-1, h.shape[1])            # (B*S, 256)
    logit = s @ p["wl"] + p["bl"].reshape(-1)
    return jax.nn.log_softmax(logit, axis=1)


def init_params(key, vocab_size, gen_dim, domain_dim, num_tags):
    E = gen_dim + domain_dim
    keys = jax.random.split(key, 16)

    def w(k, shape, scale=0.05):
        return (scale * jax.random.normal(k, shape)).astype(jnp.float32)

    return {
        "emb_gen": w(keys[0], (vocab_size, gen_dim), 1.0),
        "emb_domain": w(keys[1], (vocab_size, domain_dim), 1.0),
        # conv weights stored as (K, Cin, Cout); biases as (1, Cout)
        "w1": w(keys[2], (5, E, 128)), "b1": w(keys[3], (1, 128)),
        "w2": w(keys[4], (3, E, 128)), "b2": w(keys[5], (1, 128)),
        "w3": w(keys[6], (5, 256, 256)), "b3": w(keys[7], (1, 256)),
        "w4": w(keys[8], (5, 256, 256)), "b4": w(keys[9], (1, 256)),
        "w5": w(keys[10], (5, 256, 256)), "b5": w(keys[11], (1, 256)),
        # linear_ae: stored as (256, T) (PyTorch weight transposed)
        "wl": w(keys[12], (256, num_tags)), "bl": w(keys[13], (1, num_tags)),
    }


if __name__ == "__main__":
    B, S = 2, 16
    vocab_size, gen_dim, domain_dim, num_tags = 50, 32, 16, 8

    key = jax.random.PRNGKey(0)
    k_param, k_tok = jax.random.split(key)
    params = init_params(k_param, vocab_size, gen_dim, domain_dim, num_tags)

    # token ids (batch of sentences)
    x_tok = jax.random.randint(k_tok, (B, S), 0, vocab_size)

    # Embedding lookup + concat (plain-JAX glue); dropout is identity at inference.
    x_emb = jnp.concatenate(
        [params["emb_gen"][x_tok], params["emb_domain"][x_tok]], axis=2
    ).astype(jnp.float32)                                              # (B, S, E)

    # block_s=8 -> grid (B, S//8) = (2, 2): exercises both the seq-tiling and halo paths.
    out = net_forward_pallas(x_emb, params, block_s=8)                 # (B*S, num_tags)
    out = jax.block_until_ready(out)

    ref = jax.block_until_ready(reference_forward(x_emb, params))
    assert out.shape == (B * S, num_tags)
    assert jnp.allclose(out, ref, atol=5e-2, rtol=5e-2), (
        "mismatch vs reference: max abs diff "
        f"{float(jnp.max(jnp.abs(out - ref)))}")

    print("KERNEL_OK")
</pallas_src>

<mosaic_0001>
module attributes {stable_mosaic.version = 11 : i64} {
  func.func @net_kernel(%arg0: i32, %arg1: i32, %arg2: memref<1x32x48xbf16, #tpu.memory_space<vmem>>, %arg3: memref<240x256xbf16, #tpu.memory_space<vmem>>, %arg4: memref<1x256xf32, #tpu.memory_space<vmem>>, %arg5: memref<1280x256xbf16, #tpu.memory_space<vmem>>, %arg6: memref<1x256xf32, #tpu.memory_space<vmem>>, %arg7: memref<1280x256xbf16, #tpu.memory_space<vmem>>, %arg8: memref<1x256xf32, #tpu.memory_space<vmem>>, %arg9: memref<1280x256xbf16, #tpu.memory_space<vmem>>, %arg10: memref<1x256xf32, #tpu.memory_space<vmem>>, %arg11: memref<256x128xbf16, #tpu.memory_space<vmem>>, %arg12: memref<1x128xf32, #tpu.memory_space<vmem>>, %arg13: memref<1x8x128xf32, #tpu.memory_space<vmem>>) attributes {dimension_semantics = [#tpu.dimension_semantics<parallel>, #tpu.dimension_semantics<parallel>], iteration_bounds = array<i64: 2, 2>, scalar_prefetch = 0 : i64, scratch_operands = 0 : i64, tpu.core_type = #tpu.core_type<tc>, window_params = [{transform_indices = @transform_0, window_bounds = array<i64: 1, 32, 48>}, {pipeline_mode = #tpu.pipeline_mode<synchronous>, transform_indices = @transform_1, window_bounds = array<i64: 240, 256>}, {pipeline_mode = #tpu.pipeline_mode<synchronous>, transform_indices = @transform_2, window_bounds = array<i64: 1, 256>}, {pipeline_mode = #tpu.pipeline_mode<synchronous>, transform_indices = @transform_3, window_bounds = array<i64: 1280, 256>}, {pipeline_mode = #tpu.pipeline_mode<synchronous>, transform_indices = @transform_4, window_bounds = array<i64: 1, 256>}, {pipeline_mode = #tpu.pipeline_mode<synchronous>, transform_indices = @transform_5, window_bounds = array<i64: 1280, 256>}, {pipeline_mode = #tpu.pipeline_mode<synchronous>, transform_indices = @transform_6, window_bounds = array<i64: 1, 256>}, {pipeline_mode = #tpu.pipeline_mode<synchronous>, transform_indices = @transform_7, window_bounds = array<i64: 1280, 256>}, {pipeline_mode = #tpu.pipeline_mode<synchronous>, transform_indices = @transform_8, window_bounds = array<i64: 1, 256>}, {pipeline_mode = #tpu.pipeline_mode<synchronous>, transform_indices = @transform_9, window_bounds = array<i64: 256, 128>}, {pipeline_mode = #tpu.pipeline_mode<synchronous>, transform_indices = @transform_10, window_bounds = array<i64: 1, 128>}, {transform_indices = @transform_11, window_bounds = array<i64: 1, 8, 128>}]} {
    %c8_i32 = arith.constant 8 : i32
    %0 = arith.muli %arg1, %c8_i32 : i32
    %1 = tpu.assume_multiple %0, 8 : i32
    %c0 = arith.constant 0 : index
    %2 = arith.index_cast %1 : i32 to index
    %c0_0 = arith.constant 0 : index
    %3 = vector.load %arg2[%c0, %2, %c0_0] : memref<1x32x48xbf16, #tpu.memory_space<vmem>>, vector<1x24x48xbf16>
    %4 = vector.shape_cast %3 : vector<1x24x48xbf16> to vector<24x48xbf16>
    %5 = tpu.iota {dimensions = array<i32: 0>} : vector<24x1xi32>
    %c8_i32_1 = arith.constant 8 : i32
    %6 = arith.muli %arg1, %c8_i32_1 : i32
    %c8_i32_2 = arith.constant 8 : i32
    %7 = arith.subi %6, %c8_i32_2 : i32
    %8 = vector.broadcast %7 : i32 to vector<24x1xi32>
    %9 = arith.addi %5, %8 : vector<24x1xi32>
    %c0_i32 = arith.constant 0 : i32
    %10 = vector.broadcast %c0_i32 : i32 to vector<24x1xi32>
    %11 = arith.cmpi sge, %9, %10 : vector<24x1xi32>
    %c16_i32 = arith.constant 16 : i32
    %12 = vector.broadcast %c16_i32 : i32 to vector<24x1xi32>
    %13 = arith.cmpi slt, %9, %12 : vector<24x1xi32>
    %14 = arith.andi %11, %13 : vector<24x1xi1>
    %15 = arith.extui %14 : vector<24x1xi1> to vector<24x1xi32>
    %16 = arith.sitofp %15 : vector<24x1xi32> to vector<24x1xf32>
    %c0_3 = arith.constant 0 : index
    %c0_4 = arith.constant 0 : index
    %17 = vector.load %arg3[%c0_3, %c0_4] : memref<240x256xbf16, #tpu.memory_space<vmem>>, vector<240x256xbf16>
    %c0_5 = arith.constant 0 : index
    %c0_6 = arith.constant 0 : index
    %18 = vector.load %arg4[%c0_5, %c0_6] : memref<1x256xf32, #tpu.memory_space<vmem>>, vector<1x256xf32>
    %cst = arith.constant 0.000000e+00 : bf16
    %19 = vector.broadcast %cst : bf16 to vector<2x48xbf16>
    %20 = tpu.concatenate %19, %4, %19 in 0 : vector<2x48xbf16>, vector<24x48xbf16>, vector<2x48xbf16> -> vector<28x48xbf16>
    %21 = vector.extract_strided_slice %20 {offsets = [0, 0], sizes = [24, 48], strides = [1, 1]} : vector<28x48xbf16> to vector<24x48xbf16>
    %22 = vector.extract_strided_slice %20 {offsets = [1, 0], sizes = [24, 48], strides = [1, 1]} : vector<28x48xbf16> to vector<24x48xbf16>
    %23 = vector.extract_strided_slice %20 {offsets = [2, 0], sizes = [24, 48], strides = [1, 1]} : vector<28x48xbf16> to vector<24x48xbf16>
    %24 = vector.extract_strided_slice %20 {offsets = [3, 0], sizes = [24, 48], strides = [1, 1]} : vector<28x48xbf16> to vector<24x48xbf16>
    %25 = vector.extract_strided_slice %20 {offsets = [4, 0], sizes = [24, 48], strides = [1, 1]} : vector<28x48xbf16> to vector<24x48xbf16>
    %26 = tpu.concatenate %21, %22, %23, %24, %25 in 1 : vector<24x48xbf16>, vector<24x48xbf16>, vector<24x48xbf16>, vector<24x48xbf16>, vector<24x48xbf16> -> vector<24x240xbf16>
    %cst_7 = arith.constant dense<0.000000e+00> : vector<24x256xf32>
    %27 = tpu.matmul %26, %17, %cst_7 {dimension_numbers = #tpu.dot_dimension_numbers<[1], [0], [0], [1], [0, 0, 1, 1], [], []>} : vector<24x240xbf16>, vector<240x256xbf16>, vector<24x256xf32> -> vector<24x256xf32>
    %28 = vector.broadcast %18 : vector<1x256xf32> to vector<24x256xf32>
    %29 = arith.addf %27, %28 : vector<24x256xf32>
    %cst_8 = arith.constant 0.000000e+00 : f32
    %30 = vector.broadcast %cst_8 : f32 to vector<24x256xf32>
    %31 = arith.maximumf %29, %30 : vector<24x256xf32>
    %32 = vector.broadcast %16 : vector<24x1xf32> to vector<24x256xf32>
    %33 = arith.mulf %31, %32 : vector<24x256xf32>
    %34 = arith.truncf %33 : vector<24x256xf32> to vector<24x256xbf16>
    %c0_9 = arith.constant 0 : index
    %c0_10 = arith.constant 0 : index
    %35 = vector.load %arg5[%c0_9, %c0_10] : memref<1280x256xbf16, #tpu.memory_space<vmem>>, vector<1280x256xbf16>
    %c0_11 = arith.constant 0 : index
    %c0_12 = arith.constant 0 : index
    %36 = vector.load %arg6[%c0_11, %c0_12] : memref<1x256xf32, #tpu.memory_space<vmem>>, vector<1x256xf32>
    %cst_13 = arith.constant 0.000000e+00 : bf16
    %37 = vector.broadcast %cst_13 : bf16 to vector<2x256xbf16>
    %38 = tpu.concatenate %37, %34, %37 in 0 : vector<2x256xbf16>, vector<24x256xbf16>, vector<2x256xbf16> -> vector<28x256xbf16>
    %39 = vector.extract_strided_slice %38 {offsets = [0, 0], sizes = [24, 256], strides = [1, 1]} : vector<28x256xbf16> to vector<24x256xbf16>
    %40 = vector.extract_strided_slice %38 {offsets = [1, 0], sizes = [24, 256], strides = [1, 1]} : vector<28x256xbf16> to vector<24x256xbf16>
    %41 = vector.extract_strided_slice %38 {offsets = [2, 0], sizes = [24, 256], strides = [1, 1]} : vector<28x256xbf16> to vector<24x256xbf16>
    %42 = vector.extract_strided_slice %38 {offsets = [3, 0], sizes = [24, 256], strides = [1, 1]} : vector<28x256xbf16> to vector<24x256xbf16>
    %43 = vector.extract_strided_slice %38 {offsets = [4, 0], sizes = [24, 256], strides = [1, 1]} : vector<28x256xbf16> to vector<24x256xbf16>
    %44 = tpu.concatenate %39, %40, %41, %42, %43 in 1 : vector<24x256xbf16>, vector<24x256xbf16>, vector<24x256xbf16>, vector<24x256xbf16>, vector<24x256xbf16> -> vector<24x1280xbf16>
    %cst_14 = arith.constant dense<0.000000e+00> : vector<24x256xf32>
    %45 = tpu.matmul %44, %35, %cst_14 {dimension_numbers = #tpu.dot_dimension_numbers<[1], [0], [0], [1], [0, 0, 1, 1], [], []>} : vector<24x1280xbf16>, vector<1280x256xbf16>, vector<24x256xf32> -> vector<24x256xf32>
    %46 = vector.broadcast %36 : vector<1x256xf32> to vector<24x256xf32>
    %47 = arith.addf %45, %46 : vector<24x256xf32>
    %cst_15 = arith.constant 0.000000e+00 : f32
    %48 = vector.broadcast %cst_15 : f32 to vector<24x256xf32>
    %49 = arith.maximumf %47, %48 : vector<24x256xf32>
    %50 = vector.broadcast %16 : vector<24x1xf32> to vector<24x256xf32>
    %51 = arith.mulf %49, %50 : vector<24x256xf32>
    %52 = arith.truncf %51 : vector<24x256xf32> to vector<24x256xbf16>
    %c0_16 = arith.constant 0 : index
    %c0_17 = arith.constant 0 : index
    %53 = vector.load %arg7[%c0_16, %c0_17] : memref<1280x256xbf16, #tpu.memory_space<vmem>>, vector<1280x256xbf16>
    %c0_18 = arith.constant 0 : index
    %c0_19 = arith.constant 0 : index
    %54 = vector.load %arg8[%c0_18, %c0_19] : memref<1x256xf32, #tpu.memory_space<vmem>>, vector<1x256xf32>
    %cst_20 = arith.constant 0.000000e+00 : bf16
    %55 = vector.broadcast %cst_20 : bf16 to vector<2x256xbf16>
    %56 = tpu.concatenate %55, %52, %55 in 0 : vector<2x256xbf16>, vector<24x256xbf16>, vector<2x256xbf16> -> vector<28x256xbf16>
    %57 = vector.extract_strided_slice %56 {offsets = [0, 0], sizes = [24, 256], strides = [1, 1]} : vector<28x256xbf16> to vector<24x256xbf16>
    %58 = vector.extract_strided_slice %56 {offsets = [1, 0], sizes = [24, 256], strides = [1, 1]} : vector<28x256xbf16> to vector<24x256xbf16>
    %59 = vector.extract_strided_slice %56 {offsets = [2, 0], sizes = [24, 256], strides = [1, 1]} : vector<28x256xbf16> to vector<24x256xbf16>
    %60 = vector.extract_strided_slice %56 {offsets = [3, 0], sizes = [24, 256], strides = [1, 1]} : vector<28x256xbf16> to vector<24x256xbf16>
    %61 = vector.extract_strided_slice %56 {offsets = [4, 0], sizes = [24, 256], strides = [1, 1]} : vector<28x256xbf16> to vector<24x256xbf16>
    %62 = tpu.concatenate %57, %58, %59, %60, %61 in 1 : vector<24x256xbf16>, vector<24x256xbf16>, vector<24x256xbf16>, vector<24x256xbf16>, vector<24x256xbf16> -> vector<24x1280xbf16>
    %cst_21 = arith.constant dense<0.000000e+00> : vector<24x256xf32>
    %63 = tpu.matmul %62, %53, %cst_21 {dimension_numbers = #tpu.dot_dimension_numbers<[1], [0], [0], [1], [0, 0, 1, 1], [], []>} : vector<24x1280xbf16>, vector<1280x256xbf16>, vector<24x256xf32> -> vector<24x256xf32>
    %64 = vector.broadcast %54 : vector<1x256xf32> to vector<24x256xf32>
    %65 = arith.addf %63, %64 : vector<24x256xf32>
    %cst_22 = arith.constant 0.000000e+00 : f32
    %66 = vector.broadcast %cst_22 : f32 to vector<24x256xf32>
    %67 = arith.maximumf %65, %66 : vector<24x256xf32>
    %68 = vector.broadcast %16 : vector<24x1xf32> to vector<24x256xf32>
    %69 = arith.mulf %67, %68 : vector<24x256xf32>
    %70 = arith.truncf %69 : vector<24x256xf32> to vector<24x256xbf16>
    %c0_23 = arith.constant 0 : index
    %c0_24 = arith.constant 0 : index
    %71 = vector.load %arg9[%c0_23, %c0_24] : memref<1280x256xbf16, #tpu.memory_space<vmem>>, vector<1280x256xbf16>
    %c0_25 = arith.constant 0 : index
    %c0_26 = arith.constant 0 : index
    %72 = vector.load %arg10[%c0_25, %c0_26] : memref<1x256xf32, #tpu.memory_space<vmem>>, vector<1x256xf32>
    %cst_27 = arith.constant 0.000000e+00 : bf16
    %73 = vector.broadcast %cst_27 : bf16 to vector<2x256xbf16>
    %74 = tpu.concatenate %73, %70, %73 in 0 : vector<2x256xbf16>, vector<24x256xbf16>, vector<2x256xbf16> -> vector<28x256xbf16>
    %75 = vector.extract_strided_slice %74 {offsets = [0, 0], sizes = [24, 256], strides = [1, 1]} : vector<28x256xbf16> to vector<24x256xbf16>
    %76 = vector.extract_strided_slice %74 {offsets = [1, 0], sizes = [24, 256], strides = [1, 1]} : vector<28x256xbf16> to vector<24x256xbf16>
    %77 = vector.extract_strided_slice %74 {offsets = [2, 0], sizes = [24, 256], strides = [1, 1]} : vector<28x256xbf16> to vector<24x256xbf16>
    %78 = vector.extract_strided_slice %74 {offsets = [3, 0], sizes = [24, 256], strides = [1, 1]} : vector<28x256xbf16> to vector<24x256xbf16>
    %79 = vector.extract_strided_slice %74 {offsets = [4, 0], sizes = [24, 256], strides = [1, 1]} : vector<28x256xbf16> to vector<24x256xbf16>
    %80 = tpu.concatenate %75, %76, %77, %78, %79 in 1 : vector<24x256xbf16>, vector<24x256xbf16>, vector<24x256xbf16>, vector<24x256xbf16>, vector<24x256xbf16> -> vector<24x1280xbf16>
    %cst_28 = arith.constant dense<0.000000e+00> : vector<24x256xf32>
    %81 = tpu.matmul %80, %71, %cst_28 {dimension_numbers = #tpu.dot_dimension_numbers<[1], [0], [0], [1], [0, 0, 1, 1], [], []>} : vector<24x1280xbf16>, vector<1280x256xbf16>, vector<24x256xf32> -> vector<24x256xf32>
    %82 = vector.broadcast %72 : vector<1x256xf32> to vector<24x256xf32>
    %83 = arith.addf %81, %82 : vector<24x256xf32>
    %cst_29 = arith.constant 0.000000e+00 : f32
    %84 = vector.broadcast %cst_29 : f32 to vector<24x256xf32>
    %85 = arith.maximumf %83, %84 : vector<24x256xf32>
    %86 = arith.truncf %85 : vector<24x256xf32> to vector<24x256xbf16>
    %87 = vector.extract_strided_slice %86 {offsets = [8, 0], sizes = [8, 256], strides = [1, 1]} : vector<24x256xbf16> to vector<8x256xbf16>
    %c0_30 = arith.constant 0 : index
    %c0_31 = arith.constant 0 : index
    %88 = vector.load %arg11[%c0_30, %c0_31] : memref<256x128xbf16, #tpu.memory_space<vmem>>, vector<256x128xbf16>
    %cst_32 = arith.constant dense<0.000000e+00> : vector<8x128xf32>
    %89 = tpu.matmul %87, %88, %cst_32 {dimension_numbers = #tpu.dot_dimension_numbers<[1], [0], [0], [1], [0, 0, 1, 1], [], []>} : vector<8x256xbf16>, vector<256x128xbf16>, vector<8x128xf32> -> vector<8x128xf32>
    %c0_33 = arith.constant 0 : index
    %c0_34 = arith.constant 0 : index
    %90 = vector.load %arg12[%c0_33, %c0_34] : memref<1x128xf32, #tpu.memory_space<vmem>>, vector<1x128xf32>
    %91 = vector.broadcast %90 : vector<1x128xf32> to vector<8x128xf32>
    %92 = arith.addf %89, %91 : vector<8x128xf32>
    %cst_35 = arith.constant dense<0xFF800000> : vector<8xf32>
    %93 = vector.multi_reduction <maximumf>, %92, %cst_35 [1] : vector<8x128xf32> to vector<8xf32>
    %94 = vector.shape_cast %93 : vector<8xf32> to vector<8x1xf32>
    %95 = vector.broadcast %94 : vector<8x1xf32> to vector<8x128xf32>
    %96 = arith.subf %92, %95 : vector<8x128xf32>
    %97 = math.exp %96 : vector<8x128xf32>
    %cst_36 = arith.constant dense<0.000000e+00> : vector<8xf32>
    %98 = vector.multi_reduction <add>, %97, %cst_36 [1] : vector<8x128xf32> to vector<8xf32>
    %99 = vector.shape_cast %98 : vector<8xf32> to vector<8x1xf32>
    %100 = math.log %99 : vector<8x1xf32>
    %101 = arith.addf %94, %100 : vector<8x1xf32>
    %102 = vector.broadcast %101 : vector<8x1xf32> to vector<8x128xf32>
    %103 = arith.subf %92, %102 : vector<8x128xf32>
    %c0_37 = arith.constant 0 : index
    %c0_38 = arith.constant 0 : index
    %c0_39 = arith.constant 0 : index
    %104 = vector.load %arg13[%c0_37, %c0_38, %c0_39] : memref<1x8x128xf32, #tpu.memory_space<vmem>>, vector<1x8x128xf32>
    %105 = vector.shape_cast %104 : vector<1x8x128xf32> to vector<8x128xf32>
    %106 = vector.shape_cast %103 : vector<8x128xf32> to vector<1x8x128xf32>
    tpu.vector_store %arg13[%c0_37, %c0_38, %c0_39], %106 {strides = array<i32>} : memref<1x8x128xf32, #tpu.memory_space<vmem>>, vector<1x8x128xf32>,
    return
  }
  func.func @transform_0(%arg0: i32, %arg1: i32) -> (i32, i32, i32) {
    %c0_i32 = arith.constant 0 : i32
    %c0_i32_0 = arith.constant 0 : i32
    %c0_i32_1 = arith.constant 0 : i32
    return %arg0, %c0_i32, %c0_i32_0 : i32, i32, i32
  }
  func.func @transform_1(%arg0: i32, %arg1: i32) -> (i32, i32) {
    %c0_i32 = arith.constant 0 : i32
    %c0_i32_0 = arith.constant 0 : i32
    %c0_i32_1 = arith.constant 0 : i32
    return %c0_i32, %c0_i32_0 : i32, i32
  }
  func.func @transform_2(%arg0: i32, %arg1: i32) -> (i32, i32) {
    %c0_i32 = arith.constant 0 : i32
    %c0_i32_0 = arith.constant 0 : i32
    %c0_i32_1 = arith.constant 0 : i32
    return %c0_i32, %c0_i32_0 : i32, i32
  }
  func.func @transform_3(%arg0: i32, %arg1: i32) -> (i32, i32) {
    %c0_i32 = arith.constant 0 : i32
    %c0_i32_0 = arith.constant 0 : i32
    %c0_i32_1 = arith.constant 0 : i32
    return %c0_i32, %c0_i32_0 : i32, i32
  }
  func.func @transform_4(%arg0: i32, %arg1: i32) -> (i32, i32) {
    %c0_i32 = arith.constant 0 : i32
    %c0_i32_0 = arith.constant 0 : i32
    %c0_i32_1 = arith.constant 0 : i32
    return %c0_i32, %c0_i32_0 : i32, i32
  }
  func.func @transform_5(%arg0: i32, %arg1: i32) -> (i32, i32) {
    %c0_i32 = arith.constant 0 : i32
    %c0_i32_0 = arith.constant 0 : i32
    %c0_i32_1 = arith.constant 0 : i32
    return %c0_i32, %c0_i32_0 : i32, i32
  }
  func.func @transform_6(%arg0: i32, %arg1: i32) -> (i32, i32) {
    %c0_i32 = arith.constant 0 : i32
    %c0_i32_0 = arith.constant 0 : i32
    %c0_i32_1 = arith.constant 0 : i32
    return %c0_i32, %c0_i32_0 : i32, i32
  }
  func.func @transform_7(%arg0: i32, %arg1: i32) -> (i32, i32) {
    %c0_i32 = arith.constant 0 : i32
    %c0_i32_0 = arith.constant 0 : i32
    %c0_i32_1 = arith.constant 0 : i32
    return %c0_i32, %c0_i32_0 : i32, i32
  }
  func.func @transform_8(%arg0: i32, %arg1: i32) -> (i32, i32) {
    %c0_i32 = arith.constant 0 : i32
    %c0_i32_0 = arith.constant 0 : i32
    %c0_i32_1 = arith.constant 0 : i32
    return %c0_i32, %c0_i32_0 : i32, i32
  }
  func.func @transform_9(%arg0: i32, %arg1: i32) -> (i32, i32) {
    %c0_i32 = arith.constant 0 : i32
    %c0_i32_0 = arith.constant 0 : i32
    %c0_i32_1 = arith.constant 0 : i32
    return %c0_i32, %c0_i32_0 : i32, i32
  }
  func.func @transform_10(%arg0: i32, %arg1: i32) -> (i32, i32) {
    %c0_i32 = arith.constant 0 : i32
    %c0_i32_0 = arith.constant 0 : i32
    %c0_i32_1 = arith.constant 0 : i32
    return %c0_i32, %c0_i32_0 : i32, i32
  }
  func.func @transform_11(%arg0: i32, %arg1: i32) -> (i32, i32, i32) {
    %c0_i32 = arith.constant 0 : i32
    %c0_i32_0 = arith.constant 0 : i32
    return %arg0, %arg1, %c0_i32 : i32, i32, i32
  }
}

</mosaic_0001>

<bundles_post_ra>
// kernel: tpu_custom_call.1
= control target key start
LH: loop header
LB: loop body
LE: loop exit
PB: predicated region body
PF: predicated region fallthrough
CT: control target
= control target key end

     0   :  { %s8011_s0 = inlined_call_operand.hbm [shape: bf16[2,32,48], index: 0, kind: input, shape index: {}]   ;;  %s8012_s1 = inlined_call_operand.hbm [shape: bf16[240,256], index: 1, kind: input, shape index: {}]   ;;  %s8013_s2 = inlined_call_operand.vmem [shape: f32[1,256], index: 2, kind: input, shape index: {}]   ;;  %s8014_s3 = inlined_call_operand.hbm [shape: bf16[1280,256], index: 3, kind: input, shape index: {}]   ;;  %s8015_s4 = inlined_call_operand.vmem [shape: f32[1,256], index: 4, kind: input, shape index: {}]   ;;  %s8016_s5 = inlined_call_operand.hbm [shape: bf16[1280,256], index: 5, kind: input, shape index: {}]   ;;  %s8017_s6 = inlined_call_operand.vmem [shape: f32[1,256], index: 6, kind: input, shape index: {}]   ;;  %s8018_s7 = inlined_call_operand.hbm [shape: bf16[1280,256], index: 7, kind: input, shape index: {}]   ;;  %s8019_s8 = inlined_call_operand.vmem [shape: f32[1,256], index: 8, kind: input, shape index: {}]   ;;  %s8020_s9 = inlined_call_operand.hbm [shape: bf16[256,128], index: 9, kind: input, shape index: {}]   ;;  %s8021_s10 = inlined_call_operand.vmem [shape: f32[1,128], index: 10, kind: input, shape index: {}]   ;;  %s8022_s11 = inlined_call_operand.hbm [shape: f32[2,16,128], index: 11, kind: output, shape index: {}]  }
   0x1   :  { %8034 = sst [smem:[#allocation23_spill]] %s8011_s0 }
   0x2   :  { %8035 = sst [smem:[#allocation24_spill]] %s8012_s1 }
   0x3   :  { %8036 = sst [smem:[#allocation25_spill]] %s8013_s2 }
   0x4   :  { %8037 = sst [smem:[#allocation26_spill]] %s8014_s3 }
   0x5   :  { %8038 = sst [smem:[#allocation27_spill]] %s8015_s4 }
   0x6   :  { %8039 = sst [smem:[#allocation28_spill]] %s8016_s5 }
   0x7   :  { %8040 = sst [smem:[#allocation29_spill]] %s8017_s6 }
   0x8   :  { %8041 = sst [smem:[#allocation30_spill]] %s8018_s7 }
   0x9   :  { %8042 = sst [smem:[#allocation31_spill]] %s8019_s8 }
   0xa   :  { %8043 = sst [smem:[#allocation32_spill]] %s8021_s10 }
   0xb   :  { %8044 = sst [smem:[#allocation33_spill]] %s8022_s11 }
   0xc   :  { %16 = vsyncpa [#allocation3], 0 }
   0xd   :  { %18 = vsyncpa [#allocation3 + $0x1], 0 }
   0xe   :  { %19 = vsyncpa [#allocation6], 0 }
   0xf   :  { %20 = vsyncpa [#allocation9], 0 }
  0x10   :  { %21 = vsyncpa [#allocation12], 0 }
  0x11   :  { %22 = vsyncpa [#allocation4], 0 }
  0x12   :  { %24 = vsyncpa [#allocation4 + $0x1], 0  ;;  %s7239_s17 = smov 0   ;;  %s7241_s18 = smov 0  }
  0x13   :  { %s7243_s19 = smov 0   ;;  %s7245_s20 = smov 0  }
  0x14   :  { %s7247_s21 = smov 0   ;;  %s7249_s22 = smov 0  }
  0x15   :  { %s7251_s23 = smov 0   ;;  %s7253_s24 = smov 0  }
  0x16   :  { %s7255_s25 = smov 0   ;;  %s7257_s26 = smov 0  }
  0x17   :  { %s7259_s27 = smov 0  }
  0x18 LB: > { %8045 = sst [smem:[#allocation19_spill]] %s7145_s23  ;;  %s5211_s28 = sadd.s32 4294967295, %s7161_s27   ;;  %s7161_s27 = sphi %s7259_s27, %s30_s27   ;;  %s7157_s26 = sphi %s7257_s26, %s8093_s26   ;;  %s7153_s25 = sphi %s7255_s25, %s8092_s25   ;;  %s7149_s24 = sphi %s7253_s24, %s8091_s24   ;;  %s7145_s23 = sphi %s7251_s23, %s8090_s23   ;;  %s7141_s22 = sphi %s7249_s22, %s8089_s22   ;;  %s7137_s21 = sphi %s7247_s21, %s8088_s21   ;;  %s7133_s20 = sphi %s7245_s20, %s8087_s20   ;;  %s7129_s19 = sphi %s7243_s19, %s8086_s19   ;;  %s7125_s18 = sphi %s7241_s18, %s8085_s18   ;;  %s7121_s17 = sphi %s7239_s17, %s8084_s17  }
  0x19   : > { %8046 = sst [smem:[#allocation20_spill]] %s7149_s24  ;;  %p5213_p0 = scmp.ge.s32.totalorder %s7161_s27, 1 }
  0x1a   : > { %p7296_p1 = scmp.eq.s32.totalorder %s5211_s28, 0  ;;  %p7300_p2 = scmp.eq.s32.totalorder %s5211_s28, 3 }
  0x1b   : > { %p311_p3 = scmp.lt.s32.totalorder %s7161_s27, 5  ;;  %s7163_s13 = smov [#allocation5]  }
  0x1c   : > { %s8047_s29 = scalar_select %p7296_p1, 1, 0 }
  0x1d   : > { %s8048_s30 = scalar_select %p7300_p2, 1, 0 }
  0x1e   : > { %p7305_p4 = pnand %p5213_p0, %p311_p3  ;;  %s323_s14 = sshll.u32 %s7163_s13, 4  ;;  %s7309_s14 = int_to_ptr.vmem [resolvable:$true] %s323_s14 }
  0x1f   : > { %8049 = sst [smem:[#allocation21_spill]] %s8048_s30  ;;  %s7164_s16 = smov [#allocation8]  }
  0x20   : > { %s8050_s12 = scalar_select %p7305_p4, 1, 0 }
  0x21   : > { %p5932_p5 = pneg %p7305_p4  ;;  %s355_s28 = sshll.u32 %s7164_s16, 4  ;;  %s7319_s28 = int_to_ptr.vmem [resolvable:$true] %s355_s28 }
  0x22   : > { %8051 = sst [smem:[#allocation22_spill]] %s8050_s12  ;;  %s7165_s11 = smov [#allocation7]  }
  0x23   : > { %p7315_p6 = pnand %p5932_p5, %p7296_p1  ;;  %s339_s24 = sshll.u32 %s7165_s11, 4  ;;  %s7321_s24 = int_to_ptr.vmem [resolvable:$true] %s339_s24 }
  0x24   : > { %s8053_s1 = sld [smem:[#allocation24_spill]] }
  0x25   : > { %p7331_p8 = pneg %p7315_p6 }
  0x2a   : > { %s6857_s8 = scalar_lea.hbm %s8053_s1, 3840 }
  0x2b   : > { %p6858_p7 = scmp.ne.s32.totalorder %s8053_s1, %s6857_s8  ;;  %p6864_p11 = scmp.lt.u32.totalorder %s6857_s8, %s8053_s1 }
  0x2d   : > { %p6860_p9 = pnand %p7331_p8, %p6858_p7 }
  0x2f   : > { %p6861_p10 = pneg %p6860_p9 }
  0x31   : > { %p6866_p12 = pnand %p6864_p11, %p6861_p10 }
  0x33   : > { %6869 = shalt.err (!%p6866_p12)
}
  0x34   : > { %s6870_s4 = scalar_lea.vmem %s7309_s14, 3840  ;;  %p6878_p5 = scmp.lt.s32.totalorder %s7309_s14, %s7309_s14 }
  0x35   : > { %p6871_p13 = scmp.ne.s32.totalorder %s7309_s14, %s6870_s4  ;;  %p6879_p4 = scmp.lt.s32.totalorder %s6870_s4, %s6870_s4 }
  0x37   : > { %p6873_p0 = pnand %p6871_p13, %p7331_p8  ;;  %p6880_p7 = por %p6879_p4, %p6878_p5 }
  0x39   : > { %p6874_p3 = pneg %p6873_p0 }
  0x3b   : > { %p6881_p9 = pnand %p6880_p7, %p6874_p3 }
  0x3d   : > { %6884 = shalt.err (!%p6881_p9)
}
  0x3e   : > { %s7166_s6 = smov 128   ;;  %s7167_s8 = smov 8  }
  0x3f   : > { %5935 = dma.hbm_to_vmem [thread:$0]  (!%p7315_p6), %s8053_s1, 3840, %s7309_s14, [#allocation6], %s7166_s6, %s7166_s6, %s7167_s8  }
  0x40   : > { %s8055_s5 = sld [smem:[#allocation28_spill]] }
  0x46   : > { %s6885_s4 = scalar_lea.hbm %s8055_s5, 20480 }
  0x47   : > { %p6886_p4 = scmp.ne.s32.totalorder %s8055_s5, %s6885_s4  ;;  %p6892_p12 = scmp.lt.u32.totalorder %s6885_s4, %s8055_s5 }
  0x49   : > { %p6888_p10 = pnand %p6886_p4, %p7331_p8 }
  0x4b   : > { %p6889_p11 = pneg %p6888_p10 }
  0x4d   : > { %p6894_p13 = pnand %p6892_p12, %p6889_p11 }
  0x4f   : > { %6897 = shalt.err (!%p6894_p13)
}
  0x50   : > { %s6898_s14 = scalar_lea.vmem %s7319_s28, 20480  ;;  %p6906_p7 = scmp.lt.s32.totalorder %s7319_s28, %s7319_s28 }
  0x51   : > { %p6899_p0 = scmp.ne.s32.totalorder %s7319_s28, %s6898_s14  ;;  %p6907_p9 = scmp.lt.s32.totalorder %s6898_s14, %s6898_s14 }
  0x53   : > { %p6901_p3 = pnand %p6899_p0, %p7331_p8  ;;  %p6908_p4 = por %p6907_p9, %p6906_p7 }
  0x55   : > { %p6902_p5 = pneg %p6901_p3 }
  0x57   : > { %p6909_p10 = pnand %p6908_p4, %p6902_p5 }
  0x59   : > { %6912 = shalt.err (!%p6909_p10)
}
  0x5a   : > { %5941 = dma.hbm_to_vmem [thread:$0]  (!%p7315_p6), %s8055_s5, 20480, %s7319_s28, [#allocation9], %s7166_s6, %s7166_s6, %s7167_s8  }
  0x5b   : > { %s8056_s3 = sld [smem:[#allocation26_spill]] }
  0x61   : > { %s6913_s10 = scalar_lea.hbm %s8056_s3, 20480 }
  0x62   : > { %p6914_p11 = scmp.ne.s32.totalorder %s8056_s3, %s6913_s10  ;;  %p6920_p0 = scmp.lt.u32.totalorder %s6913_s10, %s8056_s3 }
  0x64   : > { %p6916_p12 = pnand %p6914_p11, %p7331_p8 }
  0x66   : > { %p6917_p13 = pneg %p6916_p12 }
  0x68   : > { %p6922_p3 = pnand %p6920_p0, %p6917_p13 }
  0x6a   : > { %6925 = shalt.err (!%p6922_p3)
}
  0x6b   : > { %s6926_s28 = scalar_lea.vmem %s7321_s24, 20480  ;;  %p6934_p4 = scmp.lt.s32.totalorder %s7321_s24, %s7321_s24 }
  0x6c   : > { %p6927_p5 = scmp.ne.s32.totalorder %s7321_s24, %s6926_s28  ;;  %p6935_p10 = scmp.lt.s32.totalorder %s6926_s28, %s6926_s28 }
  0x6e   : > { %p6929_p7 = pnand %p6927_p5, %p7331_p8  ;;  %p6936_p11 = por %p6935_p10, %p6934_p4 }
  0x70   : > { %p6930_p9 = pneg %p6929_p7 }
  0x72   : > { %p6937_p12 = pnand %p6936_p11, %p6930_p9 }
  0x74   : > { %6940 = shalt.err (!%p6937_p12)
}
  0x75   : > { %5938 = dma.hbm_to_vmem [thread:$0]  (!%p7315_p6), %s8056_s3, 20480, %s7321_s24, [#allocation6], %s7166_s6, %s7166_s6, %s7167_s8  }
  0x76   : > { %s7168_s23 = smov [#allocation10]   ;;  %s7169_s12 = smov [#allocation11]  }
  0x77   : > { %s371_s30 = sshll.u32 %s7168_s23, 4  ;;  %s387_s10 = sshll.u32 %s7169_s12, 4  ;;  %s372_s30 = int_to_ptr.vmem [resolvable:$true] %s371_s30  ;;  %s7407_s10 = int_to_ptr.vmem [resolvable:$true] %s387_s10 }
  0x78   : > { %s8057_s7 = sld [smem:[#allocation30_spill]] }
  0x7e   : > { %s6941_s16 = scalar_lea.hbm %s8057_s7, 20480 }
  0x7f   : > { %p6942_p13 = scmp.ne.s32.totalorder %s8057_s7, %s6941_s16  ;;  %p6948_p5 = scmp.lt.u32.totalorder %s6941_s16, %s8057_s7 }
  0x81   : > { %p6944_p0 = pnand %p6942_p13, %p7331_p8 }
  0x83   : > { %p6945_p3 = pneg %p6944_p0 }
  0x85   : > { %p6950_p7 = pnand %p6948_p5, %p6945_p3 }
  0x87   : > { %6953 = shalt.err (!%p6950_p7)
}
  0x88   : > { %s6954_s0 = scalar_lea.vmem %s372_s30, 20480  ;;  %p6962_p11 = scmp.lt.s32.totalorder %s372_s30, %s372_s30 }
  0x89   : > { %p6955_p9 = scmp.ne.s32.totalorder %s372_s30, %s6954_s0  ;;  %p6963_p12 = scmp.lt.s32.totalorder %s6954_s0, %s6954_s0 }
  0x8b   : > { %p6957_p4 = pnand %p6955_p9, %p7331_p8  ;;  %p6964_p2 = por %p6963_p12, %p6962_p11 }
  0x8d   : > { %p6958_p10 = pneg %p6957_p4 }
  0x8f   : > { %p6965_p1 = pnand %p6964_p2, %p6958_p10 }
  0x91   : > { %6968 = shalt.err (!%p6965_p1)
}
  0x92   : > { %5944 = dma.hbm_to_vmem [thread:$0]  (!%p7315_p6), %s8057_s7, 20480, %s372_s30, [#allocation9], %s7166_s6, %s7166_s6, %s7167_s8  }
  0x93   : > { %s6969_s16 = scalar_lea.hbm %s8020_s9, 2048 }
  0x94   : > { %p6970_p13 = scmp.ne.s32.totalorder %s8020_s9, %s6969_s16  ;;  %p6976_p0 = scmp.lt.u32.totalorder %s6969_s16, %s8020_s9 }
  0x96   : > { %p6972_p1 = pnand %p6970_p13, %p7331_p8 }
  0x98   : > { %p6973_p2 = pneg %p6972_p1 }
  0x9a   : > { %p6978_p3 = pnand %p6976_p0, %p6973_p2 }
  0x9c   : > { %6981 = shalt.err (!%p6978_p3)
}
  0x9d   : > { %s6982_s6 = scalar_lea.vmem %s7407_s10, 2048  ;;  %p6990_p4 = scmp.lt.s32.totalorder %s7407_s10, %s7407_s10 }
  0x9e   : > { %p6983_p5 = scmp.ne.s32.totalorder %s7407_s10, %s6982_s6  ;;  %p6991_p10 = scmp.lt.s32.totalorder %s6982_s6, %s6982_s6 }
  0xa0   : > { %p6985_p7 = pnand %p6983_p5, %p7331_p8  ;;  %p6992_p11 = por %p6991_p10, %p6990_p4 }
  0xa2   : > { %p6986_p9 = pneg %p6985_p7 }
  0xa4   : > { %p6993_p12 = pnand %p6992_p11, %p6986_p9 }
  0xa6   : > { %6996 = shalt.err (!%p6993_p12)
}
  0xa7   : > { %s8031_s8 = smov 64   ;;  %s8032_s2 = smov 4  }
  0xa8   : > { %5947 = dma.hbm_to_vmem [thread:$0]  (!%p7315_p6), %s8020_s9, 2048, %s7407_s10, [#allocation12], %s8031_s8, %s8031_s8, %s8032_s2  }
  0xa9   : > { %s5212_s23 = sadd.s32 4294967294, %s7161_s27   ;;  %s39_s12 = sadd.s32 1, %s7153_s25 }
  0xaa   : > { %p40_p8 = scmp.ge.s32.totalorder %s39_s12, 2  ;;  %s42_s13 = sadd.s32 1, %s7157_s26 }
  0xab   : > { %s49_s11 = sadd.s32 1, %s7141_s22  ;;  %p56_p13 = scmp.ne.s32.totalorder %s7141_s22, %s7137_s21 }
  0xac   : > { %s8095_s12 = smov (%p40_p8, %s39_s12), 0  ;;  %s8058_s15 = sld [smem:[#allocation21_spill]] }
  0xad   : > { %s8097_s13 = smov (!%p40_p8, %s42_s13), %s7157_s26  ;;  %p57_p1 = scmp.eq.s32.totalorder %s7161_s27, 0 }
  0xae   : > { %p62_p6 = scmp.ne.s32.totalorder %s7137_s21, %s7133_s20  ;;  %p44_p2 = scmp.ge.s32.totalorder %s8097_s13, 2 }
  0xaf   : > { %s283_s10 = ssub.s32 %s7153_s25, %s8095_s12  ;;  %p7470_p0 = por %p57_p1, %p56_p13 }
  0xb0   : > { %p8060_p3 = scmp.ne.s32.totalorder %s8047_s29, 0  ;;  %s8099_s13 = smov (%p44_p2, %s8097_s13), 0 }
  0xb1   : > { %s287_s28 = sadd.s32 1, %s7129_s19  ;;  %p297_p7 = scmp.ne.s32.totalorder %s7129_s19, %s7125_s18 }
  0xb2   : > { %p7476_p5 = por %p8060_p3, %p62_p6  ;;  %s46_s20 = ssub.s32 %s7157_s26, %s8099_s13 }
  0xb3   : > { %p303_p9 = scmp.ne.s32.totalorder %s7125_s18, %s7121_s17  ;;  %p47_p4 = scmp.eq.s32.totalorder %s46_s20, 0 }
  0xb4   : > { %s284_s14 = sor.u32 %s283_s10, %s46_s20  ;;  %p8062_p11 = scmp.ne.s32.totalorder %s8058_s15, 0 }
  0xb5   : > { %p285_p10 = scmp.eq.s32.totalorder %s284_s14, 0  ;;  %p304_p8 = scmp.eq.s32.totalorder %s5212_s23, 3 }
  0xb6   : > { %p7491_p12 = por %p8062_p11, %p297_p7  ;;  %p5961_p13 = scmp.lt.s32.totalorder %s7161_s27, 4 }
  0xb7   : > { %s7496_s6 = scalar_select %p47_p4, %s7141_s22, %s49_s11  }
  0xb8   : > { %s8063_s24 = scalar_select %p7491_p12, 1, 0 }
  0xb9   : > { %s7499_s30 = scalar_select %p285_p10, %s7129_s19, %s287_s28  }
  0xba   : > { %s404_s0 = sand.u32 1, %s7141_s22   ;;  %s5791_s8 = sshll.u32 %s7157_s26, 8 }
  0xbb   : > { %p7504_p1 = por %p304_p8, %p303_p9  ;;  %s5220_s1 = sshll.u32 %s404_s0, 4 }
  0xbc   : > { %s8065_s15 = sld [smem:[#allocation23_spill]]  ;;  %p7515_p6 = pnand %p5961_p13, %p7470_p0 }
  0xbd   : > { %s8064_s2 = scalar_select %p7504_p1, 1, 0 }
  0xbe   : > { %s408_s11 = scalar_lea.vmem [#allocation2], %s5220_s1  ;;  %s7521_s3 = scalar_lea.sflag [#allocation3], %s404_s0 }
  0xbf   : > { %s415_s28 = sshll.u32 %s408_s11, 4  ;;  %p6999_p3 = pneg %p7515_p6  ;;  %s7519_s28 = int_to_ptr.vmem [resolvable:$true] %s415_s28 }
  0xc2   : > { %s7511_s14 = scalar_lea.hbm %s8065_s15, %s5791_s8  ;;  %s7002_s20 = scalar_lea.hbm %s8065_s15, 512 }
  0xc3   : > { %s6997_s10 = scalar_lea.hbm %s7511_s14, 256  ;;  %p7003_p0 = scmp.lt.u32.totalorder %s7511_s14, %s8065_s15 }
  0xc4   : > { %p6998_p2 = scmp.ne.s32.totalorder %s7511_s14, %s6997_s10  ;;  %p7004_p4 = scmp.lt.u32.totalorder %s7002_s20, %s6997_s10 }
  0xc5   : > { %p7006_p11 = scmp.lt.u32.totalorder %s6997_s10, %s7511_s14 }
  0xc6   : > { %p7000_p7 = pnand %p6999_p3, %p6998_p2  ;;  %p7005_p10 = por %p7004_p4, %p7003_p0 }
  0xc8   : > { %p7001_p9 = pneg %p7000_p7  ;;  %p7007_p8 = por %p7006_p11, %p7005_p10 }
  0xca   : > { %p7008_p13 = pnand %p7007_p8, %p7001_p9 }
  0xcc   : > { %7011 = shalt.err (!%p7008_p13)
}
  0xcd   : > { %s7012_s1 = scalar_lea.vmem %s7519_s28, 256  ;;  %s7172_s0 = smov [#allocation2]  }
  0xce   : > { %p7013_p2 = scmp.ne.s32.totalorder %s7519_s28, %s7012_s1  ;;  %s7017_s11 = sshll.u32 %s7172_s0, 4  ;;  %s7018_s11 = int_to_ptr.vmem [resolvable:$false] %s7017_s11 }
  0xcf   : > { %s7019_s5 = scalar_lea.vmem %s7018_s11, 512  ;;  %p7020_p12 = scmp.lt.s32.totalorder %s7519_s28, %s7018_s11 }
  0xd0   : > { %p7015_p7 = pnand %p7013_p2, %p6999_p3  ;;  %p7021_p0 = scmp.lt.s32.totalorder %s7019_s5, %s7012_s1 }
  0xd2   : > { %p7016_p1 = pneg %p7015_p7  ;;  %p7022_p4 = por %p7021_p0, %p7020_p12 }
  0xd4   : > { %p7023_p10 = pnand %p7022_p4, %p7016_p1 }
  0xd6   : > { %7026 = shalt.err (!%p7023_p10)
}
  0xd7   : > { %s8067_s7 = smov 4   ;;  %s8068_s10 = smov 64  }
  0xd8   : > { %5951 = dma.hbm_to_vmem [thread:$0]  (!%p7515_p6), %s7511_s14, 256, %s7519_s28, %s7521_s3, %s8068_s10, %s8068_s10, %s8067_s7  }
  0xd9   : > { %s8069_s8 = sld [smem:[#allocation22_spill]] }
  0xdf   : > { %p8070_p3 = scmp.ne.s32.totalorder %s8069_s8, 0 }
  0xe0   : > { %s429_s16 = sand.u32 (!%p8070_p3), 1, %s7137_s21  }
  0xe1   : > { %427 = sbr.rel (%p8070_p3) target bundleno = 2482 (0x9b2), region = 64  ;;  %s5224_s20 = sshll.u32 (!%p8070_p3), %s429_s16, 4 }
  0xe2   : > { %s430_s1 = scalar_lea.sflag (!%p8070_p3), [#allocation3], %s429_s16  ;;  %s433_s0 = scalar_lea.vmem (!%p8070_p3), [#allocation2], %s5224_s20 }
  0xe8   : > { %7100 = dma.done.wait (%p7476_p5), %s430_s1, 256  }
  0xe9   : > { %7102 = vsyncadd (%p7476_p5), %s430_s1, 4294967040  ;;  %p8071_p12 = scmp.ne.s32.totalorder %s8047_s29, 0 }
  0xeb   : > { %7104 = dma.done.wait (%p8071_p12), [#allocation6], 24320  }
  0xec   : > { %7106 = vsyncadd (%p8071_p12), [#allocation6], 4294942976 }
  0xed   : > { %7108 = dma.done.wait (%p8071_p12), [#allocation9], 40960  }
  0xee   : > { %7110 = vsyncadd (%p8071_p12), [#allocation9], 4294926336 }
  0xef   : > { %7112 = dma.done.wait (%p8071_p12), [#allocation12], 2048  }
  0xf0   : > { %7114 = vsyncadd (%p8071_p12), [#allocation12], 4294965248  ;;  %s8072_s3 = sld [smem:[#allocation19_spill]]  ;;  %vm564_vm0 = vcmask 1040384   ;;  %vm572_vm1 = vcmask 1044480   ;;  %vm595_vm2 = vcmask 1046528  }
  0xf1   : > { %v6072_v2 = vld [vmem:[#allocation5 + $0x4] ss:$8 sps:$4 sm:$0xff]   ;;  %v6074_v3 = vld [vmem:[#allocation5] ss:$8 sps:$4 sm:$0xff]   ;;  %v6075_v6 = vld [vmem:[#allocation5 + $0x14] ss:$8 sps:$4 sm:$0xff]  }
  0xf2   : > { %811 = vmatprep.subr.bf16.mxu0 %v6072_v2  ;;  %v6077_v9 = vld [vmem:[#allocation5 + $0x10] ss:$8 sps:$4 sm:$0xff]   ;;  %v6078_v10 = vld [vmem:[#allocation5 + $0x24] ss:$8 sps:$4 sm:$0xff]   ;;  %vm575_vm3 = vsmask.f32 7424 }
  0xf3   : > { %812 = vmatpush1.bf16.msra.mxu0 %v6074_v3  ;;  %vm603_vm4 = vsmask.f32 6400  ;;  %v6080_v25 = vld [vmem:[#allocation5 + $0x20] ss:$8 sps:$4 sm:$0xff]   ;;  %s7173_s29 = smov 96   ;;  %vm615_vm5 = vcmask 1045504  }
  0xf4   : > { %813 = vmatprep.subr.bf16.mxu0 %v6075_v6  ;;  %v6081_v30 = vld [vmem:[#allocation5 + $0x34] ss:$8 sps:$4 sm:$0xff]   ;;  %s7174_s11 = smov 48   ;;  %v6083_v34 = vld [vmem:[#allocation5 + $0x30] ss:$8 sps:$4 sm:$0xff]   ;;  %s7175_s5 = smov 16  }
  0xf5   : > { %v6084_v36 = vld [vmem:[#allocation5 + $0x44] ss:$8 sps:$4 sm:$0xff]   ;;  %s7176_s7 = smov 64   ;;  %v6086_v37 = vld [vmem:[#allocation5 + $0x40] ss:$8 sps:$4 sm:$0xff]   ;;  %vm623_vm6 = vcmask 392192  }
  0xf6   : > { %s5231_s4 = sshll.u32 %s8072_s3, 3  ;;  %v6087_v39 = vld [vmem:[#allocation5 + $0x54] ss:$8 sps:$4 sm:$0xff]   ;;  %v6089_v40 = vld [vmem:[#allocation5 + $0x50] ss:$8 sps:$4 sm:$0xff]   ;;  %vm635_vm7 = vcmask 130048  }
  0xf7   : > { %s494_s14 = sshra.s32 %s5231_s4, 3  ;;  %814 = vmatpush1.bf16.msra.mxu0 %v6077_v9  ;;  %v6090_v41 = vld [vmem:[#allocation5 + $0x64] ss:$8 sps:$4 sm:$0xff]   ;;  %v6092_v42 = vld [vmem:[#allocation5 + $0x60] ss:$8 sps:$4 sm:$0xff]   ;;  %vm640_vm8 = vcmask 523264  }
  0xf8   : > { %s5232_s23 = sshll.u32 %s494_s14, 2  ;;  %815 = vmatprep.subr.bf16.mxu0 %v6078_v10  ;;  %v6093_v43 = vld [vmem:[#allocation5 + $0x74] ss:$8 sps:$4 sm:$0xff]   ;;  %v6095_v45 = vld [vmem:[#allocation5 + $0x70] ss:$8 sps:$4 sm:$0xff]   ;;  %vm806_vm9 = vcmask 916480  }
  0xf9   : > { %s497_s28 = scalar_lea.vmem %s433_s0, %s5232_s23 [#allocation2]  ;;  %v6126_v44 = vld [vmem:[#allocation7 + $0x204] ss:$8 sps:$4 sm:$0xff]   ;;  %v6096_v46 = vld [vmem:[#allocation5 + $0x84] ss:$8 sps:$4 sm:$0xff]   ;;  %v6131_v47 = vld [vmem:[#allocation7 + $0x200] ss:$8 sps:$4 sm:$0xff]  }
  0xfa   : > { %v6070_v0 = vld [vmem:[%s497_s28] sm:$0xff]   ;;  %v6071_v1 = vld [vmem:[%s497_s28 + $0x8] ss:$0 sps:$4 sm:$0xff]   ;;  %2046 = vmatprep.subr.bf16.mxu1 %v6126_v44  ;;  %v6138_v51 = vld [vmem:[#allocation7 + $0x224] ss:$8 sps:$4 sm:$0xff]   ;;  %vm628_vm10 = vcmask 785408  }
  0xfb   : > { %v565_v4 = vrot.slane %v6070_v0, 7  ;;  %v566_v5 = vrot.slane %v6071_v1, 7  ;;  %816 = vmatpush1.bf16.msra.mxu0 %v6080_v25  ;;  %v6132_v48 = vld [vmem:[#allocation7 + $0x214] ss:$8 sps:$4 sm:$0xff]   ;;  %v6098_v49 = vld [vmem:[#allocation5 + $0x80] ss:$8 sps:$4 sm:$0xff]   ;;  %2047 = vmatpush1.bf16.msra.mxu1 %v6131_v47 }
  0xfc   : > { %817 = vmatprep.subr.bf16.mxu0 %v6081_v30  ;;  %v6137_v50 = vld [vmem:[#allocation7 + $0x210] ss:$8 sps:$4 sm:$0xff]   ;;  %2048 = vmatprep.subr.bf16.mxu1 %v6132_v48  ;;  %v6099_v52 = vld [vmem:[#allocation5 + $0x94] ss:$8 sps:$4 sm:$0xff]   ;;  %v6143_v53 = vld [vmem:[#allocation7 + $0x220] ss:$8 sps:$4 sm:$0xff]  }
  0xfd   : > { %v567_v7 = vsel %vm564_vm0, %v565_v4, %v566_v5  ;;  %v7576_v8 = vsel %vm564_vm0, 0, %v565_v4  ;;  %v6101_v54 = vld [vmem:[#allocation5 + $0x90] ss:$8 sps:$4 sm:$0xff]   ;;  %v6144_v55 = vld [vmem:[#allocation7 + $0x234] ss:$8 sps:$4 sm:$0xff]   ;;  %s5233_s10 = sadd.s32 4294967288, %s5231_s4 }
  0xfe   : > { %v7579_v11 = vsel %vm572_vm1, %v567_v7, 0  ;;  %v596_v12 = vrot.slane %v7576_v8, 1  ;;  %v576_v13 = vshrl.u32 %v7576_v8, 16  ;;  %v578_v14 = vshll.u32 %v7576_v8, 16  ;;  %v6102_v56 = vld [vmem:[#allocation5 + $0xa4] ss:$8 sps:$4 sm:$0xff]  }
  0xff   : > { %v597_v15 = vrot.slane %v7579_v11, 1  ;;  %v582_v16 = vshll.u32 %v7579_v11, 16  ;;  %v586_v17 = vshrl.u32 %v7579_v11, 16  ;;  %v616_v28 = vrot.slane %v7576_v8, 2  ;;  %818 = vmatpush1.bf16.msra.mxu0 %v6083_v34  ;;  %2049 = vmatpush1.bf16.msra.mxu1 %v6137_v50  ;;  %v6104_v57 = vld [vmem:[#allocation5 + $0xa0] ss:$8 sps:$4 sm:$0xff]  }
 0x100   : > { %v580_v18 = vrot.slane %v578_v14, 1  ;;  %v604_v19 = vrot.slane %v576_v13, 1  ;;  %v605_v20 = vrot.slane %v578_v14, 2  ;;  %v617_v29 = vrot.slane %v7579_v11, 2  ;;  %819 = vmatprep.subr.bf16.mxu0 %v6084_v36  ;;  %2050 = vmatprep.subr.bf16.mxu1 %v6138_v51  ;;  %v6149_v58 = vld [vmem:[#allocation7 + $0x230] ss:$8 sps:$4 sm:$0xff]  }
 0x101   : > { %v598_v21 = vsel %vm595_vm2, %v596_v12, %v597_v15  ;;  %v584_v22 = vrot.slane %v582_v16, 1  ;;  %v607_v23 = vrot.slane %v586_v17, 1  ;;  %v608_v24 = vrot.slane %v582_v16, 2  ;;  %v6150_v59 = vld [vmem:[#allocation7 + $0x244] ss:$8 sps:$4 sm:$0xff]   ;;  %s8073_s20 = sld [smem:[#allocation25_spill]] }
 0x102   : > { %599 = vrot.lane.b32.xlu0 %v598_v21, %s7173_s29  ;;  %v581_v26 = vor.u32 %v580_v18, %v576_v13  ;;  %v606_v27 = vor.u32 %v605_v20, %v604_v19  ;;  %v618_v35 = vsel %vm615_vm5, %v616_v28, %v617_v29  ;;  %v6105_v60 = vld [vmem:[#allocation5 + $0xb4] ss:$8 sps:$4 sm:$0xff]   ;;  %v6155_v61 = vld [vmem:[#allocation7 + $0x240] ss:$8 sps:$4 sm:$0xff]   ;;  %v6156_v63 = vld [vmem:[#allocation7 + $0x254] ss:$8 sps:$4 sm:$0xff]  }
 0x103   : > { %v609_v31 = vor.u32 %v608_v24, %v607_v23  ;;  %v588_v38 = vor.u32 %v586_v17, %v584_v22  ;;  %820 = vmatpush1.bf16.msra.mxu0 %v6086_v37  ;;  %2051 = vmatpush1.bf16.msra.mxu1 %v6143_v53  ;;  %v6107_v62 = vld [vmem:[#allocation5 + $0xb0] ss:$8 sps:$4 sm:$0xff]   ;;  %v6108_v0 = vld [vmem:[#allocation5 + $0xc4] ss:$8 sps:$4 sm:$0xff]   ;;  %v6110_v1 = vld [vmem:[#allocation5 + $0xc0] ss:$8 sps:$4 sm:$0xff]  }
 0x104   : > { %v585_v32 = vsel %vm575_vm3, %v581_v26, %v584_v22  ;;  %821 = vmatprep.subr.bf16.mxu0 %v6087_v39  ;;  %2052 = vmatprep.subr.bf16.mxu1 %v6144_v55  ;;  %v6161_v2 = vld [vmem:[#allocation7 + $0x250] ss:$8 sps:$4 sm:$0xff]   ;;  %v6162_v3 = vld [vmem:[#allocation7 + $0x264] ss:$8 sps:$4 sm:$0xff]   ;;  %v6113_v5 = vld [vmem:[#allocation5 + $0xd0] ss:$8 sps:$4 sm:$0xff]  }
 0x105   : > { %589 = vrot.lane.b32.xlu1 %v585_v32, %s7174_s11  ;;  %v610_v33 = vsel %vm603_vm4, %v606_v27, %v609_v31  ;;  %v6111_v4 = vld [vmem:[#allocation5 + $0xd4] ss:$8 sps:$4 sm:$0xff]   ;;  %v6167_v6 = vld [vmem:[#allocation7 + $0x260] ss:$8 sps:$4 sm:$0xff]   ;;  %v6114_v7 = vld [vmem:[#allocation5 + $0xe4] ss:$8 sps:$4 sm:$0xff]  }
 0x106   : > { %611 = vrot.lane.b32.xlu0 %v610_v33, %s7175_s5  ;;  %v6168_v9 = vld [vmem:[#allocation7 + $0x274] ss:$8 sps:$4 sm:$0xff]   ;;  %v6173_v10 = vld [vmem:[#allocation7 + $0x270] ss:$8 sps:$4 sm:$0xff]   ;;  %v6174_v13 = vld [vmem:[#allocation7 + $0x284] ss:$8 sps:$4 sm:$0xff]  }
 0x107   : > { %822 = vmatpush1.bf16.msra.mxu0 %v6089_v40  ;;  %2053 = vmatpush1.bf16.msra.mxu1 %v6149_v58  ;;  %v6116_v12 = vld [vmem:[#allocation5 + $0xe0] ss:$8 sps:$4 sm:$0xff]   ;;  %v6119_v14 = vld [vmem:[#allocation7 + $0x4] ss:$8 sps:$4 sm:$0xff]   ;;  %v6180_v16 = vld [vmem:[#allocation7 + $0x294] ss:$8 sps:$4 sm:$0xff]  }
 0x108   : > { %823 = vmatprep.subr.bf16.mxu0 %v6090_v41  ;;  %2054 = vmatprep.subr.bf16.mxu1 %v6150_v59  ;;  %v6185_v17 = vld [vmem:[#allocation7 + $0x290] ss:$8 sps:$4 sm:$0xff]   ;;  %v6117_v21 = vld [vmem:[#allocation7] ss:$8 sps:$4 sm:$0xff]   ;;  %v6122_v23 = vld [vmem:[#allocation7 + $0x14] ss:$8 sps:$4 sm:$0xff]  }
 0x109   : > { %619 = vrot.lane.b32.xlu1 %v618_v35, %s7176_s7  ;;  %v6125_v30 = vld [vmem:[#allocation7 + $0x24] ss:$8 sps:$4 sm:$0xff]   ;;  %v6130_v34 = vld [vmem:[#allocation7 + $0x34] ss:$8 sps:$4 sm:$0xff]   ;;  %v6128_v39 = vld [vmem:[#allocation7 + $0x30] ss:$8 sps:$4 sm:$0xff]  }
 0x10a   : > { %601 = vrot.lane.b32.xlu0 %v597_v15, %s7173_s29  ;;  %v6179_v15 = vld [vmem:[#allocation7 + $0x280] ss:$8 sps:$4 sm:$0xff]   ;;  %v6136_v40 = vld [vmem:[#allocation7 + $0x44] ss:$8 sps:$4 sm:$0xff]   ;;  %v6164_v50 = vld [vmem:[#allocation7 + $0x90] ss:$8 sps:$4 sm:$0xff]  }
 0x10b   : > { %824 = vmatpush1.bf16.msra.mxu0 %v6092_v42  ;;  %2055 = vmatpush1.bf16.msra.mxu1 %v6155_v61  ;;  %v6134_v41 = vld [vmem:[#allocation7 + $0x40] ss:$8 sps:$4 sm:$0xff]   ;;  %v6142_v42 = vld [vmem:[#allocation7 + $0x54] ss:$8 sps:$4 sm:$0xff]   ;;  %v6160_v47 = vld [vmem:[#allocation7 + $0x84] ss:$8 sps:$4 sm:$0xff]  }
 0x10c   : > { %825 = vmatprep.subr.bf16.mxu0 %v6093_v43  ;;  %2056 = vmatprep.subr.bf16.mxu1 %v6156_v63  ;;  %v6148_v43 = vld [vmem:[#allocation7 + $0x64] ss:$8 sps:$4 sm:$0xff]   ;;  %v6146_v44 = vld [vmem:[#allocation7 + $0x60] ss:$8 sps:$4 sm:$0xff]   ;;  %v6178_v53 = vld [vmem:[#allocation7 + $0xb4] ss:$8 sps:$4 sm:$0xff]  }
 0x10d   : > { %613 = vrot.lane.b32.xlu1 %v609_v31, %s7175_s5  ;;  %v6158_v48 = vld [vmem:[#allocation7 + $0x80] ss:$8 sps:$4 sm:$0xff]   ;;  %v6172_v51 = vld [vmem:[#allocation7 + $0xa4] ss:$8 sps:$4 sm:$0xff]   ;;  %v6190_v58 = vld [vmem:[#allocation7 + $0xd4] ss:$8 sps:$4 sm:$0xff]  }
 0x10e   : > { %591 = vrot.lane.b32.xlu0 %v588_v38, %s7174_s11  ;;  %v6184_v55 = vld [vmem:[#allocation7 + $0xc4] ss:$8 sps:$4 sm:$0xff]   ;;  %v6191_v59 = vld [vmem:[#allocation7 + $0x2a0] ss:$8 sps:$4 sm:$0xff]   ;;  %v6192_v61 = vld [vmem:[#allocation7 + $0x2b4] ss:$8 sps:$4 sm:$0xff]  }
 0x10f   : > { %826 = vmatpush1.bf16.msra.mxu0 %v6095_v45  ;;  %2057 = vmatpush1.bf16.msra.mxu1 %v6161_v2  ;;  %v6154_v45 = vld [vmem:[#allocation7 + $0x74] ss:$8 sps:$4 sm:$0xff]   ;;  %v6197_v63 = vld [vmem:[#allocation7 + $0x2b0] ss:$8 sps:$4 sm:$0xff]   ;;  %s8076_s4 = sld [smem:[#allocation27_spill]]  ;;  %s8077_s28 = sld [smem:[#allocation29_spill]] }
 0x110   : > { %827 = vmatprep.subr.bf16.mxu0 %v6096_v46  ;;  %2058 = vmatprep.subr.bf16.mxu1 %v6162_v3  ;;  %v6152_v46 = vld [vmem:[#allocation7 + $0x70] ss:$8 sps:$4 sm:$0xff]   ;;  %v6202_v2 = vld [vmem:[#allocation7 + $0xf4] ss:$8 sps:$4 sm:$0xff]   ;;  %v6203_v3 = vld [vmem:[#allocation7 + $0x2c0] ss:$8 sps:$4 sm:$0xff]  }
 0x111   : > { %621 = vrot.lane.b32.xlu1 %v617_v29, %s7176_s7  ;;  %v6120_v29 = vld [vmem:[#allocation7 + $0x10] ss:$8 sps:$4 sm:$0xff]   ;;  %s8078_s5 = sld [smem:[#allocation31_spill]]  ;;  %s8079_s8 = sld [smem:[#allocation32_spill]] }
 0x112   : > { %s8080_s16 = sld [smem:[#allocation20_spill]]  ;;  %p8082_p1 = scmp.ne.s32.totalorder %s8063_s24, 0 }
 0x113   : > { %828 = vmatpush1.bf16.msra.mxu0 %v6098_v49  ;;  %2059 = vmatpush1.bf16.msra.mxu1 %v6167_v6  ;;  %v6166_v49 = vld [vmem:[#allocation7 + $0x94] ss:$8 sps:$4 sm:$0xff]   ;;  %v6208_v6 = vld [vmem:[#allocation7 + $0x104] ss:$8 sps:$4 sm:$0xff]  }
 0x114   : > { %829 = vmatprep.subr.bf16.mxu0 %v6099_v52  ;;  %2060 = vmatprep.subr.bf16.mxu1 %v6168_v9  ;;  %v6170_v52 = vld [vmem:[#allocation7 + $0xa0] ss:$8 sps:$4 sm:$0xff]   ;;  %v6210_v9 = vld [vmem:[#allocation7 + $0x2e4] ss:$8 sps:$4 sm:$0xff]  }
 0x117   : > { %830 = vmatpush1.bf16.msra.mxu0 %v6101_v54  ;;  %2061 = vmatpush1.bf16.msra.mxu1 %v6173_v10  ;;  %v6176_v54 = vld [vmem:[#allocation7 + $0xb0] ss:$8 sps:$4 sm:$0xff]   ;;  %v6215_v10 = vld [vmem:[#allocation7 + $0x2e0] ss:$8 sps:$4 sm:$0xff]  }
 0x118   : > { %831 = vmatprep.subr.bf16.mxu0 %v6102_v56  ;;  %2062 = vmatprep.subr.bf16.mxu1 %v6174_v13  ;;  %v6182_v56 = vld [vmem:[#allocation7 + $0xc0] ss:$8 sps:$4 sm:$0xff]   ;;  %v6221_v13 = vld [vmem:[#allocation7 + $0x2f0] ss:$8 sps:$4 sm:$0xff]   ;;  %s5787_s0 = sshll.u32 %s8080_s16, 1 }
 0x11b   : > { %832 = vmatpush1.bf16.msra.mxu0 %v6104_v57  ;;  %2063 = vmatpush1.bf16.msra.mxu1 %v6179_v15  ;;  %v6186_v57 = vld [vmem:[#allocation7 + $0x2a4] ss:$8 sps:$4 sm:$0xff]   ;;  %v501_v15 = vlaneseq }
 0x11c   : > { %833 = vmatprep.subr.bf16.mxu0 %v6105_v60  ;;  %2064 = vmatprep.subr.bf16.mxu1 %v6180_v16  ;;  %v6188_v60 = vld [vmem:[#allocation7 + $0xd0] ss:$8 sps:$4 sm:$0xff]  }
 0x11d   : > { %v502_v16 = vshrl.u32 %v501_v15, 7 }
 0x11f   : > { %834 = vmatpush1.bf16.msra.mxu0 %v6107_v62  ;;  %2065 = vmatpush1.bf16.msra.mxu1 %v6185_v17  ;;  %v6196_v62 = vld [vmem:[#allocation7 + $0xe4] ss:$8 sps:$4 sm:$0xff]   ;;  %v506_v17 = vstv %s5233_s10 }
 0x120   : > { %835 = vmatprep.subr.bf16.mxu0 %v6108_v0  ;;  %2066 = vmatprep.subr.bf16.mxu1 %v6186_v57  ;;  %v6194_v0 = vld [vmem:[#allocation7 + $0xe0] ss:$8 sps:$4 sm:$0xff]  }
 0x123   : > { %836 = vmatpush1.bf16.msra.mxu0 %v6110_v1  ;;  %2067 = vmatpush1.bf16.msra.mxu1 %v6191_v59  ;;  %v6198_v1 = vld [vmem:[#allocation7 + $0x2c4] ss:$8 sps:$4 sm:$0xff]   ;;  %v6206_v59 = vld [vmem:[#allocation7 + $0x100] ss:$8 sps:$4 sm:$0xff]  }
 0x124   : > { %837 = vmatprep.subr.bf16.mxu0 %v6111_v4  ;;  %2068 = vmatprep.subr.bf16.mxu1 %v6192_v61  ;;  %v6200_v4 = vld [vmem:[#allocation7 + $0xf0] ss:$8 sps:$4 sm:$0xff]  }
 0x127   : > { %838 = vmatpush1.bf16.msra.mxu0 %v6113_v5  ;;  %2069 = vmatpush1.bf16.msra.mxu1 %v6197_v63  ;;  %v6204_v5 = vld [vmem:[#allocation7 + $0x2d4] ss:$8 sps:$4 sm:$0xff]  }
 0x128   : > { %839 = vmatprep.subr.bf16.mxu0 %v6114_v7  ;;  %2070 = vmatprep.subr.bf16.mxu1 %v6198_v1  ;;  %v6209_v7 = vld [vmem:[#allocation7 + $0x2d0] ss:$8 sps:$4 sm:$0xff]  }
 0x12b   : > { %840 = vmatpush1.bf16.msra.mxu0 %v6116_v12  ;;  %2071 = vmatpush1.bf16.msra.mxu1 %v6203_v3  ;;  %v6216_v12 = vld [vmem:[#allocation7 + $0x2f4] ss:$8 sps:$4 sm:$0xff]  }
 0x12c   : > { %1944 = vmatprep.subr.bf16.mxu0 %v6119_v14  ;;  %2072 = vmatprep.subr.bf16.mxu1 %v6204_v5  ;;  %v6224_v14 = vld [vmem:[#allocation7 + $0x304] ss:$8 sps:$4 sm:$0xff]  }
 0x12f   : > { %2073 = vmatpush1.bf16.msra.mxu1 %v6209_v7 }
 0x130   : > { %2074 = vmatprep.subr.bf16.mxu1 %v6210_v9 }
 0x133   : > { %2075 = vmatpush1.bf16.msra.mxu1 %v6215_v10 }
 0x134   : > { %2076 = vmatprep.subr.bf16.mxu1 %v6216_v12  ;;  %v6220_v12 = vld [vmem:[#allocation7 + $0x124] ss:$8 sps:$4 sm:$0xff]  }
 0x137   : > { %2077 = vmatpush1.bf16.msra.mxu1 %v6221_v13 }
 0x138   : > { %2097 = vmatprep.subr.bf16.mxu1 %v6224_v14 }
 0x174   : > { %v600_v18 = vpop.permute.xlu0 %599 }
 0x177   : > { %v590_v19 = vpop.permute.xlu1 %589 }
 0x178   : > { %v612_v20 = vpop.permute.xlu0 %611  ;;  %v625_v22 = vsel %vm623_vm6, %v7576_v8, %v590_v19  ;;  %v6123_v8 = vld [vmem:[#allocation7 + $0x20] ss:$8 sps:$4 sm:$0xff]   ;;  %v507_v19 = vadd.s32 %v506_v17, %v502_v16 }
 0x179   : > { %v637_v24 = vsel %vm635_vm7, %v600_v18, %v612_v20  ;;  %v630_v28 = vsel %vm628_vm10, %v625_v22, %v600_v18  ;;  %v503_v18 = vadd.s32 8, %v502_v16  ;;  %v7607_v20 = vsub.s32 0, %v502_v16  ;;  %v555_v22 = vld [vmem:[%s8073_s20] sm:$0x3]  ;;  %s489_s20 = sand.u32 1, %s7125_s18  }
 0x17a   : > { %vm510_vm11 = vcmp.ge.s32.totalorder %v507_v19, 0  ;;  %vm513_vm12 = vcmp.lt.s32.totalorder %v507_v19, 16  ;;  %s5230_s1 = sshll.u32 %s489_s20, 3  ;;  %s5063_s10 = scalar_lea.sflag [#allocation4], %s489_s20 }
 0x17b   : > { %v620_v25 = vpop.permute.xlu1 %619  ;;  %vm516_vm15 = vmand %vm510_vm11, %vm513_vm12  ;;  %s491_s23 = scalar_lea.vmem [#allocation13], %s5230_s1 }
 0x17c   : > { %v602_v26 = vpop.permute.xlu0 %601  ;;  %v642_v27 = vsel %vm640_vm8, %v637_v24, %v620_v25  ;;  %v504_v24 = vadd.s32 16, %v502_v16  ;;  %v649_v25 = vrot.slane %v555_v22, %v7607_v20 }
 0x17d   : > { %5269 = vmatprep.mubr.msk.bf16.mxu0 %vm806_vm9, %v642_v27 }
 0x17e   : > { %844 = vmatmul.mubr.bf16.vlgmr.msra.gmra.mrb[0].mxu0 %v630_v28  ;;  %v509_v28 = vadd.s32 %v506_v17, %v504_v24 }
 0x17f   : > { %v614_v31 = vpop.permute.xlu1 %613  ;;  %1945 = vmatpush1.bf16.msra.mxu0 %v6117_v21  ;;  %v508_v21 = vadd.s32 %v506_v17, %v503_v18 }
 0x180   : > { %v592_v32 = vpop.permute.xlu0 %591  ;;  %1946 = vmatprep.subr.bf16.mxu0 %v6122_v23  ;;  %v639_v35 = vsel %vm635_vm7, %v602_v26, %v614_v31  ;;  %v7612_v23 = vsub.s32 1, %v502_v16  ;;  %vm512_vm7 = vcmp.ge.s32.totalorder %v509_v28, 0 }
 0x181   : > { %v627_v33 = vsel %vm623_vm6, %v7579_v11, %v592_v32  ;;  %v6140_v11 = vld [vmem:[#allocation7 + $0x50] ss:$8 sps:$4 sm:$0xff]   ;;  %vm511_vm13 = vcmp.ge.s32.totalorder %v508_v21, 0  ;;  %vm514_vm14 = vcmp.lt.s32.totalorder %v508_v21, 16 }
 0x182   : > { %v633_v38 = vsel %vm628_vm10, %v627_v33, %v602_v26  ;;  %v653_v26 = vrot.slane %v555_v22, %v7612_v23  ;;  %vm517_vm6 = vmand %vm511_vm13, %vm514_vm14 }
 0x183   : > { %v622_v36 = vpop.permute.xlu1 %621  ;;  %1947 = vmatpush1.bf16.msra.mxu0 %v6120_v29  ;;  %vm7627_vm10 = vmneg %vm564_vm0 }
 0x184   : > { %v644_v37 = vsel %vm640_vm8, %v639_v35, %v622_v36  ;;  %1948 = vmatprep.subr.bf16.mxu0 %v6125_v30  ;;  %vm515_vm8 = vcmp.lt.s32.totalorder %v509_v28, 16 }
 0x185   : > { %5270 = vmatprep.mubr.msk.bf16.mxu0 %vm806_vm9, %v644_v37  ;;  %vm518_vm9 = vmand %vm512_vm7, %vm515_vm8 }
 0x186   : > { %854 = vmatmul.mubr.bf16.gmra.mrb[4].mxu0 %v633_v38 }
 0x187   : > { %1949 = vmatpush1.bf16.msra.mxu0 %v6123_v8  ;;  %v7177_v8 = vmov 0.0  }
 0x188   : > { %1950 = vmatprep.subr.bf16.mxu0 %v6130_v34  ;;  %v7616_v33 = vsel %vm516_vm15, 1.0, %v7177_v8  ;;  %v7618_v35 = vsel %vm517_vm6, 1.0, %v7177_v8 }
 0x18b   : > { %1951 = vmatpush1.bf16.msra.mxu0 %v6128_v39 }
 0x18c   : > { %1952 = vmatprep.subr.bf16.mxu0 %v6136_v40 }
 0x18f   : > { %1953 = vmatpush1.bf16.msra.mxu0 %v6134_v41 }
 0x190   : > { %1954 = vmatprep.subr.bf16.mxu0 %v6142_v42 }
 0x193   : > { %1955 = vmatpush1.bf16.msra.mxu0 %v6140_v11 }
 0x194   : > { %1956 = vmatprep.subr.bf16.mxu0 %v6148_v43 }
 0x197   : > { %1957 = vmatpush1.bf16.msra.mxu0 %v6146_v44 }
 0x198   : > { %1958 = vmatprep.subr.bf16.mxu0 %v6154_v45 }
 0x19b   : > { %1959 = vmatpush1.bf16.msra.mxu0 %v6152_v46 }
 0x19c   : > { %1960 = vmatprep.subr.bf16.mxu0 %v6160_v47 }
 0x19f   : > { %1961 = vmatpush1.bf16.msra.mxu0 %v6158_v48 }
 0x1a0   : > { %1962 = vmatprep.subr.bf16.mxu0 %v6166_v49 }
 0x1a3   : > { %1963 = vmatpush1.bf16.msra.mxu0 %v6164_v50  ;;  %v7624_v50 = vsel %vm518_vm9, 1.0, %v7177_v8 }
 0x1a4   : > { %1964 = vmatprep.subr.bf16.mxu0 %v6172_v51 }
 0x1a7   : > { %1965 = vmatpush1.bf16.msra.mxu0 %v6170_v52 }
 0x1a8   : > { %1966 = vmatprep.subr.bf16.mxu0 %v6178_v53 }
 0x1ab   : > { %1967 = vmatpush1.bf16.msra.mxu0 %v6176_v54 }
 0x1ac   : > { %1968 = vmatprep.subr.bf16.mxu0 %v6184_v55 }
 0x1af   : > { %1969 = vmatpush1.bf16.msra.mxu0 %v6182_v56 }
 0x1b0   : > { %1970 = vmatprep.subr.bf16.mxu0 %v6190_v58 }
 0x1b3   : > { %1971 = vmatpush1.bf16.msra.mxu0 %v6188_v60 }
 0x1b4   : > { %1972 = vmatprep.subr.bf16.mxu0 %v6196_v62  ;;  %v6214_v62 = vld [vmem:[#allocation7 + $0x114] ss:$8 sps:$4 sm:$0xff]  }
 0x1b7   : > { %1973 = vmatpush1.bf16.msra.mxu0 %v6194_v0 }
 0x1b8   : > { %1974 = vmatprep.subr.bf16.mxu0 %v6202_v2 }
 0x1bb   : > { %1975 = vmatpush1.bf16.msra.mxu0 %v6200_v4 }
 0x1bc   : > { %1995 = vmatprep.subr.bf16.mxu0 %v6208_v6  ;;  %v6212_v6 = vld [vmem:[#allocation7 + $0x110] ss:$8 sps:$4 sm:$0xff]  }
 0x251   : > { %v845_v27 = vpop.f32.mrb[0].mxu0 }
 0x252   : > { %v846_v29 = vadd.f32 %v845_v27, %v649_v25  ;;  %v847_v30 = vpop.f32.mrb[1].mxu0  ;;  %v6218_v27 = vld [vmem:[#allocation7 + $0x120] ss:$8 sps:$4 sm:$0xff]  }
 0x253   : > { %v848_v31 = vadd.f32 %v847_v30, %v653_v26  ;;  %v849_v32 = vpop.f32.mrb[2].mxu0 }
 0x254   : > { %v862_v34 = vmax.f32 %v846_v29, 0.0  ;;  %v850_v36 = vadd.f32 %v849_v32, %v649_v25  ;;  %v851_v37 = vpop.f32.mrb[3].mxu0 }
 0x255   : > { %v863_v38 = vmax.f32 %v848_v31, 0.0  ;;  %v852_v39 = vadd.f32 %v851_v37, %v653_v26 }
 0x256   : > { %v864_v40 = vmax.f32 %v850_v36, 0.0  ;;  %v868_v42 = vmul.f32 %v7616_v33, %v862_v34  ;;  %v6227_v34 = vld [vmem:[#allocation7 + $0x134] ss:$8 sps:$4 sm:$0xff]  }
 0x257   : > { %v865_v41 = vmax.f32 %v852_v39, 0.0  ;;  %v869_v43 = vmul.f32 %v7616_v33, %v863_v38 }
 0x258   : > { %v870_v11 = vmul.f32 %v7618_v35, %v864_v40 }
 0x259   : > { %v871_v44 = vmul.f32 %v7618_v35, %v865_v41  ;;  %v855_v45 = vpop.f32.mrb[4].mxu0 }
 0x25a   : > { %v874_v46 = vpack.c.bf16 %v870_v11, %v868_v42  ;;  %v856_v47 = vadd.f32 %v855_v45, %v649_v25  ;;  %v857_v48 = vpop.f32.mrb[5].mxu0  ;;  %v6222_v42 = vld [vmem:[#allocation7 + $0x300] ss:$8 sps:$4 sm:$0xff]  }
 0x25b   : > { %v875_v49 = vpack.c.bf16 %v871_v44, %v869_v43  ;;  %v858_v51 = vadd.f32 %v857_v48, %v653_v26  ;;  %v859_v52 = vpop.f32.mrb[6].mxu0 }
 0x25c   : > { %v1043_v53 = vrot.slane %v874_v46, 7  ;;  %v866_v54 = vmax.f32 %v856_v47, 0.0  ;;  %v860_v55 = vpop.f32.mrb[7].mxu0  ;;  %v6225_v46 = vld [vmem:[#allocation7 + $0x130] ss:$8 sps:$4 sm:$0xff]  }
 0x25d   : > { %v1044_v57 = vrot.slane %v875_v49, 7  ;;  %v867_v58 = vmax.f32 %v858_v51, 0.0  ;;  %v6230_v51 = vld [vmem:[#allocation7 + $0x314] ss:$8 sps:$4 sm:$0xff]   ;;  %v6233_v52 = vld [vmem:[#allocation7 + $0x144] ss:$8 sps:$4 sm:$0xff]  }
 0x25e   : > { %v7632_v60 = vsel %vm564_vm0, 0, %v1043_v53  ;;  %v872_v61 = vmul.f32 %v7624_v50, %v866_v54 }
 0x25f   : > { %v1063_v63 = vshll.u32 %v7632_v60, 16  ;;  %v873_v0 = vmul.f32 %v7624_v50, %v867_v58  ;;  %5432 = vmatprep.mubr.msk.bf16.mxu0 %vm7627_vm10, %v1044_v57  ;;  %v1053_v1 = vsel %vm564_vm0, 0, %v1044_v57  ;;  %v1061_v7 = vshrl.u32 %v7632_v60, 16 }
 0x260   : > { %v876_v2 = vpack.c.bf16 %v872_v61, %v872_v61  ;;  %5434 = vmatmul.mubr.msk.bf16.vlgmr.msra.gmra.mrb[8].mxu0 %vm7627_vm10, %v1043_v53  ;;  %v1071_v3 = vshrl.u32 %v1053_v1, 16  ;;  %v1073_v4 = vshll.u32 %v1053_v1, 16  ;;  %v1098_v13 = vrot.slane %v1053_v1, 1  ;;  %v6228_v61 = vld [vmem:[#allocation7 + $0x310] ss:$8 sps:$4 sm:$0xff]  }
 0x261   : > { %v877_v5 = vpack.c.bf16 %v873_v0, %v873_v0  ;;  %1996 = vmatpush1.bf16.msra.mxu0 %v6206_v59  ;;  %v1065_v9 = vrot.slane %v1063_v63, 1  ;;  %v1095_v14 = vrot.slane %v7632_v60, 1  ;;  %v1106_v19 = vrot.slane %v1063_v63, 2  ;;  %v6231_v0 = vld [vmem:[#allocation7 + $0x140] ss:$8 sps:$4 sm:$0xff]  }
 0x262   : > { %v1045_v10 = vrot.slane %v876_v2, 7  ;;  %1997 = vmatprep.subr.bf16.mxu0 %v6214_v62  ;;  %v1075_v15 = vrot.slane %v1073_v4, 1  ;;  %v1112_v17 = vrot.slane %v1071_v3, 1  ;;  %v1113_v18 = vrot.slane %v1073_v4, 2 }
 0x263   : > { %v1047_v16 = vrot.slane %v877_v5, 7  ;;  %v1066_v22 = vor.u32 %v1065_v9, %v1061_v7  ;;  %v1105_v24 = vrot.slane %v1061_v7, 1  ;;  %v1126_v25 = vrot.slane %v1053_v1, 2  ;;  %v6236_v1 = vld [vmem:[#allocation7 + $0x324] ss:$8 sps:$4 sm:$0xff]  }
 0x264   : > { %v1046_v21 = vsel %vm564_vm0, %v1043_v53, %v1045_v10  ;;  %v1076_v29 = vor.u32 %v1075_v15, %v1071_v3  ;;  %v1123_v30 = vrot.slane %v7632_v60, 2  ;;  %v1114_v58 = vor.u32 %v1113_v18, %v1112_v17  ;;  %v6239_v3 = vld [vmem:[#allocation7 + $0x154] ss:$8 sps:$4 sm:$0xff]   ;;  %v6234_v5 = vld [vmem:[#allocation7 + $0x320] ss:$8 sps:$4 sm:$0xff]  }
 0x265   : > { %1998 = vmatpush1.bf16.msra.mxu0 %v6212_v6  ;;  %v1048_v26 = vsel %vm564_vm0, %v1044_v57, %v1047_v16  ;;  %v7647_v28 = vsel %vm572_vm1, %v1046_v21, 0  ;;  %v1107_v63 = vor.u32 %v1106_v19, %v1105_v24  ;;  %v6237_v6 = vld [vmem:[#allocation7 + $0x150] ss:$8 sps:$4 sm:$0xff]   ;;  %v6242_v7 = vld [vmem:[#allocation7 + $0x334] ss:$8 sps:$4 sm:$0xff]  }
 0x266   : > { %v7651_v31 = vsel %vm572_vm1, %v1048_v26, 0  ;;  %5435 = vmatprep.mubr.msk.bf16.mxu0 %vm572_vm1, %v1048_v26  ;;  %1999 = vmatprep.subr.bf16.mxu0 %v6220_v12  ;;  %v1067_v32 = vshll.u32 %v7647_v28, 16  ;;  %v1124_v8 = vrot.slane %v7647_v28, 2  ;;  %v1096_v36 = vrot.slane %v7647_v28, 1  ;;  %v6245_v9 = vld [vmem:[#allocation7 + $0x164] ss:$8 sps:$4 sm:$0xff]  }
 0x267   : > { %v1084_v37 = vshrl.u32 %v7651_v31, 16  ;;  %v1099_v38 = vrot.slane %v7651_v31, 1  ;;  %v1077_v39 = vshll.u32 %v7651_v31, 16  ;;  %v1081_v40 = vshrl.u32 %v7647_v28, 16  ;;  %v6240_v10 = vld [vmem:[#allocation7 + $0x330] ss:$8 sps:$4 sm:$0xff]  }
 0x268   : > { %v1109_v41 = vrot.slane %v1067_v32, 2  ;;  %5436 = vmatmul.mubr.msk.bf16.gmra.mrb[12].mxu0 %vm572_vm1, %v1046_v21  ;;  %v1097_v11 = vsel %vm595_vm2, %v1095_v14, %v1096_v36  ;;  %v7663_v43 = vrot.slane %v1067_v32, 1  ;;  %v1127_v44 = vrot.slane %v7651_v31, 2  ;;  %v6243_v12 = vld [vmem:[#allocation7 + $0x160] ss:$8 sps:$4 sm:$0xff]  }
 0x269   : > { %2000 = vmatpush1.bf16.msra.mxu0 %v6218_v27  ;;  %v1100_v45 = vsel %vm595_vm2, %v1098_v13, %v1099_v38  ;;  %v7667_v47 = vrot.slane %v1077_v39, 1  ;;  %v1115_v48 = vrot.slane %v1084_v37, 1  ;;  %v1116_v49 = vrot.slane %v1077_v39, 2  ;;  %v6248_v13 = vld [vmem:[#allocation7 + $0x344] ss:$8 sps:$4 sm:$0xff]  }
 0x26a   : > { %2078 = vmatprep.mubr.bf16.mxu1 %v1100_v45  ;;  %2001 = vmatprep.subr.bf16.mxu0 %v6227_v34  ;;  %v7673_v53 = vsel %vm575_vm3, %v1066_v22, %v7663_v43  ;;  %v1108_v54 = vrot.slane %v1081_v40, 1  ;;  %v7680_v55 = vsel %vm615_vm5, %v1126_v25, %v1127_v44  ;;  %v7689_v60 = vsel %vm615_vm5, %v1123_v30, %v1124_v8  ;;  %v6251_v14 = vld [vmem:[#allocation7 + $0x174] ss:$8 sps:$4 sm:$0xff]   ;;  %v6246_v15 = vld [vmem:[#allocation7 + $0x340] ss:$8 sps:$4 sm:$0xff]  }
 0x26b   : > { %2079 = vmatmul.mubr.bf16.vlgmr.msra.gmra.mrb[0].mxu1 %v1097_v11  ;;  %v1080_v57 = vsel %vm575_vm3, %v1076_v29, %v7667_v47  ;;  %v7684_v59 = vor.u32 %v1116_v49, %v1115_v48  ;;  %v6249_v16 = vld [vmem:[#allocation7 + $0x170] ss:$8 sps:$4 sm:$0xff]   ;;  %v6254_v17 = vld [vmem:[#allocation7 + $0x354] ss:$8 sps:$4 sm:$0xff]   ;;  %v6257_v18 = vld [vmem:[#allocation7 + $0x184] ss:$8 sps:$4 sm:$0xff]  }
 0x26c   : > { %2098 = vmatpush1.bf16.msra.mxu1 %v6222_v42  ;;  %2027 = vmatprep.mubr.bf16.mxu0 %v1080_v57  ;;  %v7691_v62 = vor.u32 %v1109_v41, %v1108_v54  ;;  %v6252_v19 = vld [vmem:[#allocation7 + $0x350] ss:$8 sps:$4 sm:$0xff]   ;;  %v6255_v21 = vld [vmem:[#allocation7 + $0x180] ss:$8 sps:$4 sm:$0xff]   ;;  %v6260_v22 = vld [vmem:[#allocation7 + $0x364] ss:$8 sps:$4 sm:$0xff]  }
 0x26d   : > { %2002 = vmatpush1.bf16.msra.mxu0 %v6225_v46  ;;  %2088 = vmatprep.mubr.bf16.mxu1 %v1099_v38  ;;  %v1118_v2 = vsel %vm603_vm4, %v1114_v58, %v7684_v59  ;;  %v6263_v24 = vld [vmem:[#allocation7 + $0x194] ss:$8 sps:$4 sm:$0xff]   ;;  %v6258_v25 = vld [vmem:[#allocation7 + $0x360] ss:$8 sps:$4 sm:$0xff]   ;;  %v6261_v26 = vld [vmem:[#allocation7 + $0x190] ss:$8 sps:$4 sm:$0xff]  }
 0x26e   : > { %2099 = vmatprep.subr.bf16.mxu1 %v6230_v51  ;;  %2003 = vmatprep.subr.bf16.mxu0 %v6233_v52  ;;  %v7697_v4 = vsel %vm603_vm4, %v1107_v63, %v7691_v62  ;;  %v6266_v27 = vld [vmem:[#allocation7 + $0x374] ss:$8 sps:$4 sm:$0xff]   ;;  %v6269_v29 = vld [vmem:[#allocation7 + $0x1a4] ss:$8 sps:$4 sm:$0xff]   ;;  %v6264_v30 = vld [vmem:[#allocation7 + $0x370] ss:$8 sps:$4 sm:$0xff]  }
 0x26f   : > { %v6267_v32 = vld [vmem:[#allocation7 + $0x1a0] ss:$8 sps:$4 sm:$0xff]   ;;  %v6272_v34 = vld [vmem:[#allocation7 + $0x384] ss:$8 sps:$4 sm:$0xff]   ;;  %v6273_v39 = vld [vmem:[#allocation7 + $0x1b0] ss:$8 sps:$4 sm:$0xff]  }
 0x270   : > { %2100 = vmatpush1.bf16.msra.mxu1 %v6228_v61  ;;  %v6270_v38 = vld [vmem:[#allocation7 + $0x380] ss:$8 sps:$4 sm:$0xff]   ;;  %v6278_v41 = vld [vmem:[#allocation7 + $0x394] ss:$8 sps:$4 sm:$0xff]   ;;  %v6281_v42 = vld [vmem:[#allocation7 + $0x1c4] ss:$8 sps:$4 sm:$0xff]  }
 0x271   : > { %2004 = vmatpush1.bf16.msra.mxu0 %v6231_v0  ;;  %2101 = vmatprep.subr.bf16.mxu1 %v6236_v1  ;;  %v6276_v11 = vld [vmem:[#allocation7 + $0x390] ss:$8 sps:$4 sm:$0xff]   ;;  %v6279_v45 = vld [vmem:[#allocation7 + $0x1c0] ss:$8 sps:$4 sm:$0xff]   ;;  %v6284_v46 = vld [vmem:[#allocation7 + $0x3a4] ss:$8 sps:$4 sm:$0xff]  }
 0x272   : > { %2005 = vmatprep.subr.bf16.mxu0 %v6239_v3  ;;  %v6287_v48 = vld [vmem:[#allocation7 + $0x1d4] ss:$8 sps:$4 sm:$0xff]   ;;  %v6282_v49 = vld [vmem:[#allocation7 + $0x3a0] ss:$8 sps:$4 sm:$0xff]   ;;  %v6285_v51 = vld [vmem:[#allocation7 + $0x1d0] ss:$8 sps:$4 sm:$0xff]  }
 0x273   : > { %2089 = vmatmul.mubr.bf16.gmra.mrb[4].mxu1 %v1096_v36  ;;  %v6275_v36 = vld [vmem:[#allocation7 + $0x1b4] ss:$8 sps:$4 sm:$0xff]   ;;  %v6293_v54 = vld [vmem:[#allocation7 + $0x1e4] ss:$8 sps:$4 sm:$0xff]   ;;  %v6288_v57 = vld [vmem:[#allocation7 + $0x3b0] ss:$8 sps:$4 sm:$0xff]  }
 0x274   : > { %2102 = vmatpush1.bf16.msra.mxu1 %v6234_v5  ;;  %2129 = vmatprep.mubr.bf16.mxu1 %v1118_v2  ;;  %v6290_v52 = vld [vmem:[#allocation7 + $0x3b4] ss:$8 sps:$4 sm:$0xff]   ;;  %v6291_v58 = vld [vmem:[#allocation7 + $0x1e0] ss:$8 sps:$4 sm:$0xff]   ;;  %v6296_v61 = vld [vmem:[#allocation7 + $0x3c4] ss:$8 sps:$4 sm:$0xff]  }
 0x275   : > { %2006 = vmatpush1.bf16.msra.mxu0 %v6237_v6  ;;  %2103 = vmatprep.subr.bf16.mxu1 %v6242_v7  ;;  %v6299_v63 = vld [vmem:[#allocation7 + $0x1f4] ss:$8 sps:$4 sm:$0xff]   ;;  %v6294_v0 = vld [vmem:[#allocation7 + $0x3c0] ss:$8 sps:$4 sm:$0xff]   ;;  %v6297_v1 = vld [vmem:[#allocation7 + $0x1f0] ss:$8 sps:$4 sm:$0xff]   ;;  %v1086_v6 = vor.u32 %v1084_v37, %v7667_v47 }
 0x276   : > { %2007 = vmatprep.subr.bf16.mxu0 %v6245_v9  ;;  %v6302_v2 = vld [vmem:[#allocation7 + $0x3d4] ss:$8 sps:$4 sm:$0xff]   ;;  %v6300_v3 = vld [vmem:[#allocation7 + $0x3d0] ss:$8 sps:$4 sm:$0xff]   ;;  %v6305_v5 = vld [vmem:[#allocation7 + $0x3e4] ss:$8 sps:$4 sm:$0xff]  }
 0x277   : > { %v6303_v7 = vld [vmem:[#allocation7 + $0x3e0] ss:$8 sps:$4 sm:$0xff]   ;;  %v6308_v9 = vld [vmem:[#allocation7 + $0x3f4] ss:$8 sps:$4 sm:$0xff]   ;;  %v6312_v47 = vld [vmem:[#allocation7 + $0x410] ss:$8 sps:$4 sm:$0xff]  }
 0x278   : > { %2104 = vmatpush1.bf16.msra.mxu1 %v6240_v10  ;;  %v6306_v10 = vld [vmem:[#allocation7 + $0x3f0] ss:$8 sps:$4 sm:$0xff]   ;;  %v6314_v37 = vld [vmem:[#allocation7 + $0x414] ss:$8 sps:$4 sm:$0xff]   ;;  %v6371_v31 = vld [vmem:[#allocation8 + $0x44] ss:$8 sps:$4 sm:$0xff]  }
 0x279   : > { %2008 = vmatpush1.bf16.msra.mxu0 %v6243_v12  ;;  %2105 = vmatprep.subr.bf16.mxu1 %v6248_v13  ;;  %v6311_v12 = vld [vmem:[#allocation7 + $0x404] ss:$8 sps:$4 sm:$0xff]   ;;  %v1083_v13 = vor.u32 %v1081_v40, %v7663_v43  ;;  %v6318_v40 = vld [vmem:[#allocation7 + $0x430] ss:$8 sps:$4 sm:$0xff]   ;;  %v6374_v28 = vld [vmem:[#allocation8 + $0x54] ss:$8 sps:$4 sm:$0xff]  }
 0x27a   : > { %2009 = vmatprep.subr.bf16.mxu0 %v6251_v14  ;;  %v6309_v14 = vld [vmem:[#allocation7 + $0x400] ss:$8 sps:$4 sm:$0xff]   ;;  %v6323_v43 = vld [vmem:[#allocation7 + $0x444] ss:$8 sps:$4 sm:$0xff]  }
 0x27c   : > { %2106 = vmatpush1.bf16.msra.mxu1 %v6246_v15  ;;  %v6315_v15 = vld [vmem:[#allocation7 + $0x420] ss:$8 sps:$4 sm:$0xff]  }
 0x27d   : > { %2010 = vmatpush1.bf16.msra.mxu0 %v6249_v16  ;;  %2107 = vmatprep.subr.bf16.mxu1 %v6254_v17  ;;  %v6320_v16 = vld [vmem:[#allocation7 + $0x434] ss:$8 sps:$4 sm:$0xff]   ;;  %v6324_v17 = vld [vmem:[#allocation7 + $0x450] ss:$8 sps:$4 sm:$0xff]  }
 0x27e   : > { %2011 = vmatprep.subr.bf16.mxu0 %v6257_v18  ;;  %v6329_v18 = vld [vmem:[#allocation7 + $0x464] ss:$8 sps:$4 sm:$0xff]  }
 0x280   : > { %2108 = vmatpush1.bf16.msra.mxu1 %v6252_v19  ;;  %v6327_v19 = vld [vmem:[#allocation7 + $0x460] ss:$8 sps:$4 sm:$0xff]  }
 0x281   : > { %2012 = vmatpush1.bf16.msra.mxu0 %v6255_v21  ;;  %2109 = vmatprep.subr.bf16.mxu1 %v6260_v22  ;;  %v6332_v21 = vld [vmem:[#allocation7 + $0x474] ss:$8 sps:$4 sm:$0xff]   ;;  %v6335_v22 = vld [vmem:[#allocation7 + $0x484] ss:$8 sps:$4 sm:$0xff]  }
 0x282   : > { %2013 = vmatprep.subr.bf16.mxu0 %v6263_v24  ;;  %v6338_v24 = vld [vmem:[#allocation7 + $0x494] ss:$8 sps:$4 sm:$0xff]  }
 0x284   : > { %2110 = vmatpush1.bf16.msra.mxu1 %v6258_v25  ;;  %v6336_v25 = vld [vmem:[#allocation7 + $0x490] ss:$8 sps:$4 sm:$0xff]  }
 0x285   : > { %2014 = vmatpush1.bf16.msra.mxu0 %v6261_v26  ;;  %2111 = vmatprep.subr.bf16.mxu1 %v6266_v27  ;;  %v6341_v26 = vld [vmem:[#allocation7 + $0x4a4] ss:$8 sps:$4 sm:$0xff]   ;;  %v6339_v27 = vld [vmem:[#allocation7 + $0x4a0] ss:$8 sps:$4 sm:$0xff]  }
 0x286   : > { %2015 = vmatprep.subr.bf16.mxu0 %v6269_v29  ;;  %v6344_v29 = vld [vmem:[#allocation7 + $0x4b4] ss:$8 sps:$4 sm:$0xff]  }
 0x288   : > { %2112 = vmatpush1.bf16.msra.mxu1 %v6264_v30  ;;  %v6342_v30 = vld [vmem:[#allocation7 + $0x4b0] ss:$8 sps:$4 sm:$0xff]  }
 0x289   : > { %2016 = vmatpush1.bf16.msra.mxu0 %v6267_v32  ;;  %2113 = vmatprep.subr.bf16.mxu1 %v6272_v34  ;;  %v6347_v32 = vld [vmem:[#allocation7 + $0x4c4] ss:$8 sps:$4 sm:$0xff]   ;;  %v6345_v34 = vld [vmem:[#allocation7 + $0x4c0] ss:$8 sps:$4 sm:$0xff]  }
 0x28a   : > { %2017 = vmatprep.subr.bf16.mxu0 %v6275_v36  ;;  %v6350_v36 = vld [vmem:[#allocation7 + $0x4d4] ss:$8 sps:$4 sm:$0xff]  }
 0x28c   : > { %2114 = vmatpush1.bf16.msra.mxu1 %v6270_v38  ;;  %v6348_v38 = vld [vmem:[#allocation7 + $0x4d0] ss:$8 sps:$4 sm:$0xff]  }
 0x28d   : > { %2018 = vmatpush1.bf16.msra.mxu0 %v6273_v39  ;;  %2115 = vmatprep.subr.bf16.mxu1 %v6278_v41  ;;  %v6353_v39 = vld [vmem:[#allocation7 + $0x4e4] ss:$8 sps:$4 sm:$0xff]   ;;  %v6351_v41 = vld [vmem:[#allocation7 + $0x4e0] ss:$8 sps:$4 sm:$0xff]  }
 0x28e   : > { %2019 = vmatprep.subr.bf16.mxu0 %v6281_v42  ;;  %v6356_v42 = vld [vmem:[#allocation7 + $0x4f4] ss:$8 sps:$4 sm:$0xff]  }
 0x290   : > { %2116 = vmatpush1.bf16.msra.mxu1 %v6276_v11  ;;  %v6354_v11 = vld [vmem:[#allocation7 + $0x4f0] ss:$8 sps:$4 sm:$0xff]  }
 0x291   : > { %2020 = vmatpush1.bf16.msra.mxu0 %v6279_v45  ;;  %2117 = vmatprep.subr.bf16.mxu1 %v6284_v46  ;;  %v6357_v45 = vld [vmem:[#allocation8] ss:$8 sps:$4 sm:$0xff]   ;;  %v6359_v46 = vld [vmem:[#allocation8 + $0x4] ss:$8 sps:$4 sm:$0xff]  }
 0x292   : > { %2021 = vmatprep.subr.bf16.mxu0 %v6287_v48  ;;  %v6362_v48 = vld [vmem:[#allocation8 + $0x14] ss:$8 sps:$4 sm:$0xff]  }
 0x294   : > { %2118 = vmatpush1.bf16.msra.mxu1 %v6282_v49  ;;  %v6360_v49 = vld [vmem:[#allocation8 + $0x10] ss:$8 sps:$4 sm:$0xff]  }
 0x295   : > { %2022 = vmatpush1.bf16.msra.mxu0 %v6285_v51  ;;  %2119 = vmatprep.subr.bf16.mxu1 %v6290_v52  ;;  %v6365_v51 = vld [vmem:[#allocation8 + $0x24] ss:$8 sps:$4 sm:$0xff]   ;;  %v6363_v52 = vld [vmem:[#allocation8 + $0x20] ss:$8 sps:$4 sm:$0xff]  }
 0x296   : > { %2023 = vmatprep.subr.bf16.mxu0 %v6293_v54  ;;  %v6368_v54 = vld [vmem:[#allocation8 + $0x34] ss:$8 sps:$4 sm:$0xff]  }
 0x298   : > { %2120 = vmatpush1.bf16.msra.mxu1 %v6288_v57  ;;  %v6377_v57 = vld [vmem:[#allocation8 + $0x64] ss:$8 sps:$4 sm:$0xff]  }
 0x299   : > { %2024 = vmatpush1.bf16.msra.mxu0 %v6291_v58  ;;  %2121 = vmatprep.subr.bf16.mxu1 %v6296_v61  ;;  %v6375_v58 = vld [vmem:[#allocation8 + $0x60] ss:$8 sps:$4 sm:$0xff]   ;;  %v6380_v61 = vld [vmem:[#allocation8 + $0x74] ss:$8 sps:$4 sm:$0xff]  }
 0x29a   : > { %2025 = vmatprep.subr.bf16.mxu0 %v6299_v63  ;;  %v6378_v63 = vld [vmem:[#allocation8 + $0x70] ss:$8 sps:$4 sm:$0xff]  }
 0x29c   : > { %2122 = vmatpush1.bf16.msra.mxu1 %v6294_v0  ;;  %v6383_v0 = vld [vmem:[#allocation8 + $0x84] ss:$8 sps:$4 sm:$0xff]  }
 0x29d   : > { %2026 = vmatpush1.bf16.msra.mxu0 %v6297_v1  ;;  %2123 = vmatprep.subr.bf16.mxu1 %v6302_v2  ;;  %v6381_v1 = vld [vmem:[#allocation8 + $0x80] ss:$8 sps:$4 sm:$0xff]   ;;  %v6386_v2 = vld [vmem:[#allocation8 + $0x94] ss:$8 sps:$4 sm:$0xff]  }
 0x29e   : > { %3281 = vmatprep.subr.bf16.mxu0 %v6359_v46 }
 0x2a0   : > { %2028 = vmatmul.mubr.bf16.vlgmr.msra.gmra.mrb[8].mxu0 %v7673_v53  ;;  %2124 = vmatpush1.bf16.msra.mxu1 %v6300_v3  ;;  %v6317_v53 = vld [vmem:[#allocation7 + $0x424] ss:$8 sps:$4 sm:$0xff]   ;;  %v6384_v3 = vld [vmem:[#allocation8 + $0x90] ss:$8 sps:$4 sm:$0xff]  }
 0x2a1   : > { %2037 = vmatprep.mubr.bf16.mxu0 %v1086_v6  ;;  %2125 = vmatprep.subr.bf16.mxu1 %v6305_v5  ;;  %v6389_v5 = vld [vmem:[#allocation8 + $0xa4] ss:$8 sps:$4 sm:$0xff]   ;;  %v6387_v6 = vld [vmem:[#allocation8 + $0xa0] ss:$8 sps:$4 sm:$0xff]  }
 0x2a2   : > { %3282 = vmatpush1.bf16.msra.mxu0 %v6357_v45 }
 0x2a3   : > { %3283 = vmatprep.subr.bf16.mxu0 %v6362_v48 }
 0x2a4   : > { %2126 = vmatpush1.bf16.msra.mxu1 %v6303_v7  ;;  %v6392_v7 = vld [vmem:[#allocation8 + $0xb4] ss:$8 sps:$4 sm:$0xff]  }
 0x2a5   : > { %2127 = vmatprep.subr.bf16.mxu1 %v6308_v9  ;;  %v6390_v9 = vld [vmem:[#allocation8 + $0xb0] ss:$8 sps:$4 sm:$0xff]  }
 0x2a6   : > { %3284 = vmatpush1.bf16.msra.mxu0 %v6360_v49 }
 0x2a7   : > { %3285 = vmatprep.subr.bf16.mxu0 %v6365_v51 }
 0x2a8   : > { %2038 = vmatmul.mubr.bf16.gmra.mrb[12].mxu0 %v1083_v13  ;;  %2128 = vmatpush1.bf16.msra.mxu1 %v6306_v10  ;;  %v6395_v10 = vld [vmem:[#allocation8 + $0xc4] ss:$8 sps:$4 sm:$0xff]   ;;  %v6398_v13 = vld [vmem:[#allocation8 + $0xd4] ss:$8 sps:$4 sm:$0xff]  }
 0x2a9   : > { %2148 = vmatprep.subr.bf16.mxu1 %v6311_v12  ;;  %v6393_v12 = vld [vmem:[#allocation8 + $0xc0] ss:$8 sps:$4 sm:$0xff]  }
 0x2aa   : > { %3286 = vmatpush1.bf16.msra.mxu0 %v6363_v52 }
 0x2ab   : > { %2130 = vmatmul.mubr.bf16.vlgmr.msra.gmra.mrb[0].mxu1 %v7697_v4  ;;  %v6321_v4 = vld [vmem:[#allocation7 + $0x440] ss:$8 sps:$4 sm:$0xff]   ;;  %3287 = vmatprep.subr.bf16.mxu0 %v6368_v54 }
 0x2ac   : > { %2139 = vmatprep.mubr.bf16.mxu1 %v7684_v59  ;;  %2149 = vmatpush1.bf16.msra.mxu1 %v6309_v14  ;;  %v6326_v59 = vld [vmem:[#allocation7 + $0x454] ss:$8 sps:$4 sm:$0xff]   ;;  %v6396_v14 = vld [vmem:[#allocation8 + $0xd0] ss:$8 sps:$4 sm:$0xff]  }
 0x2ad   : > { %2150 = vmatprep.subr.bf16.mxu1 %v6314_v37  ;;  %v6401_v37 = vld [vmem:[#allocation8 + $0xe4] ss:$8 sps:$4 sm:$0xff]  }
 0x2b0   : > { %2151 = vmatpush1.bf16.msra.mxu1 %v6312_v47  ;;  %v6399_v47 = vld [vmem:[#allocation8 + $0xe0] ss:$8 sps:$4 sm:$0xff]  }
 0x2b1   : > { %2152 = vmatprep.subr.bf16.mxu1 %v6317_v53  ;;  %v6404_v53 = vld [vmem:[#allocation8 + $0xf4] ss:$8 sps:$4 sm:$0xff]  }
 0x2b3   : > { %2140 = vmatmul.mubr.bf16.gmra.mrb[4].mxu1 %v7691_v62  ;;  %v6330_v62 = vld [vmem:[#allocation7 + $0x470] ss:$8 sps:$4 sm:$0xff]  }
 0x2b4   : > { %2153 = vmatpush1.bf16.msra.mxu1 %v6315_v15  ;;  %2180 = vmatprep.mubr.bf16.mxu1 %v7680_v55  ;;  %v6333_v55 = vld [vmem:[#allocation7 + $0x480] ss:$8 sps:$4 sm:$0xff]   ;;  %v6402_v15 = vld [vmem:[#allocation8 + $0xf0] ss:$8 sps:$4 sm:$0xff]  }
 0x2b5   : > { %2154 = vmatprep.subr.bf16.mxu1 %v6320_v16  ;;  %v6407_v16 = vld [vmem:[#allocation8 + $0x104] ss:$8 sps:$4 sm:$0xff]  }
 0x2b8   : > { %2155 = vmatpush1.bf16.msra.mxu1 %v6318_v40 }
 0x2b9   : > { %2156 = vmatprep.subr.bf16.mxu1 %v6323_v43 }
 0x2bc   : > { %2157 = vmatpush1.bf16.msra.mxu1 %v6321_v4 }
 0x2bd   : > { %2158 = vmatprep.subr.bf16.mxu1 %v6326_v59 }
 0x2c0   : > { %2159 = vmatpush1.bf16.msra.mxu1 %v6324_v17 }
 0x2c1   : > { %2160 = vmatprep.subr.bf16.mxu1 %v6329_v18 }
 0x2c4   : > { %2161 = vmatpush1.bf16.msra.mxu1 %v6327_v19 }
 0x2c5   : > { %2162 = vmatprep.subr.bf16.mxu1 %v6332_v21 }
 0x2c8   : > { %2163 = vmatpush1.bf16.msra.mxu1 %v6330_v62  ;;  %v1038_v62 = vld [vmem:[%s8076_s4] sm:$0x3]  ;;  %s5074_s4 = sadd.s32 %s8072_s3, %s5787_s0 }
 0x2c9   : > { %2164 = vmatprep.subr.bf16.mxu1 %v6335_v22  ;;  %v1137_v22 = vrot.slane %v1038_v62, %v7607_v20  ;;  %s5788_s14 = sshll.u32 %s5074_s4, 7 }
 0x2cc   : > { %2165 = vmatpush1.bf16.msra.mxu1 %v6333_v55  ;;  %v1141_v55 = vrot.slane %v1038_v62, %v7612_v23 }
 0x2cd   : > { %2166 = vmatprep.subr.bf16.mxu1 %v6338_v24 }
 0x2d0   : > { %2167 = vmatpush1.bf16.msra.mxu1 %v6336_v25 }
 0x2d1   : > { %2168 = vmatprep.subr.bf16.mxu1 %v6341_v26 }
 0x2d4   : > { %2169 = vmatpush1.bf16.msra.mxu1 %v6339_v27 }
 0x2d5   : > { %2170 = vmatprep.subr.bf16.mxu1 %v6344_v29 }
 0x2d8   : > { %2171 = vmatpush1.bf16.msra.mxu1 %v6342_v30 }
 0x2d9   : > { %2172 = vmatprep.subr.bf16.mxu1 %v6347_v32 }
 0x2dc   : > { %2173 = vmatpush1.bf16.msra.mxu1 %v6345_v34 }
 0x2dd   : > { %2174 = vmatprep.subr.bf16.mxu1 %v6350_v36 }
 0x2e0   : > { %2175 = vmatpush1.bf16.msra.mxu1 %v6348_v38 }
 0x2e1   : > { %2176 = vmatprep.subr.bf16.mxu1 %v6353_v39 }
 0x2e4   : > { %2177 = vmatpush1.bf16.msra.mxu1 %v6351_v41 }
 0x2e5   : > { %2178 = vmatprep.subr.bf16.mxu1 %v6356_v42 }
 0x2e8   : > { %2179 = vmatpush1.bf16.msra.mxu1 %v6354_v11 }
 0x2eb   : > { %2181 = vmatmul.mubr.bf16.vlgmr.msra.gmra.mrb[0].mxu1 %v7689_v60  ;;  %v6366_v60 = vld [vmem:[#allocation8 + $0x30] ss:$8 sps:$4 sm:$0xff]  }
 0x2ec   : > { %2190 = vmatprep.mubr.bf16.mxu1 %v1127_v44  ;;  %3288 = vmatpush1.bf16.msra.mxu0 %v6366_v60  ;;  %v6369_v44 = vld [vmem:[#allocation8 + $0x40] ss:$8 sps:$4 sm:$0xff]  }
 0x2ed   : > { %3289 = vmatprep.subr.bf16.mxu0 %v6371_v31 }
 0x2f0   : > { %3290 = vmatpush1.bf16.msra.mxu0 %v6369_v44 }
 0x2f1   : > { %3291 = vmatprep.subr.bf16.mxu0 %v6374_v28 }
 0x2f3   : > { %2191 = vmatmul.mubr.bf16.gmra.mrb[4].mxu1 %v1124_v8  ;;  %v6372_v8 = vld [vmem:[#allocation8 + $0x50] ss:$8 sps:$4 sm:$0xff]  }
 0x2f4   : > { %3292 = vmatpush1.bf16.msra.mxu0 %v6372_v8 }
 0x2f5   : > { %3293 = vmatprep.subr.bf16.mxu0 %v6377_v57 }
 0x2f8   : > { %3294 = vmatpush1.bf16.msra.mxu0 %v6375_v58 }
 0x2f9   : > { %3295 = vmatprep.subr.bf16.mxu0 %v6380_v61 }
 0x2fc   : > { %3296 = vmatpush1.bf16.msra.mxu0 %v6378_v63 }
 0x2fd   : > { %3297 = vmatprep.subr.bf16.mxu0 %v6383_v0 }
 0x300   : > { %3298 = vmatpush1.bf16.msra.mxu0 %v6381_v1 }
 0x301   : > { %3299 = vmatprep.subr.bf16.mxu0 %v6386_v2 }
 0x304   : > { %3300 = vmatpush1.bf16.msra.mxu0 %v6384_v3 }
 0x305   : > { %3301 = vmatprep.subr.bf16.mxu0 %v6389_v5  ;;  %v6405_v5 = vld [vmem:[#allocation8 + $0x100] ss:$8 sps:$4 sm:$0xff]  }
 0x308   : > { %3302 = vmatpush1.bf16.msra.mxu0 %v6387_v6 }
 0x309   : > { %3303 = vmatprep.subr.bf16.mxu0 %v6392_v7 }
 0x30c   : > { %3304 = vmatpush1.bf16.msra.mxu0 %v6390_v9  ;;  %v6410_v9 = vld [vmem:[#allocation8 + $0x114] ss:$8 sps:$4 sm:$0xff]  }
 0x30d   : > { %3305 = vmatprep.subr.bf16.mxu0 %v6395_v10 }
 0x310   : > { %3306 = vmatpush1.bf16.msra.mxu0 %v6393_v12 }
 0x311   : > { %3307 = vmatprep.subr.bf16.mxu0 %v6398_v13 }
 0x314   : > { %3308 = vmatpush1.bf16.msra.mxu0 %v6396_v14 }
 0x315   : > { %3309 = vmatprep.subr.bf16.mxu0 %v6401_v37 }
 0x318   : > { %3310 = vmatpush1.bf16.msra.mxu0 %v6399_v47 }
 0x319   : > { %3311 = vmatprep.subr.bf16.mxu0 %v6404_v53 }
 0x31c   : > { %3312 = vmatpush1.bf16.msra.mxu0 %v6402_v15 }
 0x31d   : > { %3332 = vmatprep.subr.bf16.mxu0 %v6407_v16  ;;  %v6408_v16 = vld [vmem:[#allocation8 + $0x110] ss:$8 sps:$4 sm:$0xff]  }
 0x373   : > { %v2029_v40 = vpop.f32.mrb[8].mxu0 }
 0x374   : > { %v2031_v43 = vpop.f32.mrb[9].mxu0  ;;  %v5814_v24 = vadd.f32 %v2029_v40, %v1137_v22 }
 0x375   : > { %v2033_v4 = vpop.f32.mrb[10].mxu0  ;;  %v5816_v25 = vadd.f32 %v2031_v43, %v1141_v55 }
 0x376   : > { %v2035_v59 = vpop.f32.mrb[11].mxu0  ;;  %v5818_v27 = vadd.f32 %v2033_v4, %v1137_v22 }
 0x377   : > { %v5820_v32 = vadd.f32 %v2035_v59, %v1141_v55  ;;  %v6413_v59 = vld [vmem:[#allocation8 + $0x124] ss:$8 sps:$4 sm:$0xff]  }
 0x37b   : > { %v2039_v17 = vpop.f32.mrb[12].mxu0 }
 0x37c   : > { %v2041_v18 = vpop.f32.mrb[13].mxu0  ;;  %v5822_v48 = vadd.f32 %v2039_v17, %v1137_v22 }
 0x37d   : > { %v2043_v19 = vpop.f32.mrb[14].mxu0  ;;  %v5824_v52 = vadd.f32 %v2041_v18, %v1141_v55 }
 0x37e   : > { %v2044_v21 = vpop.f32.mrb[15].mxu0 }
 0x3be   : > { %v2182_v26 = vpop.f32.mrb[0].mxu1 }
 0x3bf   : > { %v5815_v29 = vadd.f32 %v5814_v24, %v2182_v26  ;;  %v2184_v30 = vpop.f32.mrb[1].mxu1 }
 0x3c0   : > { %v5817_v34 = vadd.f32 %v5816_v25, %v2184_v30  ;;  %v2186_v36 = vpop.f32.mrb[2].mxu1  ;;  %v6411_v30 = vld [vmem:[#allocation8 + $0x120] ss:$8 sps:$4 sm:$0xff]  }
 0x3c1   : > { %v2199_v38 = vmax.f32 %v5815_v29, 0.0  ;;  %v5819_v39 = vadd.f32 %v5818_v27, %v2186_v36  ;;  %v2188_v41 = vpop.f32.mrb[3].mxu1 }
 0x3c2   : > { %v2200_v42 = vmax.f32 %v5817_v34, 0.0  ;;  %v5821_v11 = vadd.f32 %v5820_v32, %v2188_v41 }
 0x3c3   : > { %v2201_v45 = vmax.f32 %v5819_v39, 0.0  ;;  %v2205_v49 = vmul.f32 %v7616_v33, %v2199_v38 }
 0x3c4   : > { %v2202_v46 = vmax.f32 %v5821_v11, 0.0  ;;  %v2206_v54 = vmul.f32 %v7616_v33, %v2200_v42  ;;  %v6416_v11 = vld [vmem:[#allocation8 + $0x134] ss:$8 sps:$4 sm:$0xff]  }
 0x3c5   : > { %v2207_v51 = vmul.f32 %v7618_v35, %v2201_v45 }
 0x3c6   : > { %v2208_v60 = vmul.f32 %v7618_v35, %v2202_v46  ;;  %v2192_v31 = vpop.f32.mrb[4].mxu1 }
 0x3c7   : > { %v2211_v44 = vpack.c.bf16 %v2207_v51, %v2205_v49  ;;  %v5823_v28 = vadd.f32 %v5822_v48, %v2192_v31  ;;  %v2194_v8 = vpop.f32.mrb[5].mxu1  ;;  %v6414_v31 = vld [vmem:[#allocation8 + $0x130] ss:$8 sps:$4 sm:$0xff]  }
 0x3c8   : > { %v2212_v57 = vpack.c.bf16 %v2208_v60, %v2206_v54  ;;  %v5825_v58 = vadd.f32 %v5824_v52, %v2194_v8  ;;  %v2196_v61 = vpop.f32.mrb[6].mxu1 }
 0x3c9   : > { %v2380_v63 = vrot.slane %v2211_v44, 7  ;;  %v2203_v0 = vmax.f32 %v5823_v28, 0.0  ;;  %v2197_v1 = vpop.f32.mrb[7].mxu1 }
 0x3ca   : > { %v2381_v2 = vrot.slane %v2212_v57, 7  ;;  %v2204_v3 = vmax.f32 %v5825_v58, 0.0  ;;  %v6419_v58 = vld [vmem:[#allocation8 + $0x144] ss:$8 sps:$4 sm:$0xff]  }
 0x3cb   : > { %v2387_v6 = vsel %vm564_vm0, 0, %v2380_v63  ;;  %v2209_v7 = vmul.f32 %v7624_v50, %v2203_v0 }
 0x3cc   : > { %v2400_v10 = vshll.u32 %v2387_v6, 16  ;;  %v7727_v12 = vsel %vm564_vm0, 0, %v2381_v2  ;;  %v2210_v13 = vmul.f32 %v7624_v50, %v2204_v3  ;;  %5598 = vmatprep.mubr.msk.bf16.mxu0 %vm7627_vm10, %v2381_v2  ;;  %v2398_v14 = vshrl.u32 %v2387_v6, 16 }
 0x3cd   : > { %v2213_v37 = vpack.c.bf16 %v2209_v7, %v2209_v7  ;;  %5600 = vmatmul.mubr.msk.bf16.vlgmr.msra.gmra.mrb[16].mxu0 %vm7627_vm10, %v2380_v63  ;;  %v2408_v47 = vshrl.u32 %v7727_v12, 16  ;;  %v2410_v53 = vshll.u32 %v7727_v12, 16  ;;  %v2435_v43 = vrot.slane %v7727_v12, 1  ;;  %v6417_v7 = vld [vmem:[#allocation8 + $0x140] ss:$8 sps:$4 sm:$0xff]  }
 0x3ce   : > { %v2214_v15 = vpack.c.bf16 %v2210_v13, %v2210_v13  ;;  %3333 = vmatpush1.bf16.msra.mxu0 %v6405_v5  ;;  %v2402_v40 = vrot.slane %v2400_v10, 1  ;;  %v2432_v62 = vrot.slane %v2387_v6, 1  ;;  %v2442_v22 = vrot.slane %v2398_v14, 1  ;;  %v6420_v13 = vld [vmem:[#allocation8 + $0x150] ss:$8 sps:$4 sm:$0xff]  }
 0x3cf   : > { %v2382_v4 = vrot.slane %v2213_v37, 7  ;;  %3334 = vmatprep.subr.bf16.mxu0 %v6410_v9  ;;  %v2412_v17 = vrot.slane %v2410_v53, 1  ;;  %v2449_v18 = vrot.slane %v2408_v47, 1  ;;  %v2450_v19 = vrot.slane %v2410_v53, 2  ;;  %v6423_v37 = vld [vmem:[#allocation8 + $0x160] ss:$8 sps:$4 sm:$0xff]  }
 0x3d0   : > { %v2384_v21 = vrot.slane %v2214_v15, 7  ;;  %v2443_v55 = vrot.slane %v2400_v10, 2  ;;  %v2403_v26 = vor.u32 %v2402_v40, %v2398_v14  ;;  %v2460_v36 = vrot.slane %v2387_v6, 2  ;;  %v6422_v10 = vld [vmem:[#allocation8 + $0x154] ss:$8 sps:$4 sm:$0xff]  }
 0x3d1   : > { %v2383_v24 = vsel %vm564_vm0, %v2380_v63, %v2382_v4  ;;  %v2413_v25 = vor.u32 %v2412_v17, %v2408_v47  ;;  %v2451_v27 = vor.u32 %v2450_v19, %v2449_v18  ;;  %v2463_v0 = vrot.slane %v7727_v12, 2  ;;  %v6425_v14 = vld [vmem:[#allocation8 + $0x164] ss:$8 sps:$4 sm:$0xff]   ;;  %v6428_v47 = vld [vmem:[#allocation8 + $0x174] ss:$8 sps:$4 sm:$0xff]  }
 0x3d2   : > { %3335 = vmatpush1.bf16.msra.mxu0 %v6408_v16  ;;  %v2385_v29 = vsel %vm564_vm0, %v2381_v2, %v2384_v21  ;;  %v7740_v32 = vsel %vm572_vm1, %v2383_v24, 0  ;;  %v2444_v34 = vor.u32 %v2443_v55, %v2442_v22  ;;  %v6426_v53 = vld [vmem:[#allocation8 + $0x170] ss:$8 sps:$4 sm:$0xff]   ;;  %v6431_v15 = vld [vmem:[#allocation8 + $0x184] ss:$8 sps:$4 sm:$0xff]  }
 0x3d3   : > { %v7743_v38 = vsel %vm572_vm1, %v2385_v29, 0  ;;  %5601 = vmatprep.mubr.msk.bf16.mxu0 %vm572_vm1, %v2385_v29  ;;  %3336 = vmatprep.subr.bf16.mxu0 %v6413_v59  ;;  %v2404_v39 = vshll.u32 %v7740_v32, 16  ;;  %v2433_v41 = vrot.slane %v7740_v32, 1  ;;  %v2461_v42 = vrot.slane %v7740_v32, 2  ;;  %v6429_v16 = vld [vmem:[#allocation8 + $0x180] ss:$8 sps:$4 sm:$0xff]  }
 0x3d4   : > { %v2414_v45 = vshll.u32 %v7743_v38, 16  ;;  %v2421_v46 = vshrl.u32 %v7743_v38, 16  ;;  %v2418_v48 = vshrl.u32 %v7740_v32, 16  ;;  %v2436_v49 = vrot.slane %v7743_v38, 1  ;;  %v6434_v40 = vld [vmem:[#allocation8 + $0x194] ss:$8 sps:$4 sm:$0xff]  }
 0x3d5   : > { %v2446_v51 = vrot.slane %v2404_v39, 2  ;;  %5602 = vmatmul.mubr.msk.bf16.gmra.mrb[20].mxu0 %vm572_vm1, %v2383_v24  ;;  %v7754_v52 = vrot.slane %v2404_v39, 1  ;;  %v7759_v54 = vsel %vm595_vm2, %v2432_v62, %v2433_v41  ;;  %v7764_v60 = vsel %vm615_vm5, %v2460_v36, %v2461_v42  ;;  %v6437_v4 = vld [vmem:[#allocation8 + $0x1a4] ss:$8 sps:$4 sm:$0xff]   ;;  %v6435_v59 = vld [vmem:[#allocation8 + $0x1a0] ss:$8 sps:$4 sm:$0xff]  }
 0x3d6   : > { %3337 = vmatpush1.bf16.msra.mxu0 %v6411_v30  ;;  %v7766_v44 = vrot.slane %v2414_v45, 1  ;;  %v2452_v28 = vrot.slane %v2421_v46, 1  ;;  %v2445_v8 = vrot.slane %v2418_v48, 1  ;;  %v7775_v57 = vsel %vm595_vm2, %v2435_v43, %v2436_v49  ;;  %v6432_v43 = vld [vmem:[#allocation8 + $0x190] ss:$8 sps:$4 sm:$0xff]  }
 0x3d7   : > { %3338 = vmatprep.subr.bf16.mxu0 %v6416_v11  ;;  %v7779_v61 = vsel %vm575_vm3, %v2403_v26, %v7754_v52  ;;  %v2453_v63 = vrot.slane %v2414_v45, 2  ;;  %v2464_v1 = vrot.slane %v7743_v38, 2  ;;  %v6440_v17 = vld [vmem:[#allocation8 + $0x1b4] ss:$8 sps:$4 sm:$0xff]   ;;  %v6438_v18 = vld [vmem:[#allocation8 + $0x1b0] ss:$8 sps:$4 sm:$0xff]   ;;  %v2420_v45 = vor.u32 %v2418_v48, %v7754_v52 }
 0x3d8   : > { %v2417_v2 = vsel %vm575_vm3, %v2413_v25, %v7766_v44  ;;  %v7785_v3 = vor.u32 %v2446_v51, %v2445_v8  ;;  %v6443_v19 = vld [vmem:[#allocation8 + $0x1c4] ss:$8 sps:$4 sm:$0xff]   ;;  %v6441_v21 = vld [vmem:[#allocation8 + $0x1c0] ss:$8 sps:$4 sm:$0xff]   ;;  %v6446_v62 = vld [vmem:[#allocation8 + $0x1d4] ss:$8 sps:$4 sm:$0xff]  }
 0x3d9   : > { %3364 = vmatprep.mubr.bf16.mxu0 %v2417_v2  ;;  %v7787_v5 = vor.u32 %v2453_v63, %v2452_v28  ;;  %v7792_v6 = vsel %vm615_vm5, %v2463_v0, %v2464_v1  ;;  %v6444_v22 = vld [vmem:[#allocation8 + $0x1d0] ss:$8 sps:$4 sm:$0xff]   ;;  %v6449_v55 = vld [vmem:[#allocation8 + $0x1e4] ss:$8 sps:$4 sm:$0xff]   ;;  %v6447_v24 = vld [vmem:[#allocation8 + $0x1e0] ss:$8 sps:$4 sm:$0xff]  }
 0x3da   : > { %3339 = vmatpush1.bf16.msra.mxu0 %v6414_v31  ;;  %v7796_v9 = vsel %vm603_vm4, %v2444_v34, %v7785_v3  ;;  %v6452_v25 = vld [vmem:[#allocation8 + $0x1f4] ss:$8 sps:$4 sm:$0xff]   ;;  %v6450_v26 = vld [vmem:[#allocation8 + $0x1f0] ss:$8 sps:$4 sm:$0xff]   ;;  %v6453_v29 = vld [vmem:[#allocation8 + $0x200] ss:$8 sps:$4 sm:$0xff]   ;;  %v2423_v34 = vor.u32 %v2421_v46, %v7766_v44 }
 0x3db   : > { %3340 = vmatprep.subr.bf16.mxu0 %v6419_v58  ;;  %v7800_v12 = vsel %vm603_vm4, %v2451_v27, %v7787_v5  ;;  %v6455_v27 = vld [vmem:[#allocation8 + $0x204] ss:$8 sps:$4 sm:$0xff]   ;;  %v6458_v30 = vld [vmem:[#allocation8 + $0x214] ss:$8 sps:$4 sm:$0xff]   ;;  %v6456_v36 = vld [vmem:[#allocation8 + $0x210] ss:$8 sps:$4 sm:$0xff]  }
 0x3dc   : > { %v6461_v39 = vld [vmem:[#allocation8 + $0x224] ss:$8 sps:$4 sm:$0xff]   ;;  %v6459_v11 = vld [vmem:[#allocation8 + $0x220] ss:$8 sps:$4 sm:$0xff]   ;;  %v6464_v51 = vld [vmem:[#allocation8 + $0x234] ss:$8 sps:$4 sm:$0xff]  }
 0x3dd   : > { %v6462_v46 = vld [vmem:[#allocation8 + $0x230] ss:$8 sps:$4 sm:$0xff]   ;;  %v6467_v31 = vld [vmem:[#allocation8 + $0x244] ss:$8 sps:$4 sm:$0xff]   ;;  %v6465_v44 = vld [vmem:[#allocation8 + $0x240] ss:$8 sps:$4 sm:$0xff]  }
 0x3de   : > { %3341 = vmatpush1.bf16.msra.mxu0 %v6417_v7  ;;  %v6470_v28 = vld [vmem:[#allocation8 + $0x254] ss:$8 sps:$4 sm:$0xff]   ;;  %v6468_v8 = vld [vmem:[#allocation8 + $0x250] ss:$8 sps:$4 sm:$0xff]   ;;  %v6473_v58 = vld [vmem:[#allocation8 + $0x264] ss:$8 sps:$4 sm:$0xff]  }
 0x3df   : > { %3342 = vmatprep.subr.bf16.mxu0 %v6422_v10  ;;  %v6476_v48 = vld [vmem:[#allocation8 + $0x274] ss:$8 sps:$4 sm:$0xff]   ;;  %v6474_v52 = vld [vmem:[#allocation8 + $0x270] ss:$8 sps:$4 sm:$0xff]   ;;  %v6479_v63 = vld [vmem:[#allocation8 + $0x284] ss:$8 sps:$4 sm:$0xff]  }
 0x3e0   : > { %v6482_v0 = vld [vmem:[#allocation8 + $0x294] ss:$8 sps:$4 sm:$0xff]   ;;  %v6480_v2 = vld [vmem:[#allocation8 + $0x290] ss:$8 sps:$4 sm:$0xff]   ;;  %v6485_v7 = vld [vmem:[#allocation8 + $0x2a4] ss:$8 sps:$4 sm:$0xff]  }
 0x3e1   : > { %v6483_v10 = vld [vmem:[#allocation8 + $0x2a0] ss:$8 sps:$4 sm:$0xff]   ;;  %v2375_v38 = vld [vmem:[%s8077_s28] sm:$0x3]  ;;  %s5078_s28 = sshll.u32 %s491_s23, 4  ;;  %s7951_s28 = int_to_ptr.vmem [resolvable:$true] %s5078_s28 }
 0x3e2   : > { %3343 = vmatpush1.bf16.msra.mxu0 %v6420_v13  ;;  %v6488_v13 = vld [vmem:[#allocation8 + $0x2b4] ss:$8 sps:$4 sm:$0xff]   ;;  %v2474_v32 = vrot.slane %v2375_v38, %v7607_v20  ;;  %s7027_s3 = scalar_lea.vmem %s7951_s28, 128 }
 0x3e3   : > { %3344 = vmatprep.subr.bf16.mxu0 %v6425_v14  ;;  %v6486_v14 = vld [vmem:[#allocation8 + $0x2b0] ss:$8 sps:$4 sm:$0xff]   ;;  %p7028_p5 = scmp.ne.s32.totalorder %s7951_s28, %s7027_s3 }
 0x3e5   : > { %p7029_p6 = pnand %p7028_p5, %p8082_p1 }
 0x3e6   : > { %3345 = vmatpush1.bf16.msra.mxu0 %v6423_v37  ;;  %v6491_v37 = vld [vmem:[#allocation8 + $0x2c4] ss:$8 sps:$4 sm:$0xff]  }
 0x3e7   : > { %3346 = vmatprep.subr.bf16.mxu0 %v6428_v47  ;;  %v6489_v47 = vld [vmem:[#allocation8 + $0x2c0] ss:$8 sps:$4 sm:$0xff]   ;;  %p7030_p9 = pneg %p7029_p6 }
 0x3ea   : > { %3347 = vmatpush1.bf16.msra.mxu0 %v6426_v53  ;;  %v6494_v53 = vld [vmem:[#allocation8 + $0x2d4] ss:$8 sps:$4 sm:$0xff]  }
 0x3eb   : > { %3348 = vmatprep.subr.bf16.mxu0 %v6431_v15  ;;  %v6492_v15 = vld [vmem:[#allocation8 + $0x2d0] ss:$8 sps:$4 sm:$0xff]  }
 0x3ee   : > { %3349 = vmatpush1.bf16.msra.mxu0 %v6429_v16  ;;  %v6497_v16 = vld [vmem:[#allocation8 + $0x2e4] ss:$8 sps:$4 sm:$0xff]  }
 0x3ef   : > { %3350 = vmatprep.subr.bf16.mxu0 %v6434_v40  ;;  %v6495_v40 = vld [vmem:[#allocation8 + $0x2e0] ss:$8 sps:$4 sm:$0xff]  }
 0x3f2   : > { %3351 = vmatpush1.bf16.msra.mxu0 %v6432_v43  ;;  %v6500_v43 = vld [vmem:[#allocation8 + $0x2f4] ss:$8 sps:$4 sm:$0xff]  }
 0x3f3   : > { %3352 = vmatprep.subr.bf16.mxu0 %v6437_v4  ;;  %v6498_v4 = vld [vmem:[#allocation8 + $0x2f0] ss:$8 sps:$4 sm:$0xff]  }
 0x3f6   : > { %3353 = vmatpush1.bf16.msra.mxu0 %v6435_v59  ;;  %v6503_v59 = vld [vmem:[#allocation8 + $0x304] ss:$8 sps:$4 sm:$0xff]  }
 0x3f7   : > { %3354 = vmatprep.subr.bf16.mxu0 %v6440_v17  ;;  %v6501_v17 = vld [vmem:[#allocation8 + $0x300] ss:$8 sps:$4 sm:$0xff]  }
 0x3fa   : > { %3355 = vmatpush1.bf16.msra.mxu0 %v6438_v18  ;;  %v6506_v18 = vld [vmem:[#allocation8 + $0x314] ss:$8 sps:$4 sm:$0xff]  }
 0x3fb   : > { %3356 = vmatprep.subr.bf16.mxu0 %v6443_v19  ;;  %v6504_v19 = vld [vmem:[#allocation8 + $0x310] ss:$8 sps:$4 sm:$0xff]  }
 0x3fe   : > { %3357 = vmatpush1.bf16.msra.mxu0 %v6441_v21  ;;  %v6509_v21 = vld [vmem:[#allocation8 + $0x324] ss:$8 sps:$4 sm:$0xff]  }
 0x3ff   : > { %3358 = vmatprep.subr.bf16.mxu0 %v6446_v62  ;;  %v6507_v62 = vld [vmem:[#allocation8 + $0x320] ss:$8 sps:$4 sm:$0xff]  }
 0x402   : > { %3359 = vmatpush1.bf16.msra.mxu0 %v6444_v22  ;;  %v6512_v22 = vld [vmem:[#allocation8 + $0x334] ss:$8 sps:$4 sm:$0xff]  }
 0x403   : > { %3360 = vmatprep.subr.bf16.mxu0 %v6449_v55  ;;  %v6597_v55 = vld [vmem:[#allocation10] ss:$8 sps:$4 sm:$0xff]  }
 0x406   : > { %3361 = vmatpush1.bf16.msra.mxu0 %v6447_v24  ;;  %v6599_v24 = vld [vmem:[#allocation10 + $0x4] ss:$8 sps:$4 sm:$0xff]  }
 0x407   : > { %3362 = vmatprep.subr.bf16.mxu0 %v6452_v25  ;;  %v6602_v25 = vld [vmem:[#allocation10 + $0x14] ss:$8 sps:$4 sm:$0xff]   ;;  %4618 = vmatprep.subr.bf16.mxu1 %v6599_v24  ;;  %v6546_v24 = vld [vmem:[#allocation8 + $0x3f0] ss:$8 sps:$4 sm:$0xff]  }
 0x408   : > { %4619 = vmatpush1.bf16.msra.mxu1 %v6597_v55  ;;  %v6633_v55 = vld [vmem:[#allocation10 + $0xc0] ss:$8 sps:$4 sm:$0xff]  }
 0x409   : > { %4620 = vmatprep.subr.bf16.mxu1 %v6602_v25  ;;  %v6549_v25 = vld [vmem:[#allocation8 + $0x400] ss:$8 sps:$4 sm:$0xff]  }
 0x40a   : > { %3363 = vmatpush1.bf16.msra.mxu0 %v6450_v26  ;;  %v6600_v26 = vld [vmem:[#allocation10 + $0x10] ss:$8 sps:$4 sm:$0xff]  }
 0x40b   : > { %3383 = vmatprep.subr.bf16.mxu0 %v6455_v27  ;;  %v6605_v27 = vld [vmem:[#allocation10 + $0x24] ss:$8 sps:$4 sm:$0xff]  }
 0x40c   : > { %4621 = vmatpush1.bf16.msra.mxu1 %v6600_v26  ;;  %v6552_v26 = vld [vmem:[#allocation8 + $0x410] ss:$8 sps:$4 sm:$0xff]  }
 0x40d   : > { %3365 = vmatmul.mubr.bf16.vlgmr.msra.gmra.mrb[16].mxu0 %v7779_v61  ;;  %v6471_v61 = vld [vmem:[#allocation8 + $0x260] ss:$8 sps:$4 sm:$0xff]   ;;  %4622 = vmatprep.subr.bf16.mxu1 %v6605_v27  ;;  %v6557_v27 = vld [vmem:[#allocation8 + $0x424] ss:$8 sps:$4 sm:$0xff]  }
 0x40e   : > { %3374 = vmatprep.mubr.bf16.mxu0 %v2423_v34  ;;  %3384 = vmatpush1.bf16.msra.mxu0 %v6453_v29  ;;  %v6513_v29 = vld [vmem:[#allocation8 + $0x340] ss:$8 sps:$4 sm:$0xff]   ;;  %v6608_v34 = vld [vmem:[#allocation10 + $0x34] ss:$8 sps:$4 sm:$0xff]  }
 0x40f   : > { %3385 = vmatprep.subr.bf16.mxu0 %v6458_v30  ;;  %v6518_v30 = vld [vmem:[#allocation8 + $0x354] ss:$8 sps:$4 sm:$0xff]  }
 0x412   : > { %3386 = vmatpush1.bf16.msra.mxu0 %v6456_v36  ;;  %v6516_v36 = vld [vmem:[#allocation8 + $0x350] ss:$8 sps:$4 sm:$0xff]  }
 0x413   : > { %3387 = vmatprep.subr.bf16.mxu0 %v6461_v39  ;;  %v6606_v39 = vld [vmem:[#allocation10 + $0x30] ss:$8 sps:$4 sm:$0xff]  }
 0x415   : > { %3375 = vmatmul.mubr.bf16.gmra.mrb[20].mxu0 %v2420_v45  ;;  %v6519_v45 = vld [vmem:[#allocation8 + $0x360] ss:$8 sps:$4 sm:$0xff]  }
 0x416   : > { %3388 = vmatpush1.bf16.msra.mxu0 %v6459_v11  ;;  %3415 = vmatprep.mubr.bf16.mxu0 %v7775_v57  ;;  %v6477_v57 = vld [vmem:[#allocation8 + $0x280] ss:$8 sps:$4 sm:$0xff]   ;;  %v6611_v11 = vld [vmem:[#allocation10 + $0x44] ss:$8 sps:$4 sm:$0xff]  }
 0x417   : > { %3389 = vmatprep.subr.bf16.mxu0 %v6464_v51  ;;  %v6524_v51 = vld [vmem:[#allocation8 + $0x374] ss:$8 sps:$4 sm:$0xff]  }
 0x41a   : > { %3390 = vmatpush1.bf16.msra.mxu0 %v6462_v46  ;;  %v6609_v46 = vld [vmem:[#allocation10 + $0x40] ss:$8 sps:$4 sm:$0xff]  }
 0x41b   : > { %3391 = vmatprep.subr.bf16.mxu0 %v6467_v31  ;;  %v6614_v31 = vld [vmem:[#allocation10 + $0x54] ss:$8 sps:$4 sm:$0xff]  }
 0x41e   : > { %3392 = vmatpush1.bf16.msra.mxu0 %v6465_v44  ;;  %v6522_v44 = vld [vmem:[#allocation8 + $0x370] ss:$8 sps:$4 sm:$0xff]  }
 0x41f   : > { %3393 = vmatprep.subr.bf16.mxu0 %v6470_v28  ;;  %v6527_v28 = vld [vmem:[#allocation8 + $0x384] ss:$8 sps:$4 sm:$0xff]  }
 0x422   : > { %3394 = vmatpush1.bf16.msra.mxu0 %v6468_v8  ;;  %v6612_v8 = vld [vmem:[#allocation10 + $0x50] ss:$8 sps:$4 sm:$0xff]  }
 0x423   : > { %3395 = vmatprep.subr.bf16.mxu0 %v6473_v58  ;;  %v6617_v58 = vld [vmem:[#allocation10 + $0x64] ss:$8 sps:$4 sm:$0xff]  }
 0x426   : > { %3396 = vmatpush1.bf16.msra.mxu0 %v6471_v61  ;;  %v6525_v61 = vld [vmem:[#allocation8 + $0x380] ss:$8 sps:$4 sm:$0xff]  }
 0x427   : > { %3397 = vmatprep.subr.bf16.mxu0 %v6476_v48  ;;  %v6530_v48 = vld [vmem:[#allocation8 + $0x394] ss:$8 sps:$4 sm:$0xff]  }
 0x42a   : > { %3398 = vmatpush1.bf16.msra.mxu0 %v6474_v52  ;;  %v6615_v52 = vld [vmem:[#allocation10 + $0x60] ss:$8 sps:$4 sm:$0xff]  }
 0x42b   : > { %3399 = vmatprep.subr.bf16.mxu0 %v6479_v63  ;;  %v6620_v63 = vld [vmem:[#allocation10 + $0x74] ss:$8 sps:$4 sm:$0xff]  }
 0x42e   : > { %3400 = vmatpush1.bf16.msra.mxu0 %v6477_v57  ;;  %v6528_v57 = vld [vmem:[#allocation8 + $0x390] ss:$8 sps:$4 sm:$0xff]  }
 0x42f   : > { %3401 = vmatprep.subr.bf16.mxu0 %v6482_v0  ;;  %v6533_v0 = vld [vmem:[#allocation8 + $0x3a4] ss:$8 sps:$4 sm:$0xff]  }
 0x432   : > { %3402 = vmatpush1.bf16.msra.mxu0 %v6480_v2  ;;  %v6618_v2 = vld [vmem:[#allocation10 + $0x70] ss:$8 sps:$4 sm:$0xff]  }
 0x433   : > { %3403 = vmatprep.subr.bf16.mxu0 %v6485_v7  ;;  %v6623_v7 = vld [vmem:[#allocation10 + $0x84] ss:$8 sps:$4 sm:$0xff]  }
 0x436   : > { %3404 = vmatpush1.bf16.msra.mxu0 %v6483_v10  ;;  %v6531_v10 = vld [vmem:[#allocation8 + $0x3a0] ss:$8 sps:$4 sm:$0xff]  }
 0x437   : > { %3405 = vmatprep.subr.bf16.mxu0 %v6488_v13  ;;  %v6536_v13 = vld [vmem:[#allocation8 + $0x3b4] ss:$8 sps:$4 sm:$0xff]  }
 0x43a   : > { %3406 = vmatpush1.bf16.msra.mxu0 %v6486_v14  ;;  %v6621_v14 = vld [vmem:[#allocation10 + $0x80] ss:$8 sps:$4 sm:$0xff]  }
 0x43b   : > { %3407 = vmatprep.subr.bf16.mxu0 %v6491_v37  ;;  %v6626_v37 = vld [vmem:[#allocation10 + $0x94] ss:$8 sps:$4 sm:$0xff]  }
 0x43e   : > { %3408 = vmatpush1.bf16.msra.mxu0 %v6489_v47  ;;  %v6534_v47 = vld [vmem:[#allocation8 + $0x3b0] ss:$8 sps:$4 sm:$0xff]  }
 0x43f   : > { %3409 = vmatprep.subr.bf16.mxu0 %v6494_v53  ;;  %v6539_v53 = vld [vmem:[#allocation8 + $0x3c4] ss:$8 sps:$4 sm:$0xff]  }
 0x442   : > { %3410 = vmatpush1.bf16.msra.mxu0 %v6492_v15  ;;  %v6624_v15 = vld [vmem:[#allocation10 + $0x90] ss:$8 sps:$4 sm:$0xff]  }
 0x443   : > { %3411 = vmatprep.subr.bf16.mxu0 %v6497_v16  ;;  %v6629_v16 = vld [vmem:[#allocation10 + $0xa4] ss:$8 sps:$4 sm:$0xff]  }
 0x446   : > { %3412 = vmatpush1.bf16.msra.mxu0 %v6495_v40  ;;  %v6537_v40 = vld [vmem:[#allocation8 + $0x3c0] ss:$8 sps:$4 sm:$0xff]  }
 0x447   : > { %3413 = vmatprep.subr.bf16.mxu0 %v6500_v43  ;;  %v6542_v43 = vld [vmem:[#allocation8 + $0x3d4] ss:$8 sps:$4 sm:$0xff]  }
 0x44a   : > { %3414 = vmatpush1.bf16.msra.mxu0 %v6498_v4  ;;  %v6627_v4 = vld [vmem:[#allocation10 + $0xa0] ss:$8 sps:$4 sm:$0xff]  }
 0x44b   : > { %3434 = vmatprep.subr.bf16.mxu0 %v6503_v59  ;;  %v6632_v59 = vld [vmem:[#allocation10 + $0xb4] ss:$8 sps:$4 sm:$0xff]  }
 0x44d   : > { %3416 = vmatmul.mubr.bf16.vlgmr.msra.gmra.mrb[16].mxu0 %v7759_v54  ;;  %v6510_v54 = vld [vmem:[#allocation8 + $0x330] ss:$8 sps:$4 sm:$0xff]  }
 0x44e   : > { %3425 = vmatprep.mubr.bf16.mxu0 %v2436_v49  ;;  %3435 = vmatpush1.bf16.msra.mxu0 %v6501_v17  ;;  %v6515_v49 = vld [vmem:[#allocation8 + $0x344] ss:$8 sps:$4 sm:$0xff]   ;;  %v6540_v17 = vld [vmem:[#allocation8 + $0x3d0] ss:$8 sps:$4 sm:$0xff]  }
 0x44f   : > { %3436 = vmatprep.subr.bf16.mxu0 %v6506_v18  ;;  %v6545_v18 = vld [vmem:[#allocation8 + $0x3e4] ss:$8 sps:$4 sm:$0xff]  }
 0x452   : > { %3437 = vmatpush1.bf16.msra.mxu0 %v6504_v19  ;;  %v6630_v19 = vld [vmem:[#allocation10 + $0xb0] ss:$8 sps:$4 sm:$0xff]  }
 0x453   : > { %3438 = vmatprep.subr.bf16.mxu0 %v6509_v21  ;;  %v6635_v21 = vld [vmem:[#allocation10 + $0xc4] ss:$8 sps:$4 sm:$0xff]  }
 0x455   : > { %3426 = vmatmul.mubr.bf16.gmra.mrb[20].mxu0 %v2433_v41  ;;  %v6603_v41 = vld [vmem:[#allocation10 + $0x20] ss:$8 sps:$4 sm:$0xff]  }
 0x456   : > { %3439 = vmatpush1.bf16.msra.mxu0 %v6507_v62  ;;  %3466 = vmatprep.mubr.bf16.mxu0 %v7800_v12  ;;  %v6521_v12 = vld [vmem:[#allocation8 + $0x364] ss:$8 sps:$4 sm:$0xff]   ;;  %v6543_v62 = vld [vmem:[#allocation8 + $0x3e0] ss:$8 sps:$4 sm:$0xff]  }
 0x457   : > { %3440 = vmatprep.subr.bf16.mxu0 %v6512_v22  ;;  %4623 = vmatpush1.bf16.msra.mxu1 %v6603_v41  ;;  %v6548_v22 = vld [vmem:[#allocation8 + $0x3f4] ss:$8 sps:$4 sm:$0xff]   ;;  %v6558_v41 = vld [vmem:[#allocation8 + $0x430] ss:$8 sps:$4 sm:$0xff]  }
 0x458   : > { %4624 = vmatprep.subr.bf16.mxu1 %v6608_v34  ;;  %v6563_v34 = vld [vmem:[#allocation8 + $0x444] ss:$8 sps:$4 sm:$0xff]  }
 0x45a   : > { %3441 = vmatpush1.bf16.msra.mxu0 %v6510_v54  ;;  %v6551_v54 = vld [vmem:[#allocation8 + $0x404] ss:$8 sps:$4 sm:$0xff]  }
 0x45b   : > { %3442 = vmatprep.subr.bf16.mxu0 %v6515_v49  ;;  %4625 = vmatpush1.bf16.msra.mxu1 %v6606_v39  ;;  %v6554_v49 = vld [vmem:[#allocation8 + $0x414] ss:$8 sps:$4 sm:$0xff]   ;;  %v6567_v39 = vld [vmem:[#allocation8 + $0x460] ss:$8 sps:$4 sm:$0xff]  }
 0x45c   : > { %4626 = vmatprep.subr.bf16.mxu1 %v6611_v11  ;;  %v6572_v11 = vld [vmem:[#allocation8 + $0x474] ss:$8 sps:$4 sm:$0xff]  }
 0x45e   : > { %3443 = vmatpush1.bf16.msra.mxu0 %v6513_v29  ;;  %v6555_v29 = vld [vmem:[#allocation8 + $0x420] ss:$8 sps:$4 sm:$0xff]  }
 0x45f   : > { %3444 = vmatprep.subr.bf16.mxu0 %v6518_v30  ;;  %4627 = vmatpush1.bf16.msra.mxu1 %v6609_v46  ;;  %v6560_v30 = vld [vmem:[#allocation8 + $0x434] ss:$8 sps:$4 sm:$0xff]   ;;  %v6576_v46 = vld [vmem:[#allocation8 + $0x490] ss:$8 sps:$4 sm:$0xff]  }
 0x460   : > { %4628 = vmatprep.subr.bf16.mxu1 %v6614_v31  ;;  %v6581_v31 = vld [vmem:[#allocation8 + $0x4a4] ss:$8 sps:$4 sm:$0xff]  }
 0x462   : > { %3445 = vmatpush1.bf16.msra.mxu0 %v6516_v36  ;;  %v6564_v36 = vld [vmem:[#allocation8 + $0x450] ss:$8 sps:$4 sm:$0xff]  }
 0x463   : > { %3446 = vmatprep.subr.bf16.mxu0 %v6521_v12  ;;  %4629 = vmatpush1.bf16.msra.mxu1 %v6612_v8  ;;  %v6569_v12 = vld [vmem:[#allocation8 + $0x464] ss:$8 sps:$4 sm:$0xff]   ;;  %v6582_v8 = vld [vmem:[#allocation8 + $0x4b0] ss:$8 sps:$4 sm:$0xff]  }
 0x464   : > { %4630 = vmatprep.subr.bf16.mxu1 %v6617_v58  ;;  %v6587_v58 = vld [vmem:[#allocation8 + $0x4c4] ss:$8 sps:$4 sm:$0xff]  }
 0x466   : > { %3447 = vmatpush1.bf16.msra.mxu0 %v6519_v45  ;;  %v6575_v45 = vld [vmem:[#allocation8 + $0x484] ss:$8 sps:$4 sm:$0xff]  }
 0x467   : > { %3448 = vmatprep.subr.bf16.mxu0 %v6524_v51  ;;  %4631 = vmatpush1.bf16.msra.mxu1 %v6615_v52  ;;  %v6578_v51 = vld [vmem:[#allocation8 + $0x494] ss:$8 sps:$4 sm:$0xff]   ;;  %v6588_v52 = vld [vmem:[#allocation8 + $0x4d0] ss:$8 sps:$4 sm:$0xff]  }
 0x468   : > { %4632 = vmatprep.subr.bf16.mxu1 %v6620_v63  ;;  %v6593_v63 = vld [vmem:[#allocation8 + $0x4e4] ss:$8 sps:$4 sm:$0xff]  }
 0x46a   : > { %3449 = vmatpush1.bf16.msra.mxu0 %v6522_v44  ;;  %v6579_v44 = vld [vmem:[#allocation8 + $0x4a0] ss:$8 sps:$4 sm:$0xff]  }
 0x46b   : > { %3450 = vmatprep.subr.bf16.mxu0 %v6527_v28  ;;  %4633 = vmatpush1.bf16.msra.mxu1 %v6618_v2  ;;  %v6584_v28 = vld [vmem:[#allocation8 + $0x4b4] ss:$8 sps:$4 sm:$0xff]   ;;  %v6594_v2 = vld [vmem:[#allocation8 + $0x4f0] ss:$8 sps:$4 sm:$0xff]  }
 0x46c   : > { %4634 = vmatprep.subr.bf16.mxu1 %v6623_v7  ;;  %v6638_v7 = vld [vmem:[#allocation10 + $0xd4] ss:$8 sps:$4 sm:$0xff]  }
 0x46e   : > { %3451 = vmatpush1.bf16.msra.mxu0 %v6525_v61  ;;  %v6585_v61 = vld [vmem:[#allocation8 + $0x4c0] ss:$8 sps:$4 sm:$0xff]  }
 0x46f   : > { %3452 = vmatprep.subr.bf16.mxu0 %v6530_v48  ;;  %4635 = vmatpush1.bf16.msra.mxu1 %v6621_v14  ;;  %v6590_v48 = vld [vmem:[#allocation8 + $0x4d4] ss:$8 sps:$4 sm:$0xff]   ;;  %v6639_v14 = vld [vmem:[#allocation10 + $0xe0] ss:$8 sps:$4 sm:$0xff]  }
 0x470   : > { %4636 = vmatprep.subr.bf16.mxu1 %v6626_v37  ;;  %v6644_v37 = vld [vmem:[#allocation10 + $0xf4] ss:$8 sps:$4 sm:$0xff]  }
 0x472   : > { %3453 = vmatpush1.bf16.msra.mxu0 %v6528_v57  ;;  %v6591_v57 = vld [vmem:[#allocation8 + $0x4e0] ss:$8 sps:$4 sm:$0xff]  }
 0x473   : > { %3454 = vmatprep.subr.bf16.mxu0 %v6533_v0  ;;  %4637 = vmatpush1.bf16.msra.mxu1 %v6624_v15  ;;  %v6596_v0 = vld [vmem:[#allocation8 + $0x4f4] ss:$8 sps:$4 sm:$0xff]  }
 0x474   : > { %4638 = vmatprep.subr.bf16.mxu1 %v6629_v16 }
 0x476   : > { %3455 = vmatpush1.bf16.msra.mxu0 %v6531_v10  ;;  %v6636_v10 = vld [vmem:[#allocation10 + $0xd0] ss:$8 sps:$4 sm:$0xff]  }
 0x477   : > { %3456 = vmatprep.subr.bf16.mxu0 %v6536_v13  ;;  %4639 = vmatpush1.bf16.msra.mxu1 %v6627_v4  ;;  %v6641_v13 = vld [vmem:[#allocation10 + $0xe4] ss:$8 sps:$4 sm:$0xff]  }
 0x478   : > { %4640 = vmatprep.subr.bf16.mxu1 %v6632_v59 }
 0x47a   : > { %3457 = vmatpush1.bf16.msra.mxu0 %v6534_v47  ;;  %v6642_v47 = vld [vmem:[#allocation10 + $0xf0] ss:$8 sps:$4 sm:$0xff]  }
 0x47b   : > { %3458 = vmatprep.subr.bf16.mxu0 %v6539_v53  ;;  %4641 = vmatpush1.bf16.msra.mxu1 %v6630_v19  ;;  %v6647_v53 = vld [vmem:[#allocation10 + $0x104] ss:$8 sps:$4 sm:$0xff]  }
 0x47c   : > { %4642 = vmatprep.subr.bf16.mxu1 %v6635_v21 }
 0x47e   : > { %3459 = vmatpush1.bf16.msra.mxu0 %v6537_v40 }
 0x47f   : > { %3460 = vmatprep.subr.bf16.mxu0 %v6542_v43  ;;  %4643 = vmatpush1.bf16.msra.mxu1 %v6633_v55 }
 0x480   : > { %4644 = vmatprep.subr.bf16.mxu1 %v6638_v7 }
 0x482   : > { %3461 = vmatpush1.bf16.msra.mxu0 %v6540_v17 }
 0x483   : > { %3462 = vmatprep.subr.bf16.mxu0 %v6545_v18  ;;  %4645 = vmatpush1.bf16.msra.mxu1 %v6636_v10 }
 0x484   : > { %4646 = vmatprep.subr.bf16.mxu1 %v6641_v13 }
 0x486   : > { %3463 = vmatpush1.bf16.msra.mxu0 %v6543_v62 }
 0x487   : > { %3464 = vmatprep.subr.bf16.mxu0 %v6548_v22  ;;  %4647 = vmatpush1.bf16.msra.mxu1 %v6639_v14 }
 0x488   : > { %4648 = vmatprep.subr.bf16.mxu1 %v6644_v37 }
 0x48a   : > { %3465 = vmatpush1.bf16.msra.mxu0 %v6546_v24 }
 0x48b   : > { %3485 = vmatprep.subr.bf16.mxu0 %v6551_v54  ;;  %4649 = vmatpush1.bf16.msra.mxu1 %v6642_v47  ;;  %v6651_v47 = vld [vmem:[#allocation10 + $0x120] ss:$8 sps:$4 sm:$0xff]  }
 0x48c   : > { %4667 = vmatprep.subr.bf16.mxu1 %v6647_v53 }
 0x48d   : > { %3467 = vmatmul.mubr.bf16.vlgmr.msra.gmra.mrb[16].mxu0 %v7796_v9  ;;  %v6561_v9 = vld [vmem:[#allocation8 + $0x440] ss:$8 sps:$4 sm:$0xff]  }
 0x48e   : > { %3476 = vmatprep.mubr.bf16.mxu0 %v7787_v5  ;;  %3486 = vmatpush1.bf16.msra.mxu0 %v6549_v25  ;;  %v6566_v5 = vld [vmem:[#allocation8 + $0x454] ss:$8 sps:$4 sm:$0xff]  }
 0x48f   : > { %3487 = vmatprep.subr.bf16.mxu0 %v6554_v49 }
 0x492   : > { %3488 = vmatpush1.bf16.msra.mxu0 %v6552_v26 }
 0x493   : > { %3489 = vmatprep.subr.bf16.mxu0 %v6557_v27 }
 0x495   : > { %3477 = vmatmul.mubr.bf16.gmra.mrb[20].mxu0 %v7785_v3  ;;  %v6570_v3 = vld [vmem:[#allocation8 + $0x470] ss:$8 sps:$4 sm:$0xff]  }
 0x496   : > { %3490 = vmatpush1.bf16.msra.mxu0 %v6555_v29  ;;  %3517 = vmatprep.mubr.bf16.mxu0 %v7792_v6  ;;  %v6573_v6 = vld [vmem:[#allocation8 + $0x480] ss:$8 sps:$4 sm:$0xff]  }
 0x497   : > { %3491 = vmatprep.subr.bf16.mxu0 %v6560_v30 }
 0x49a   : > { %3492 = vmatpush1.bf16.msra.mxu0 %v6558_v41 }
 0x49b   : > { %3493 = vmatprep.subr.bf16.mxu0 %v6563_v34 }
 0x49e   : > { %3494 = vmatpush1.bf16.msra.mxu0 %v6561_v9 }
 0x49f   : > { %3495 = vmatprep.subr.bf16.mxu0 %v6566_v5 }
 0x4a2   : > { %3496 = vmatpush1.bf16.msra.mxu0 %v6564_v36 }
 0x4a3   : > { %3497 = vmatprep.subr.bf16.mxu0 %v6569_v12  ;;  %v6645_v12 = vld [vmem:[#allocation10 + $0x100] ss:$8 sps:$4 sm:$0xff]  }
 0x4a6   : > { %3498 = vmatpush1.bf16.msra.mxu0 %v6567_v39 }
 0x4a7   : > { %3499 = vmatprep.subr.bf16.mxu0 %v6572_v11 }
 0x4aa   : > { %3500 = vmatpush1.bf16.msra.mxu0 %v6570_v3 }
 0x4ab   : > { %3501 = vmatprep.subr.bf16.mxu0 %v6575_v45 }
 0x4ae   : > { %3502 = vmatpush1.bf16.msra.mxu0 %v6573_v6 }
 0x4af   : > { %3503 = vmatprep.subr.bf16.mxu0 %v6578_v51 }
 0x4b2   : > { %3504 = vmatpush1.bf16.msra.mxu0 %v6576_v46 }
 0x4b3   : > { %3505 = vmatprep.subr.bf16.mxu0 %v6581_v31 }
 0x4b6   : > { %3506 = vmatpush1.bf16.msra.mxu0 %v6579_v44 }
 0x4b7   : > { %3507 = vmatprep.subr.bf16.mxu0 %v6584_v28  ;;  %v6648_v28 = vld [vmem:[#allocation10 + $0x110] ss:$8 sps:$4 sm:$0xff]  }
 0x4ba   : > { %3508 = vmatpush1.bf16.msra.mxu0 %v6582_v8 }
 0x4bb   : > { %3509 = vmatprep.subr.bf16.mxu0 %v6587_v58 }
 0x4be   : > { %3510 = vmatpush1.bf16.msra.mxu0 %v6585_v61 }
 0x4bf   : > { %3511 = vmatprep.subr.bf16.mxu0 %v6590_v48 }
 0x4c2   : > { %3512 = vmatpush1.bf16.msra.mxu0 %v6588_v52 }
 0x4c3   : > { %3513 = vmatprep.subr.bf16.mxu0 %v6593_v63 }
 0x4c6   : > { %3514 = vmatpush1.bf16.msra.mxu0 %v6591_v57 }
 0x4c7   : > { %3515 = vmatprep.subr.bf16.mxu0 %v6596_v0 }
 0x4ca   : > { %3516 = vmatpush1.bf16.msra.mxu0 %v6594_v2 }
 0x4cd   : > { %3518 = vmatmul.mubr.bf16.vlgmr.msra.gmra.mrb[16].mxu0 %v7764_v60 }
 0x4ce   : > { %3527 = vmatprep.mubr.bf16.mxu0 %v2464_v1 }
 0x4d5   : > { %3528 = vmatmul.mubr.bf16.gmra.mrb[20].mxu0 %v2461_v42  ;;  %v2478_v42 = vrot.slane %v2375_v38, %v7612_v23 }
 0x5a0   : > { %v3519_v60 = vpop.f32.mrb[16].mxu0 }
 0x5a1   : > { %v5826_v1 = vadd.f32 %v3519_v60, %v2474_v32  ;;  %v3521_v15 = vpop.f32.mrb[17].mxu0 }
 0x5a2   : > { %v5827_v16 = vadd.f32 %v3521_v15, %v2478_v42  ;;  %v3523_v40 = vpop.f32.mrb[18].mxu0 }
 0x5a3   : > { %v3536_v43 = vmax.f32 %v5826_v1, 0.0  ;;  %v5828_v4 = vadd.f32 %v3523_v40, %v2474_v32  ;;  %v3525_v59 = vpop.f32.mrb[19].mxu0 }
 0x5a4   : > { %v3537_v17 = vmax.f32 %v5827_v16, 0.0  ;;  %v5829_v18 = vadd.f32 %v3525_v59, %v2478_v42  ;;  %v6656_v16 = vld [vmem:[#allocation10 + $0x134] ss:$8 sps:$4 sm:$0xff]  }
 0x5a5   : > { %v3538_v19 = vmax.f32 %v5828_v4, 0.0  ;;  %v3542_v62 = vmul.f32 %v7616_v33, %v3536_v43 }
 0x5a6   : > { %v3539_v21 = vmax.f32 %v5829_v18, 0.0  ;;  %v3543_v55 = vmul.f32 %v7616_v33, %v3537_v17  ;;  %v6650_v33 = vld [vmem:[#allocation10 + $0x114] ss:$8 sps:$4 sm:$0xff]  }
 0x5a7   : > { %v3544_v22 = vmul.f32 %v7618_v35, %v3538_v19 }
 0x5a8   : > { %v3545_v24 = vmul.f32 %v7618_v35, %v3539_v21  ;;  %v3529_v54 = vpop.f32.mrb[20].mxu0 }
 0x5a9   : > { %v3548_v25 = vpack.c.bf16 %v3544_v22, %v3542_v62  ;;  %v5830_v49 = vadd.f32 %v3529_v54, %v2474_v32  ;;  %v3531_v26 = vpop.f32.mrb[21].mxu0  ;;  %v6654_v62 = vld [vmem:[#allocation10 + $0x130] ss:$8 sps:$4 sm:$0xff]  }
 0x5aa   : > { %v3549_v27 = vpack.c.bf16 %v3545_v24, %v3543_v55  ;;  %v5831_v29 = vadd.f32 %v3531_v26, %v2478_v42  ;;  %v3533_v30 = vpop.f32.mrb[22].mxu0 }
 0x5ab   : > { %v3717_v41 = vrot.slane %v3548_v25, 7  ;;  %v3540_v34 = vmax.f32 %v5830_v49, 0.0  ;;  %v3534_v9 = vpop.f32.mrb[23].mxu0  ;;  %v6659_v25 = vld [vmem:[#allocation10 + $0x144] ss:$8 sps:$4 sm:$0xff]  }
 0x5ac   : > { %v3718_v5 = vrot.slane %v3549_v27, 7  ;;  %v3541_v36 = vmax.f32 %v5831_v29, 0.0 }
 0x5ad   : > { %v3724_v39 = vsel %vm564_vm0, 0, %v3717_v41  ;;  %v3546_v11 = vmul.f32 %v7624_v50, %v3540_v34 }
 0x5ae   : > { %v3737_v3 = vshll.u32 %v3724_v39, 16  ;;  %v7837_v35 = vsel %vm564_vm0, 0, %v3718_v5  ;;  %v3547_v45 = vmul.f32 %v7624_v50, %v3541_v36  ;;  %5764 = vmatprep.mubr.msk.bf16.mxu1 %vm7627_vm10, %v3718_v5  ;;  %v3735_v6 = vshrl.u32 %v3724_v39, 16  ;;  %v6653_v50 = vld [vmem:[#allocation10 + $0x124] ss:$8 sps:$4 sm:$0xff]  }
 0x5af   : > { %v3550_v51 = vpack.c.bf16 %v3546_v11, %v3546_v11  ;;  %5766 = vmatmul.mubr.msk.bf16.vlgmr.msra.gmra.mrb[8].mxu1 %vm7627_vm10, %v3717_v41  ;;  %v3745_v46 = vshrl.u32 %v7837_v35, 16  ;;  %v3747_v31 = vshll.u32 %v7837_v35, 16  ;;  %v3772_v58 = vrot.slane %v7837_v35, 1  ;;  %v6660_v11 = vld [vmem:[#allocation10 + $0x150] ss:$8 sps:$4 sm:$0xff]  }
 0x5b0   : > { %v3551_v44 = vpack.c.bf16 %v3547_v45, %v3547_v45  ;;  %4668 = vmatpush1.bf16.msra.mxu1 %v6645_v12  ;;  %v3739_v8 = vrot.slane %v3737_v3, 1  ;;  %v3769_v0 = vrot.slane %v3724_v39, 1  ;;  %v3779_v56 = vrot.slane %v3735_v6, 1  ;;  %v6662_v12 = vld [vmem:[#allocation10 + $0x154] ss:$8 sps:$4 sm:$0xff]  }
 0x5b1   : > { %v3719_v61 = vrot.slane %v3550_v51, 7  ;;  %4669 = vmatprep.subr.bf16.mxu1 %v6650_v33  ;;  %v3749_v48 = vrot.slane %v3747_v31, 1  ;;  %v3786_v52 = vrot.slane %v3745_v46, 1  ;;  %v3787_v63 = vrot.slane %v3747_v31, 2  ;;  %v6665_v33 = vld [vmem:[#allocation10 + $0x164] ss:$8 sps:$4 sm:$0xff]  }
 0x5b2   : > { %v3721_v57 = vrot.slane %v3551_v44, 7  ;;  %v3780_v2 = vrot.slane %v3737_v3, 2  ;;  %v3740_v13 = vor.u32 %v3739_v8, %v3735_v6  ;;  %v3797_v32 = vrot.slane %v3724_v39, 2  ;;  %v6663_v3 = vld [vmem:[#allocation10 + $0x160] ss:$8 sps:$4 sm:$0xff]  }
 0x5b3   : > { %v3720_v7 = vsel %vm564_vm0, %v3717_v41, %v3719_v61  ;;  %v3750_v10 = vor.u32 %v3749_v48, %v3745_v46  ;;  %v3788_v14 = vor.u32 %v3787_v63, %v3786_v52  ;;  %v3800_v27 = vrot.slane %v7837_v35, 2  ;;  %v6668_v35 = vld [vmem:[#allocation10 + $0x174] ss:$8 sps:$4 sm:$0xff]   ;;  %v6666_v45 = vld [vmem:[#allocation10 + $0x170] ss:$8 sps:$4 sm:$0xff]  }
 0x5b4   : > { %4670 = vmatpush1.bf16.msra.mxu1 %v6648_v28  ;;  %v3722_v37 = vsel %vm564_vm0, %v3718_v5, %v3721_v57  ;;  %v7850_v53 = vsel %vm572_vm1, %v3720_v7, 0  ;;  %v3781_v38 = vor.u32 %v3780_v2, %v3779_v56  ;;  %v6657_v5 = vld [vmem:[#allocation10 + $0x140] ss:$8 sps:$4 sm:$0xff]   ;;  %v6671_v6 = vld [vmem:[#allocation10 + $0x184] ss:$8 sps:$4 sm:$0xff]  }
 0x5b5   : > { %v7853_v42 = vsel %vm572_vm1, %v3722_v37, 0  ;;  %5767 = vmatprep.mubr.msk.bf16.mxu1 %vm572_vm1, %v3722_v37  ;;  %4671 = vmatprep.subr.bf16.mxu1 %v6653_v50  ;;  %v3741_v60 = vshll.u32 %v7850_v53, 16  ;;  %v3770_v1 = vrot.slane %v7850_v53, 1  ;;  %v3798_v15 = vrot.slane %v7850_v53, 2  ;;  %v6669_v51 = vld [vmem:[#allocation10 + $0x180] ss:$8 sps:$4 sm:$0xff]  }
 0x5b6   : > { %v3751_v40 = vshll.u32 %v7853_v42, 16  ;;  %v3758_v43 = vshrl.u32 %v7853_v42, 16  ;;  %v3755_v4 = vshrl.u32 %v7850_v53, 16  ;;  %v3773_v59 = vrot.slane %v7853_v42, 1  ;;  %v6674_v46 = vld [vmem:[#allocation10 + $0x194] ss:$8 sps:$4 sm:$0xff]  }
 0x5b7   : > { %v3783_v17 = vrot.slane %v3741_v60, 2  ;;  %5768 = vmatmul.mubr.msk.bf16.gmra.mrb[12].mxu1 %vm572_vm1, %v3720_v7  ;;  %v7864_v18 = vrot.slane %v3741_v60, 1  ;;  %v7869_v19 = vsel %vm595_vm2, %v3769_v0, %v3770_v1  ;;  %v7874_v21 = vsel %vm615_vm5, %v3797_v32, %v3798_v15  ;;  %v6672_v31 = vld [vmem:[#allocation10 + $0x190] ss:$8 sps:$4 sm:$0xff]   ;;  %v6677_v44 = vld [vmem:[#allocation10 + $0x1a4] ss:$8 sps:$4 sm:$0xff]  }
 0x5b8   : > { %4672 = vmatpush1.bf16.msra.mxu1 %v6651_v47  ;;  %v7876_v22 = vrot.slane %v3751_v40, 1  ;;  %v3789_v55 = vrot.slane %v3758_v43, 1  ;;  %v3782_v24 = vrot.slane %v3755_v4, 1  ;;  %v7885_v54 = vsel %vm595_vm2, %v3772_v58, %v3773_v59  ;;  %v6675_v28 = vld [vmem:[#allocation10 + $0x1a0] ss:$8 sps:$4 sm:$0xff]  }
 0x5b9   : > { %4673 = vmatprep.subr.bf16.mxu1 %v6656_v16  ;;  %v7889_v49 = vsel %vm575_vm3, %v3740_v13, %v7864_v18  ;;  %v3790_v26 = vrot.slane %v3751_v40, 2  ;;  %v3801_v29 = vrot.slane %v7853_v42, 2  ;;  %v6680_v8 = vld [vmem:[#allocation10 + $0x1b4] ss:$8 sps:$4 sm:$0xff]   ;;  %v6678_v58 = vld [vmem:[#allocation10 + $0x1b0] ss:$8 sps:$4 sm:$0xff]  }
 0x5ba   : > { %v3754_v30 = vsel %vm575_vm3, %v3750_v10, %v7876_v22  ;;  %v7895_v41 = vor.u32 %v3783_v17, %v3782_v24  ;;  %v6683_v61 = vld [vmem:[#allocation10 + $0x1c4] ss:$8 sps:$4 sm:$0xff]   ;;  %v6681_v50 = vld [vmem:[#allocation10 + $0x1c0] ss:$8 sps:$4 sm:$0xff]   ;;  %v6686_v48 = vld [vmem:[#allocation10 + $0x1d4] ss:$8 sps:$4 sm:$0xff]   ;;  %v3760_v13 = vor.u32 %v3758_v43, %v7876_v22 }
 0x5bb   : > { %4699 = vmatprep.mubr.bf16.mxu1 %v3754_v30  ;;  %v7897_v34 = vor.u32 %v3790_v26, %v3789_v55  ;;  %v7902_v9 = vsel %vm615_vm5, %v3800_v27, %v3801_v29  ;;  %v6684_v52 = vld [vmem:[#allocation10 + $0x1d0] ss:$8 sps:$4 sm:$0xff]   ;;  %v6689_v63 = vld [vmem:[#allocation10 + $0x1e4] ss:$8 sps:$4 sm:$0xff]   ;;  %v6687_v57 = vld [vmem:[#allocation10 + $0x1e0] ss:$8 sps:$4 sm:$0xff]  }
 0x5bc   : > { %4674 = vmatpush1.bf16.msra.mxu1 %v6654_v62  ;;  %v7906_v36 = vsel %vm603_vm4, %v3781_v38, %v7895_v41  ;;  %v6692_v0 = vld [vmem:[#allocation10 + $0x1f4] ss:$8 sps:$4 sm:$0xff]   ;;  %v6690_v56 = vld [vmem:[#allocation10 + $0x1f0] ss:$8 sps:$4 sm:$0xff]   ;;  %v6695_v2 = vld [vmem:[#allocation10 + $0x204] ss:$8 sps:$4 sm:$0xff]   ;;  %v3757_v38 = vor.u32 %v3755_v4, %v7864_v18 }
 0x5bd   : > { %4675 = vmatprep.subr.bf16.mxu1 %v6659_v25  ;;  %v7910_v39 = vsel %vm603_vm4, %v3788_v14, %v7897_v34  ;;  %v6693_v7 = vld [vmem:[#allocation10 + $0x200] ss:$8 sps:$4 sm:$0xff]   ;;  %v6698_v10 = vld [vmem:[#allocation10 + $0x214] ss:$8 sps:$4 sm:$0xff]   ;;  %v6696_v14 = vld [vmem:[#allocation10 + $0x210] ss:$8 sps:$4 sm:$0xff]  }
 0x5be   : > { %v6701_v37 = vld [vmem:[#allocation10 + $0x224] ss:$8 sps:$4 sm:$0xff]   ;;  %v6699_v47 = vld [vmem:[#allocation10 + $0x220] ss:$8 sps:$4 sm:$0xff]   ;;  %v6704_v32 = vld [vmem:[#allocation10 + $0x234] ss:$8 sps:$4 sm:$0xff]  }
 0x5bf   : > { %v6702_v60 = vld [vmem:[#allocation10 + $0x230] ss:$8 sps:$4 sm:$0xff]   ;;  %v6707_v16 = vld [vmem:[#allocation10 + $0x244] ss:$8 sps:$4 sm:$0xff]   ;;  %v6705_v40 = vld [vmem:[#allocation10 + $0x240] ss:$8 sps:$4 sm:$0xff]  }
 0x5c0   : > { %4676 = vmatpush1.bf16.msra.mxu1 %v6657_v5  ;;  %v6710_v43 = vld [vmem:[#allocation10 + $0x254] ss:$8 sps:$4 sm:$0xff]   ;;  %v6708_v17 = vld [vmem:[#allocation10 + $0x250] ss:$8 sps:$4 sm:$0xff]   ;;  %v6713_v62 = vld [vmem:[#allocation10 + $0x264] ss:$8 sps:$4 sm:$0xff]  }
 0x5c1   : > { %4677 = vmatprep.subr.bf16.mxu1 %v6662_v12  ;;  %v6711_v22 = vld [vmem:[#allocation10 + $0x260] ss:$8 sps:$4 sm:$0xff]   ;;  %v6716_v4 = vld [vmem:[#allocation10 + $0x274] ss:$8 sps:$4 sm:$0xff]   ;;  %v6714_v18 = vld [vmem:[#allocation10 + $0x270] ss:$8 sps:$4 sm:$0xff]  }
 0x5c2   : > { %v6719_v55 = vld [vmem:[#allocation10 + $0x284] ss:$8 sps:$4 sm:$0xff]   ;;  %v6717_v24 = vld [vmem:[#allocation10 + $0x280] ss:$8 sps:$4 sm:$0xff]   ;;  %v6720_v25 = vld [vmem:[#allocation10 + $0x290] ss:$8 sps:$4 sm:$0xff]  }
 0x5c3   : > { %v6723_v26 = vld [vmem:[#allocation10 + $0x2a0] ss:$8 sps:$4 sm:$0xff]   ;;  %v6728_v27 = vld [vmem:[#allocation10 + $0x2b4] ss:$8 sps:$4 sm:$0xff]   ;;  %v6726_v30 = vld [vmem:[#allocation10 + $0x2b0] ss:$8 sps:$4 sm:$0xff]  }
 0x5c4   : > { %4678 = vmatpush1.bf16.msra.mxu1 %v6660_v11  ;;  %v6731_v5 = vld [vmem:[#allocation10 + $0x2c4] ss:$8 sps:$4 sm:$0xff]   ;;  %v6729_v12 = vld [vmem:[#allocation10 + $0x2c0] ss:$8 sps:$4 sm:$0xff]   ;;  %v6734_v11 = vld [vmem:[#allocation10 + $0x2d4] ss:$8 sps:$4 sm:$0xff]  }
 0x5c5   : > { %4679 = vmatprep.subr.bf16.mxu1 %v6665_v33  ;;  %v6732_v33 = vld [vmem:[#allocation10 + $0x2d0] ss:$8 sps:$4 sm:$0xff]   ;;  %v6845_v53 = vld [vmem:[#allocation11 + $0x60] sm:$0xff]  }
 0x5c6   : > { %v6843_v42 = vld [vmem:[#allocation11 + $0x58] sm:$0xff]  }
 0x5c8   : > { %4680 = vmatpush1.bf16.msra.mxu1 %v6663_v3  ;;  %v6737_v3 = vld [vmem:[#allocation10 + $0x2e4] ss:$8 sps:$4 sm:$0xff]  }
 0x5c9   : > { %4681 = vmatprep.subr.bf16.mxu1 %v6668_v35  ;;  %v6735_v35 = vld [vmem:[#allocation10 + $0x2e0] ss:$8 sps:$4 sm:$0xff]  }
 0x5cc   : > { %4682 = vmatpush1.bf16.msra.mxu1 %v6666_v45  ;;  %v6740_v45 = vld [vmem:[#allocation10 + $0x2f4] ss:$8 sps:$4 sm:$0xff]  }
 0x5cd   : > { %4683 = vmatprep.subr.bf16.mxu1 %v6671_v6  ;;  %v6738_v6 = vld [vmem:[#allocation10 + $0x2f0] ss:$8 sps:$4 sm:$0xff]  }
 0x5d0   : > { %4684 = vmatpush1.bf16.msra.mxu1 %v6669_v51  ;;  %v6743_v51 = vld [vmem:[#allocation10 + $0x304] ss:$8 sps:$4 sm:$0xff]  }
 0x5d1   : > { %4685 = vmatprep.subr.bf16.mxu1 %v6674_v46  ;;  %v6741_v46 = vld [vmem:[#allocation10 + $0x300] ss:$8 sps:$4 sm:$0xff]  }
 0x5d4   : > { %4686 = vmatpush1.bf16.msra.mxu1 %v6672_v31  ;;  %v6746_v31 = vld [vmem:[#allocation10 + $0x314] ss:$8 sps:$4 sm:$0xff]  }
 0x5d5   : > { %4687 = vmatprep.subr.bf16.mxu1 %v6677_v44  ;;  %v6744_v44 = vld [vmem:[#allocation10 + $0x310] ss:$8 sps:$4 sm:$0xff]  }
 0x5d8   : > { %4688 = vmatpush1.bf16.msra.mxu1 %v6675_v28  ;;  %v6749_v28 = vld [vmem:[#allocation10 + $0x324] ss:$8 sps:$4 sm:$0xff]  }
 0x5d9   : > { %4689 = vmatprep.subr.bf16.mxu1 %v6680_v8  ;;  %v6747_v8 = vld [vmem:[#allocation10 + $0x320] ss:$8 sps:$4 sm:$0xff]  }
 0x5dc   : > { %4690 = vmatpush1.bf16.msra.mxu1 %v6678_v58  ;;  %v6752_v58 = vld [vmem:[#allocation10 + $0x334] ss:$8 sps:$4 sm:$0xff]  }
 0x5dd   : > { %4691 = vmatprep.subr.bf16.mxu1 %v6683_v61  ;;  %v6750_v61 = vld [vmem:[#allocation10 + $0x330] ss:$8 sps:$4 sm:$0xff]  }
 0x5e0   : > { %4692 = vmatpush1.bf16.msra.mxu1 %v6681_v50  ;;  %v6753_v50 = vld [vmem:[#allocation10 + $0x340] ss:$8 sps:$4 sm:$0xff]  }
 0x5e1   : > { %4693 = vmatprep.subr.bf16.mxu1 %v6686_v48  ;;  %v6756_v48 = vld [vmem:[#allocation10 + $0x350] ss:$8 sps:$4 sm:$0xff]  }
 0x5e4   : > { %4694 = vmatpush1.bf16.msra.mxu1 %v6684_v52  ;;  %v6761_v52 = vld [vmem:[#allocation10 + $0x364] ss:$8 sps:$4 sm:$0xff]  }
 0x5e5   : > { %4695 = vmatprep.subr.bf16.mxu1 %v6689_v63  ;;  %v6759_v63 = vld [vmem:[#allocation10 + $0x360] ss:$8 sps:$4 sm:$0xff]  }
 0x5e8   : > { %4696 = vmatpush1.bf16.msra.mxu1 %v6687_v57  ;;  %v6764_v57 = vld [vmem:[#allocation10 + $0x374] ss:$8 sps:$4 sm:$0xff]  }
 0x5e9   : > { %4697 = vmatprep.subr.bf16.mxu1 %v6692_v0  ;;  %v6767_v0 = vld [vmem:[#allocation10 + $0x384] ss:$8 sps:$4 sm:$0xff]  }
 0x5ec   : > { %4698 = vmatpush1.bf16.msra.mxu1 %v6690_v56  ;;  %v6770_v56 = vld [vmem:[#allocation10 + $0x394] ss:$8 sps:$4 sm:$0xff]  }
 0x5ed   : > { %4716 = vmatprep.subr.bf16.mxu1 %v6695_v2  ;;  %v6768_v2 = vld [vmem:[#allocation10 + $0x390] ss:$8 sps:$4 sm:$0xff]  }
 0x5ef   : > { %4700 = vmatmul.mubr.bf16.vlgmr.msra.gmra.mrb[8].mxu1 %v7889_v49  ;;  %v6725_v49 = vld [vmem:[#allocation10 + $0x2a4] ss:$8 sps:$4 sm:$0xff]  }
 0x5f0   : > { %4709 = vmatprep.mubr.bf16.mxu1 %v3760_v13  ;;  %4717 = vmatpush1.bf16.msra.mxu1 %v6693_v7  ;;  %v6773_v7 = vld [vmem:[#allocation10 + $0x3a4] ss:$8 sps:$4 sm:$0xff]   ;;  %v6776_v13 = vld [vmem:[#allocation10 + $0x3b4] ss:$8 sps:$4 sm:$0xff]  }
 0x5f1   : > { %4718 = vmatprep.subr.bf16.mxu1 %v6698_v10  ;;  %v6771_v10 = vld [vmem:[#allocation10 + $0x3a0] ss:$8 sps:$4 sm:$0xff]  }
 0x5f4   : > { %4719 = vmatpush1.bf16.msra.mxu1 %v6696_v14  ;;  %v6774_v14 = vld [vmem:[#allocation10 + $0x3b0] ss:$8 sps:$4 sm:$0xff]  }
 0x5f5   : > { %4720 = vmatprep.subr.bf16.mxu1 %v6701_v37  ;;  %v6779_v37 = vld [vmem:[#allocation10 + $0x3c4] ss:$8 sps:$4 sm:$0xff]  }
 0x5f7   : > { %4710 = vmatmul.mubr.bf16.gmra.mrb[16].mxu1 %v3757_v38  ;;  %v6782_v38 = vld [vmem:[#allocation10 + $0x3d4] ss:$8 sps:$4 sm:$0xff]  }
 0x5f8   : > { %4721 = vmatpush1.bf16.msra.mxu1 %v6699_v47  ;;  %4748 = vmatprep.mubr.bf16.mxu1 %v7885_v54  ;;  %v6722_v54 = vld [vmem:[#allocation10 + $0x294] ss:$8 sps:$4 sm:$0xff]   ;;  %v6777_v47 = vld [vmem:[#allocation10 + $0x3c0] ss:$8 sps:$4 sm:$0xff]  }
 0x5f9   : > { %4722 = vmatprep.subr.bf16.mxu1 %v6704_v32  ;;  %v6780_v32 = vld [vmem:[#allocation10 + $0x3d0] ss:$8 sps:$4 sm:$0xff]  }
 0x5fc   : > { %4723 = vmatpush1.bf16.msra.mxu1 %v6702_v60  ;;  %v6785_v60 = vld [vmem:[#allocation10 + $0x3e4] ss:$8 sps:$4 sm:$0xff]  }
 0x5fd   : > { %4724 = vmatprep.subr.bf16.mxu1 %v6707_v16  ;;  %v6783_v16 = vld [vmem:[#allocation10 + $0x3e0] ss:$8 sps:$4 sm:$0xff]  }
 0x600   : > { %4725 = vmatpush1.bf16.msra.mxu1 %v6705_v40  ;;  %v6788_v40 = vld [vmem:[#allocation10 + $0x3f4] ss:$8 sps:$4 sm:$0xff]  }
 0x601   : > { %4726 = vmatprep.subr.bf16.mxu1 %v6710_v43  ;;  %v6786_v43 = vld [vmem:[#allocation10 + $0x3f0] ss:$8 sps:$4 sm:$0xff]  }
 0x604   : > { %4727 = vmatpush1.bf16.msra.mxu1 %v6708_v17  ;;  %v6791_v17 = vld [vmem:[#allocation10 + $0x404] ss:$8 sps:$4 sm:$0xff]  }
 0x605   : > { %4728 = vmatprep.subr.bf16.mxu1 %v6713_v62  ;;  %v6789_v62 = vld [vmem:[#allocation10 + $0x400] ss:$8 sps:$4 sm:$0xff]  }
 0x608   : > { %4729 = vmatpush1.bf16.msra.mxu1 %v6711_v22  ;;  %v6794_v22 = vld [vmem:[#allocation10 + $0x414] ss:$8 sps:$4 sm:$0xff]  }
 0x609   : > { %4730 = vmatprep.subr.bf16.mxu1 %v6716_v4  ;;  %v6792_v4 = vld [vmem:[#allocation10 + $0x410] ss:$8 sps:$4 sm:$0xff]  }
 0x60c   : > { %4731 = vmatpush1.bf16.msra.mxu1 %v6714_v18  ;;  %v6797_v18 = vld [vmem:[#allocation10 + $0x424] ss:$8 sps:$4 sm:$0xff]  }
 0x60d   : > { %4732 = vmatprep.subr.bf16.mxu1 %v6719_v55  ;;  %v6795_v55 = vld [vmem:[#allocation10 + $0x420] ss:$8 sps:$4 sm:$0xff]  }
 0x610   : > { %4733 = vmatpush1.bf16.msra.mxu1 %v6717_v24  ;;  %v6800_v24 = vld [vmem:[#allocation10 + $0x434] ss:$8 sps:$4 sm:$0xff]  }
 0x611   : > { %4734 = vmatprep.subr.bf16.mxu1 %v6722_v54  ;;  %v6798_v54 = vld [vmem:[#allocation10 + $0x430] ss:$8 sps:$4 sm:$0xff]  }
 0x614   : > { %4735 = vmatpush1.bf16.msra.mxu1 %v6720_v25  ;;  %v6803_v25 = vld [vmem:[#allocation10 + $0x444] ss:$8 sps:$4 sm:$0xff]  }
 0x615   : > { %4736 = vmatprep.subr.bf16.mxu1 %v6725_v49  ;;  %v6804_v49 = vld [vmem:[#allocation10 + $0x450] ss:$8 sps:$4 sm:$0xff]  }
 0x618   : > { %4737 = vmatpush1.bf16.msra.mxu1 %v6723_v26  ;;  %v6809_v26 = vld [vmem:[#allocation10 + $0x464] ss:$8 sps:$4 sm:$0xff]  }
 0x619   : > { %4738 = vmatprep.subr.bf16.mxu1 %v6728_v27  ;;  %v6807_v27 = vld [vmem:[#allocation10 + $0x460] ss:$8 sps:$4 sm:$0xff]  }
 0x61c   : > { %4739 = vmatpush1.bf16.msra.mxu1 %v6726_v30  ;;  %v6812_v30 = vld [vmem:[#allocation10 + $0x474] ss:$8 sps:$4 sm:$0xff]  }
 0x61d   : > { %4740 = vmatprep.subr.bf16.mxu1 %v6731_v5  ;;  %v6815_v5 = vld [vmem:[#allocation10 + $0x484] ss:$8 sps:$4 sm:$0xff]  }
 0x620   : > { %4741 = vmatpush1.bf16.msra.mxu1 %v6729_v12 }
 0x621   : > { %4742 = vmatprep.subr.bf16.mxu1 %v6734_v11 }
 0x624   : > { %4743 = vmatpush1.bf16.msra.mxu1 %v6732_v33  ;;  %v6813_v33 = vld [vmem:[#allocation10 + $0x480] ss:$8 sps:$4 sm:$0xff]  }
 0x625   : > { %4744 = vmatprep.subr.bf16.mxu1 %v6737_v3 }
 0x628   : > { %4745 = vmatpush1.bf16.msra.mxu1 %v6735_v35  ;;  %v6818_v35 = vld [vmem:[#allocation10 + $0x494] ss:$8 sps:$4 sm:$0xff]  }
 0x629   : > { %4746 = vmatprep.subr.bf16.mxu1 %v6740_v45  ;;  %v6816_v45 = vld [vmem:[#allocation10 + $0x490] ss:$8 sps:$4 sm:$0xff]  }
 0x62c   : > { %4747 = vmatpush1.bf16.msra.mxu1 %v6738_v6  ;;  %v6821_v6 = vld [vmem:[#allocation10 + $0x4a4] ss:$8 sps:$4 sm:$0xff]  }
 0x62d   : > { %4765 = vmatprep.subr.bf16.mxu1 %v6743_v51  ;;  %v6819_v51 = vld [vmem:[#allocation10 + $0x4a0] ss:$8 sps:$4 sm:$0xff]  }
 0x62f   : > { %4749 = vmatmul.mubr.bf16.vlgmr.msra.gmra.mrb[8].mxu1 %v7869_v19  ;;  %v6755_v19 = vld [vmem:[#allocation10 + $0x344] ss:$8 sps:$4 sm:$0xff]  }
 0x630   : > { %4758 = vmatprep.mubr.bf16.mxu1 %v3773_v59  ;;  %4766 = vmatpush1.bf16.msra.mxu1 %v6741_v46  ;;  %v6758_v59 = vld [vmem:[#allocation10 + $0x354] ss:$8 sps:$4 sm:$0xff]  }
 0x631   : > { %4767 = vmatprep.subr.bf16.mxu1 %v6746_v31  ;;  %v6824_v46 = vld [vmem:[#allocation10 + $0x4b4] ss:$8 sps:$4 sm:$0xff]   ;;  %v6822_v31 = vld [vmem:[#allocation10 + $0x4b0] ss:$8 sps:$4 sm:$0xff]  }
 0x634   : > { %4768 = vmatpush1.bf16.msra.mxu1 %v6744_v44  ;;  %v6827_v44 = vld [vmem:[#allocation10 + $0x4c4] ss:$8 sps:$4 sm:$0xff]  }
 0x635   : > { %4769 = vmatprep.subr.bf16.mxu1 %v6749_v28  ;;  %v6825_v28 = vld [vmem:[#allocation10 + $0x4c0] ss:$8 sps:$4 sm:$0xff]  }
 0x637   : > { %4759 = vmatmul.mubr.bf16.gmra.mrb[20].mxu1 %v3770_v1  ;;  %v6762_v1 = vld [vmem:[#allocation10 + $0x370] ss:$8 sps:$4 sm:$0xff]  }
 0x638   : > { %4770 = vmatpush1.bf16.msra.mxu1 %v6747_v8  ;;  %4797 = vmatprep.mubr.bf16.mxu1 %v7910_v39  ;;  %v6765_v39 = vld [vmem:[#allocation10 + $0x380] ss:$8 sps:$4 sm:$0xff]   ;;  %v6830_v8 = vld [vmem:[#allocation10 + $0x4d4] ss:$8 sps:$4 sm:$0xff]  }
 0x639   : > { %4771 = vmatprep.subr.bf16.mxu1 %v6752_v58  ;;  %v6828_v58 = vld [vmem:[#allocation10 + $0x4d0] ss:$8 sps:$4 sm:$0xff]  }
 0x63c   : > { %4772 = vmatpush1.bf16.msra.mxu1 %v6750_v61  ;;  %v6833_v61 = vld [vmem:[#allocation10 + $0x4e4] ss:$8 sps:$4 sm:$0xff]  }
 0x63d   : > { %4773 = vmatprep.subr.bf16.mxu1 %v6755_v19  ;;  %v6831_v19 = vld [vmem:[#allocation10 + $0x4e0] ss:$8 sps:$4 sm:$0xff]  }
 0x640   : > { %4774 = vmatpush1.bf16.msra.mxu1 %v6753_v50  ;;  %v6836_v50 = vld [vmem:[#allocation10 + $0x4f4] ss:$8 sps:$4 sm:$0xff]  }
 0x641   : > { %4775 = vmatprep.subr.bf16.mxu1 %v6758_v59  ;;  %v6834_v59 = vld [vmem:[#allocation10 + $0x4f0] ss:$8 sps:$4 sm:$0xff]  }
 0x644   : > { %4776 = vmatpush1.bf16.msra.mxu1 %v6756_v48 }
 0x645   : > { %4777 = vmatprep.subr.bf16.mxu1 %v6761_v52 }
 0x648   : > { %4778 = vmatpush1.bf16.msra.mxu1 %v6759_v63 }
 0x649   : > { %4779 = vmatprep.subr.bf16.mxu1 %v6764_v57 }
 0x64c   : > { %4780 = vmatpush1.bf16.msra.mxu1 %v6762_v1  ;;  %v6837_v1 = vld [vmem:[#allocation11 + $0x40] sm:$0xff]  }
 0x64d   : > { %4781 = vmatprep.subr.bf16.mxu1 %v6767_v0  ;;  %v6838_v0 = vld [vmem:[#allocation11] sm:$0xff]   ;;  %5792 = vmatprep.subr.bf16.mxu0 %v6837_v1 }
 0x64e   : > { %5793 = vmatpush3.bf16.msra.mxu0 %v6838_v0 }
 0x650   : > { %4782 = vmatpush1.bf16.msra.mxu1 %v6765_v39  ;;  %v6839_v39 = vld [vmem:[#allocation11 + $0x48] sm:$0xff]  }
 0x651   : > { %4783 = vmatprep.subr.bf16.mxu1 %v6770_v56  ;;  %v6840_v56 = vld [vmem:[#allocation11 + $0x8] sm:$0xff]   ;;  %5794 = vmatprep.subr.bf16.mxu0 %v6839_v39 }
 0x652   : > { %5795 = vmatpush3.bf16.msra.mxu0 %v6840_v56 }
 0x654   : > { %4784 = vmatpush1.bf16.msra.mxu1 %v6768_v2  ;;  %v6841_v2 = vld [vmem:[#allocation11 + $0x50] sm:$0xff]  }
 0x655   : > { %4785 = vmatprep.subr.bf16.mxu1 %v6773_v7  ;;  %5796 = vmatprep.subr.bf16.mxu0 %v6841_v2  ;;  %v6847_v7 = vld [vmem:[#allocation11 + $0x68] sm:$0xff]  }
 0x658   : > { %4786 = vmatpush1.bf16.msra.mxu1 %v6771_v10  ;;  %v6848_v10 = vld [vmem:[#allocation11 + $0x28] sm:$0xff]  }
 0x659   : > { %4787 = vmatprep.subr.bf16.mxu1 %v6776_v13 }
 0x65c   : > { %4788 = vmatpush1.bf16.msra.mxu1 %v6774_v14  ;;  %v6849_v14 = vld [vmem:[#allocation11 + $0x70] sm:$0xff]  }
 0x65d   : > { %4789 = vmatprep.subr.bf16.mxu1 %v6779_v37 }
 0x660   : > { %4790 = vmatpush1.bf16.msra.mxu1 %v6777_v47  ;;  %v6850_v47 = vld [vmem:[#allocation11 + $0x30] sm:$0xff]  }
 0x661   : > { %4791 = vmatprep.subr.bf16.mxu1 %v6782_v38 }
 0x664   : > { %4792 = vmatpush1.bf16.msra.mxu1 %v6780_v32  ;;  %v6851_v32 = vld [vmem:[#allocation11 + $0x78] sm:$0xff]  }
 0x665   : > { %4793 = vmatprep.subr.bf16.mxu1 %v6785_v60 }
 0x668   : > { %4794 = vmatpush1.bf16.msra.mxu1 %v6783_v16  ;;  %v6852_v16 = vld [vmem:[#allocation11 + $0x38] sm:$0xff]  }
 0x669   : > { %4795 = vmatprep.subr.bf16.mxu1 %v6788_v40 }
 0x66c   : > { %4796 = vmatpush1.bf16.msra.mxu1 %v6786_v43 }
 0x66d   : > { %4814 = vmatprep.subr.bf16.mxu1 %v6791_v17 }
 0x66f   : > { %4798 = vmatmul.mubr.bf16.vlgmr.msra.gmra.mrb[8].mxu1 %v7906_v36  ;;  %v6801_v36 = vld [vmem:[#allocation10 + $0x440] ss:$8 sps:$4 sm:$0xff]  }
 0x670   : > { %4807 = vmatprep.mubr.bf16.mxu1 %v7897_v34  ;;  %4815 = vmatpush1.bf16.msra.mxu1 %v6789_v62  ;;  %v6806_v34 = vld [vmem:[#allocation10 + $0x454] ss:$8 sps:$4 sm:$0xff]  }
 0x671   : > { %4816 = vmatprep.subr.bf16.mxu1 %v6794_v22  ;;  %v3712_v22 = vld [vmem:[%s8078_s5] sm:$0x3]  ;;  %s8081_s5 = sld [smem:[#allocation33_spill]] }
 0x674   : > { %4817 = vmatpush1.bf16.msra.mxu1 %v6792_v4  ;;  %v3811_v4 = vrot.slane %v3712_v22, %v7607_v20 }
 0x675   : > { %4818 = vmatprep.subr.bf16.mxu1 %v6797_v18  ;;  %v3815_v18 = vrot.slane %v3712_v22, %v7612_v23 }
 0x677   : > { %4808 = vmatmul.mubr.bf16.gmra.mrb[24].mxu1 %v7895_v41  ;;  %v6810_v41 = vld [vmem:[#allocation10 + $0x470] ss:$8 sps:$4 sm:$0xff]   ;;  %s7949_s7 = scalar_lea.hbm %s8081_s5, %s5788_s14 }
 0x678   : > { %4819 = vmatpush1.bf16.msra.mxu1 %v6795_v55  ;;  %4846 = vmatprep.mubr.bf16.mxu1 %v7902_v9 }
 0x679   : > { %4820 = vmatprep.subr.bf16.mxu1 %v6800_v24 }
 0x67c   : > { %4821 = vmatpush1.bf16.msra.mxu1 %v6798_v54 }
 0x67d   : > { %4822 = vmatprep.subr.bf16.mxu1 %v6803_v25 }
 0x680   : > { %4823 = vmatpush1.bf16.msra.mxu1 %v6801_v36 }
 0x681   : > { %4824 = vmatprep.subr.bf16.mxu1 %v6806_v34 }
 0x684   : > { %4825 = vmatpush1.bf16.msra.mxu1 %v6804_v49 }
 0x685   : > { %4826 = vmatprep.subr.bf16.mxu1 %v6809_v26 }
 0x688   : > { %4827 = vmatpush1.bf16.msra.mxu1 %v6807_v27 }
 0x689   : > { %4828 = vmatprep.subr.bf16.mxu1 %v6812_v30 }
 0x68a   : > { %v4662_v9 = vpop.f32.mrb[12].mxu1 }
 0x68b   : > { %v4663_v12 = vpop.f32.mrb[13].mxu1 }
 0x68c   : > { %4829 = vmatpush1.bf16.msra.mxu1 %v6810_v41  ;;  %v4664_v11 = vpop.f32.mrb[14].mxu1 }
 0x68d   : > { %v4665_v3 = vpop.f32.mrb[15].mxu1  ;;  %4830 = vmatprep.subr.bf16.mxu1 %v6815_v5 }
 0x690   : > { %4831 = vmatpush1.bf16.msra.mxu1 %v6813_v33 }
 0x691   : > { %4832 = vmatprep.subr.bf16.mxu1 %v6818_v35 }
 0x694   : > { %4833 = vmatpush1.bf16.msra.mxu1 %v6816_v45 }
 0x695   : > { %4834 = vmatprep.subr.bf16.mxu1 %v6821_v6  ;;  %v5769_v6 = vld [vmem:[%s8079_s8] ss:$0 sm:$0xff]  ;;  %s7178_s8 = smov [#allocation13]  }
 0x696   : > { %s7031_s16 = sshll.u32 %s7178_s8, 4  ;;  %s7032_s16 = int_to_ptr.vmem [resolvable:$false] %s7031_s16 }
 0x697   : > { %s7033_s1 = scalar_lea.vmem %s7032_s16, 256  ;;  %p7034_p11 = scmp.lt.s32.totalorder %s7951_s28, %s7032_s16 }
 0x698   : > { %4835 = vmatpush1.bf16.msra.mxu1 %v6819_v51  ;;  %p7035_p8 = scmp.lt.s32.totalorder %s7033_s1, %s7027_s3 }
 0x699   : > { %4836 = vmatprep.subr.bf16.mxu1 %v6824_v46 }
 0x69a   : > { %p7036_p13 = por %p7035_p8, %p7034_p11 }
 0x69c   : > { %4837 = vmatpush1.bf16.msra.mxu1 %v6822_v31  ;;  %p7037_p2 = pnand %p7036_p13, %p7030_p9 }
 0x69d   : > { %4838 = vmatprep.subr.bf16.mxu1 %v6827_v44 }
 0x6a0   : > { %4839 = vmatpush1.bf16.msra.mxu1 %v6825_v28 }
 0x6a1   : > { %4840 = vmatprep.subr.bf16.mxu1 %v6830_v8 }
 0x6a4   : > { %4841 = vmatpush1.bf16.msra.mxu1 %v6828_v58 }
 0x6a5   : > { %4842 = vmatprep.subr.bf16.mxu1 %v6833_v61 }
 0x6a8   : > { %4843 = vmatpush1.bf16.msra.mxu1 %v6831_v19 }
 0x6a9   : > { %4844 = vmatprep.subr.bf16.mxu1 %v6836_v50 }
 0x6ac   : > { %4845 = vmatpush1.bf16.msra.mxu1 %v6834_v59 }
 0x6af   : > { %4847 = vmatmul.mubr.bf16.vlgmr.msra.gmra.mrb[8].mxu1 %v7874_v21  ;;  %v6842_v21 = vld [vmem:[#allocation11 + $0x10] sm:$0xff]  }
 0x6b0   : > { %4856 = vmatprep.mubr.bf16.mxu1 %v3801_v29  ;;  %5797 = vmatpush3.bf16.msra.mxu0 %v6842_v21  ;;  %v6844_v29 = vld [vmem:[#allocation11 + $0x18] sm:$0xff]  }
 0x6b1   : > { %5798 = vmatprep.subr.bf16.mxu0 %v6843_v42 }
 0x6b4   : > { %5799 = vmatpush3.bf16.msra.mxu0 %v6844_v29 }
 0x6b5   : > { %5800 = vmatprep.subr.bf16.mxu0 %v6845_v53 }
 0x6b7   : > { %4857 = vmatmul.mubr.bf16.gmra.mrb[28].mxu1 %v3798_v15  ;;  %v6846_v15 = vld [vmem:[#allocation11 + $0x20] sm:$0xff]  }
 0x6b8   : > { %5801 = vmatpush3.bf16.msra.mxu0 %v6846_v15 }
 0x6b9   : > { %5802 = vmatprep.subr.bf16.mxu0 %v6847_v7 }
 0x6bc   : > { %5803 = vmatpush3.bf16.msra.mxu0 %v6848_v10 }
 0x6bd   : > { %5804 = vmatprep.subr.bf16.mxu0 %v6849_v14 }
 0x6c0   : > { %5805 = vmatpush3.bf16.msra.mxu0 %v6850_v47 }
 0x6c1   : > { %5806 = vmatprep.subr.bf16.mxu0 %v6851_v32 }
 0x6c4   : > { %5807 = vmatpush3.bf16.msra.mxu0 %v6852_v16 }
 0x6ca   : > { %v4711_v48 = vpop.f32.mrb[16].mxu1 }
 0x6cb   : > { %v4712_v52 = vpop.f32.mrb[17].mxu1 }
 0x6cc   : > { %v4713_v63 = vpop.f32.mrb[18].mxu1 }
 0x6cd   : > { %v4714_v57 = vpop.f32.mrb[19].mxu1 }
 0x70a   : > { %v4760_v13 = vpop.f32.mrb[20].mxu1 }
 0x70b   : > { %v4761_v37 = vpop.f32.mrb[21].mxu1 }
 0x70c   : > { %v4762_v38 = vpop.f32.mrb[22].mxu1 }
 0x70d   : > { %v4763_v60 = vpop.f32.mrb[23].mxu1 }
 0x74a   : > { %v4809_v40 = vpop.f32.mrb[24].mxu1 }
 0x74b   : > { %v4810_v43 = vpop.f32.mrb[25].mxu1 }
 0x74c   : > { %v4811_v17 = vpop.f32.mrb[26].mxu1 }
 0x74d   : > { %v4812_v62 = vpop.f32.mrb[27].mxu1 }
 0x782   : > { %v4848_v55 = vpop.f32.mrb[8].mxu1 }
 0x783   : > { %v5832_v24 = vadd.f32 %v4848_v55, %v3811_v4  ;;  %v4850_v54 = vpop.f32.mrb[9].mxu1 }
 0x784   : > { %v5833_v25 = vadd.f32 %v4850_v54, %v3815_v18  ;;  %v4852_v36 = vpop.f32.mrb[10].mxu1 }
 0x785   : > { %v5834_v34 = vadd.f32 %v4852_v36, %v3811_v4  ;;  %v4854_v49 = vpop.f32.mrb[11].mxu1  ;;  %v4863_v27 = vmax.f32 %v5832_v24, 0.0 }
 0x786   : > { %v5835_v26 = vadd.f32 %v4854_v49, %v3815_v18  ;;  %v4864_v41 = vmax.f32 %v5833_v25, 0.0 }
 0x787   : > { %v4865_v30 = vmax.f32 %v5834_v34, 0.0 }
 0x788   : > { %v4866_v5 = vmax.f32 %v5835_v26, 0.0 }
 0x789   : > { %v4867_v9 = vpack.c.bf16 %v4865_v30, %v4863_v27 }
 0x78a   : > { %v4868_v12 = vpack.c.bf16 %v4866_v5, %v4864_v41  ;;  %v4858_v11 = vpop.f32.mrb[28].mxu1 }
 0x78b   : > { %v4859_v33 = vpop.f32.mrb[29].mxu1  ;;  %v4910_v35 = vrot.slane %v4867_v9, 4 }
 0x78c   : > { %v4911_v3 = vrot.slane %v4868_v12, 4  ;;  %v4860_v20 = vpop.f32.mrb[30].mxu1 }
 0x78d   : > { %v4861_v23 = vpop.f32.mrb[31].mxu1 }
 0x78e   : > { %5042 = vmatprep.mubr.bf16.mxu0 %v4911_v3 }
 0x78f   : > { %5043 = vmatmul.mubr.bf16.vlgmr.msra.gmra.mrb[24].mxu0 %v4910_v35 }
 0x862   : > { %v5808_v45 = vpop.f32.mrb[24].mxu0 }
 0x863   : > { %v5809_v51 = vpop.f32.mrb[25].mxu0 }
 0x864   : > { %v5810_v46 = vadd.f32 %v5809_v51, %v5808_v45  ;;  %v5811_v31 = vpop.f32.mrb[26].mxu0 }
 0x865   : > { %v5812_v44 = vpop.f32.mrb[27].mxu0 }
 0x866   : > { %v5045_v28 = vadd.f32 %v5810_v46, %v5769_v6 }
 0x868   : > { %5050 = vmax.xlane.f32.xlu0 %v5045_v28 }
 0x8f5   : > { %v5051_v8 = vpop.xlane.xlu0 %5050 }
 0x8f6   : > { %v5052_v58 = vsub.f32 %v5045_v28, %v5051_v8 }
 0x8f8   : > { %v5053_v61 = vmul.f32 1.442695, %v5052_v58 }
 0x8fa   : > { %6853 = vpow2.f32 %v5053_v61 }
 0x904   : > { %v6854_v19 = vpop.eup %6853 }
 0x905   : > { %5055 = vadd.xlane.f32.xlu1 %v6854_v19 }
 0x992   : > { %v5056_v50 = vpop.xlane.xlu1 %5055 }
 0x993   : > { %6855 = vlog2.f32 %v5056_v50 }
 0x99d   : > { %v6856_v59 = vpop.eup %6855 }
 0x99e   : > { %v5058_v48 = vmul.f32 0.6931472, %v6856_v59 }
 0x9a0   : > { %v5059_v52 = vadd.f32 %v5058_v48, %v5051_v8 }
 0x9a2   : > { %v5060_v63 = vsub.f32 %v5045_v28, %v5059_v52 }
 0x9a4   : > { %5061 = vst [vmem:[%s491_s23] sm:$0xff] %v5060_v63 }
 0x9a5   : > { %7040 = shalt.err (!%p7037_p2)
}
 0x9a6   : > { %s7041_s20 = scalar_lea.hbm %s7949_s7, 128  ;;  %s7045_s14 = scalar_lea.hbm %s8081_s5, 512 }
 0x9a7   : > { %p7042_p7 = scmp.ne.s32.totalorder %s7949_s7, %s7041_s20  ;;  %p7046_p10 = scmp.lt.u32.totalorder %s7949_s7, %s8081_s5 }
 0x9a8   : > { %p7047_p3 = scmp.lt.u32.totalorder %s7045_s14, %s7041_s20  ;;  %p7049_p5 = scmp.lt.u32.totalorder %s7041_s20, %s7949_s7 }
 0x9a9   : > { %p7043_p0 = pnand %p7042_p7, %p8082_p1 }
 0x9aa   : > { %p7048_p12 = por %p7047_p3, %p7046_p10 }
 0x9ab   : > { %p7044_p4 = pneg %p7043_p0 }
 0x9ac   : > { %p7050_p6 = por %p7049_p5, %p7048_p12 }
 0x9ae   : > { %p7051_p9 = pnand %p7050_p6, %p7044_p4 }
 0x9b0   : > { %7054 = shalt.err (!%p7051_p9)
}
 0x9b1   : > { %5930 = dma.vmem_to_hbm [thread:$0]  (%p8082_p1), %s7951_s28, 128, %s7949_s7, %s5063_s10  }
 0x9b2 PF: > { %p5967_p11 = scmp.ge.s32.totalorder %s7161_s27, 2  ;;  %s5090_s11 = sand.u32 1, %s7121_s17  }
 0x9b3   : > { %p8083_p8 = scmp.ne.s32.totalorder %s8064_s2, 0  ;;  %s5091_s3 = scalar_lea.sflag [#allocation4], %s5090_s11 }
 0x9b5   : > { %p5953_p13 = pnand %p5967_p11, %p8083_p8 }
 0x9b7   : > { %7116 = dma.done.wait (!%p5953_p13), %s5091_s3, 128  }
 0x9b8   : > { %7118 = vsyncadd (!%p5953_p13), %s5091_s3, 4294967168  ;;  %s30_s27 = sadd.s32 1, %s7161_s27   ;;  %s8084_s17 = smov %s7125_s18 }
 0x9b9   : > { %p27_p2 = scmp.ge.s32.totalorder %s30_s27, 6   ;;  %s8085_s18 = smov %s7129_s19 }
 0x9ba   : > { %s8086_s19 = smov %s7499_s30  ;;  %s8087_s20 = smov %s7137_s21 }
 0x9bb   : > { %s8088_s21 = smov %s7141_s22  ;;  %s8089_s22 = smov %s7496_s6 }
 0x9bc   : > { %s8090_s23 = smov %s7153_s25  ;;  %s8091_s24 = smov %s7157_s26 }
 0x9bd   : > { %s8092_s25 = smov %s8095_s12  ;;  %s8093_s26 = smov %s8099_s13 }
 0x9be   :  { %29 = sbr.rel (!%p27_p2) target bundleno = 24 (0x18), region = 130 }
 0x9c5   :  { %5096 = vsyncpa [#allocation3], 1 }
 0x9c6   :  { %5098 = vsyncpa [#allocation3 + $0x1], 1 }
 0x9c7   :  { %5099 = vsyncpa [#allocation6], 1 }
 0x9c8   :  { %5100 = vsyncpa [#allocation9], 1 }
 0x9c9   :  { %5101 = vsyncpa [#allocation12], 1 }
 0x9ca   :  { %5102 = vsyncpa [#allocation4], 1 }
 0x9cb   :  { %5104 = vsyncpa [#allocation4 + $0x1], 1 }

</bundles_post_ra>
